<compile_context>
chip_gen: v6e
topology: v6e:2x2x1
jax: 0.10.0
libtpu: 0.0.40
codegen_flags: <defaults>
</compile_context>

<pallas_src>
import functools
import math

import jax
import jax.numpy as jnp
from jax import lax
from jax.experimental import pallas as pl
from jax.experimental.pallas import tpu as pltpu


_DEFAULT_VMEM_LIMIT = 48 * 1024 * 1024


@functools.lru_cache(maxsize=1)
def _vmem_limit_bytes():
    # v5e/v6e have 128 MiB of VMEM, v7x only 64 MiB: budget 3/4 of whatever
    # this part actually has instead of one fixed constant.
    try:
        cap = getattr(pltpu.get_tpu_info(), "vmem_capacity_bytes", None)
        if cap:
            return int(cap) * 3 // 4
    except Exception:
        pass
    return _DEFAULT_VMEM_LIMIT


def _pick_row_tile(H, W, max_m=512):
    # Largest row tile th with H % th == 0 and th*W a multiple of 128
    # (lane-dense stores) while keeping the per-step matmul M dimension modest.
    cands = [t for t in range(1, H + 1) if H % t == 0 and (t * W) % 128 == 0]
    if not cands:
        return H
    under = [t for t in cands if t * W <= max_m]
    return max(under) if under else min(cands)


# ----------------------------------------------------------------------------
# Kernel 1: backbone 3x3 conv (stride 1, pad 1) + bias + ReLU, bf16 MXU.
# grid = (batch, row_tiles).  The (1, H+2, W+2, Cin_pad) mean-padded image
# stays resident in VMEM (constant block index along the row axis); each step
# builds one (th*W, 9*Cin_pad) in-VMEM im2col operand from 9 shifted slices
# and issues a single K-packed matmul.  Pixel normalization is folded into the
# weights/bias, so no standalone normalize pass exists.
# ----------------------------------------------------------------------------
def _backbone_conv_kernel(x_ref, w_ref, b_ref, o_ref):
    th, W, Cf = o_ref.shape[1], o_ref.shape[2], o_ref.shape[3]
    Cin = x_ref.shape[3]
    r0 = pl.multiple_of(pl.program_id(1) * th, th)
    pieces = []
    for dy in range(3):
        for dx in range(3):
            p = x_ref[0, pl.ds(r0 + dy, th), dx:dx + W, :]
            pieces.append(p.reshape(th * W, Cin))
    patch = jnp.concatenate(pieces, axis=1)                       # (M, 9*Cin) bf16
    acc = jnp.dot(patch, w_ref[...], preferred_element_type=jnp.float32)
    acc = jnp.maximum(acc + b_ref[...], 0.0)
    o_ref[0] = acc.reshape(th, W, Cf).astype(o_ref.dtype)


def backbone_conv(x_padded, w_packed, bias, out_dtype, th):
    # x_padded: (N, H+2, W+2, Cin_pad) bf16; w_packed: (9*Cin_pad, Cf) bf16
    N, Hp, Wp, Cin = x_padded.shape
    H, W = Hp - 2, Wp - 2
    Cf = w_packed.shape[-1]
    assert H % th == 0
    return pl.pallas_call(
        _backbone_conv_kernel,
        out_shape=jax.ShapeDtypeStruct((N, H, W, Cf), out_dtype),
        grid_spec=pltpu.PrefetchScalarGridSpec(
            num_scalar_prefetch=0,
            grid=(N, H // th),
            in_specs=[
                pl.BlockSpec((1, Hp, Wp, Cin), lambda n, m: (n, 0, 0, 0)),
                pl.BlockSpec(tuple(w_packed.shape), lambda n, m: (0, 0)),
                pl.BlockSpec((1, Cf), lambda n, m: (0, 0)),
            ],
            out_specs=pl.BlockSpec((1, th, W, Cf), lambda n, m: (n, m, 0, 0)),
        ),
        compiler_params=pltpu.CompilerParams(
            dimension_semantics=("parallel", "parallel"),
            vmem_limit_bytes=_vmem_limit_bytes(),
        ),
    )(x_padded, w_packed, bias)


# ----------------------------------------------------------------------------
# Kernel 2: fused RPN.  For each (batch, row-tile):
#   * build a zero-padded (th+2, W+2, Cf) feature slab in VMEM scratch from the
#     UNPADDED feature map (no jnp.pad HBM round-trip; boundary rows masked),
#   * shared 3x3 conv + ReLU as one K-packed (M, 9*Cf) bf16 matmul,
#   * objectness + anchor-delta head computed transposed (5A, M),
#   * Box2BoxTransform.apply_deltas + per-image clipping vectorized over all
#     anchors (anchor centers from iota, anchor w/h static).
# Outputs are lane-dense: logits (N, A, HW) and boxes (N, 4, A, HW).
# ----------------------------------------------------------------------------
def _rpn_fused_kernel(sizes_ref, feat_ref, wc_ref, bc_ref, wh_ref, bh_ref,
                      logit_ref, box_ref, slab_ref,
                      *, num_anchors, anchor_ws, anchor_hs, stride):
    A = num_anchors
    H, W, Cf = feat_ref.shape[1], feat_ref.shape[2], feat_ref.shape[3]
    M = logit_ref.shape[2]                     # th * W, multiple of 128
    th = M // W
    n = pl.program_id(0)
    r0 = pl.multiple_of(pl.program_id(1) * th, th)

    # ---- zero-padded feature slab for this row tile (RPN conv pads with 0) --
    mid = feat_ref[0, pl.ds(r0, th), :, :]
    top = feat_ref[0, pl.ds(jnp.maximum(r0 - 1, 0), 1), :, :]
    bot = feat_ref[0, pl.ds(jnp.minimum(r0 + th, H - 1), 1), :, :]
    top = jnp.where(r0 > 0, top, jnp.zeros_like(top))
    bot = jnp.where(r0 + th < H, bot, jnp.zeros_like(bot))
    zcol = jnp.zeros((th + 2, 1, Cf), slab_ref.dtype)
    slab_ref[:, 0:1, :] = zcol
    slab_ref[:, W + 1:W + 2, :] = zcol
    slab_ref[0:1, 1:W + 1, :] = top
    slab_ref[1:th + 1, 1:W + 1, :] = mid
    slab_ref[th + 1:th + 2, 1:W + 1, :] = bot

    # ---- shared 3x3 conv + ReLU as ONE K-packed matmul ----------------------
    pieces = []
    for dy in range(3):
        for dx in range(3):
            pieces.append(slab_ref[dy:dy + th, dx:dx + W, :].reshape(M, Cf))
    patch = jnp.concatenate(pieces, axis=1)                       # (M, 9*Cf) bf16
    hidden = jnp.dot(patch, wc_ref[...], preferred_element_type=jnp.float32)
    hidden = jnp.maximum(hidden + bc_ref[...], 0.0)               # (M, Cf) f32

    # ---- fused objectness + delta head, computed transposed (lane dim = M) --
    hidden_t = hidden.T.astype(wh_ref.dtype)                      # (Cf, M)
    head = jnp.dot(wh_ref[...], hidden_t,
                   preferred_element_type=jnp.float32) + bh_ref[...]  # (5A_pad, M)
    logit_ref[0] = head[:A, :]

    # ---- Box2BoxTransform.apply_deltas (weights=(1,1,1,1)) + per-image clip --
    scale_clamp = math.log(1000.0 / 16.0)
    img_h = sizes_ref[n, 0].astype(jnp.float32)
    img_w = sizes_ref[n, 1].astype(jnp.float32)

    # anchor centers from the pixel index; anchor w/h from static config
    j = lax.broadcasted_iota(jnp.int32, (1, M), 1).astype(jnp.float32)
    row = jnp.floor((j + 0.5) * (1.0 / W))
    col = j - row * W
    cx = col * stride                                             # (1, M)
    cy = (row + r0) * stride                                      # (1, M)
    a_idx = lax.broadcasted_iota(jnp.int32, (A, 1), 0)
    aw = jnp.zeros((A, 1), jnp.float32)
    ah = jnp.zeros((A, 1), jnp.float32)
    for a in range(A):
        aw = jnp.where(a_idx == a, anchor_ws[a], aw)
        ah = jnp.where(a_idx == a, anchor_hs[a], ah)

    d_x = head[A:2 * A, :]
    d_y = head[2 * A:3 * A, :]
    d_w = jnp.minimum(head[3 * A:4 * A, :], scale_clamp)
    d_h = jnp.minimum(head[4 * A:5 * A, :], scale_clamp)
    pcx = d_x * aw + cx
    pcy = d_y * ah + cy
    pw = jnp.exp(d_w) * aw
    ph = jnp.exp(d_h) * ah
    box_ref[0, 0] = jnp.clip(pcx - 0.5 * pw, 0.0, img_w)
    box_ref[0, 1] = jnp.clip(pcy - 0.5 * ph, 0.0, img_h)
    box_ref[0, 2] = jnp.clip(pcx + 0.5 * pw, 0.0, img_w)
    box_ref[0, 3] = jnp.clip(pcy + 0.5 * ph, 0.0, img_h)


def rpn_fused(image_sizes, feat, rpn_w_packed, rpn_b, head_w_t, head_b_t,
              num_anchors, anchor_ws, anchor_hs, stride, th):
    # feat: (N, H, W, Cf) bf16 (UNPADDED); rpn_w_packed: (9*Cf, Cf) bf16;
    # head_w_t: (5A padded to 8-mult, Cf) bf16, coordinate-major rows.
    N, H, W, Cf = feat.shape
    A = num_anchors
    n_head = head_w_t.shape[0]
    assert H % th == 0 and ((th * W) % 128 == 0 or th == H)
    kern = functools.partial(_rpn_fused_kernel, num_anchors=A,
                             anchor_ws=anchor_ws, anchor_hs=anchor_hs,
                             stride=stride)
    return pl.pallas_call(
        kern,
        out_shape=(
            jax.ShapeDtypeStruct((N, A, H * W), jnp.float32),
            jax.ShapeDtypeStruct((N, 4, A, H * W), jnp.float32),
        ),
        grid_spec=pltpu.PrefetchScalarGridSpec(
            num_scalar_prefetch=1,
            grid=(N, H // th),
            in_specs=[
                # TODO(synk): for feature maps too large to stay resident in
                #             VMEM, replace this block with a halo'd row-slab
                #             manual DMA (pl.ANY + make_async_copy).
                pl.BlockSpec((1, H, W, Cf), lambda n, m, s: (n, 0, 0, 0)),
                pl.BlockSpec(tuple(rpn_w_packed.shape), lambda n, m, s: (0, 0)),
                pl.BlockSpec((1, Cf), lambda n, m, s: (0, 0)),
                pl.BlockSpec((n_head, Cf), lambda n, m, s: (0, 0)),
                pl.BlockSpec((n_head, 1), lambda n, m, s: (0, 0)),
            ],
            out_specs=[
                pl.BlockSpec((1, A, th * W), lambda n, m, s: (n, 0, m)),
                pl.BlockSpec((1, 4, A, th * W), lambda n, m, s: (n, 0, 0, m)),
            ],
            scratch_shapes=[pltpu.VMEM((th + 2, W + 2, Cf), feat.dtype)],
        ),
        compiler_params=pltpu.CompilerParams(
            dimension_semantics=("parallel", "parallel"),
            vmem_limit_bytes=_vmem_limit_bytes(),
        ),
    )(image_sizes, feat, rpn_w_packed, rpn_b, head_w_t, head_b_t)


# ----------------------------------------------------------------------------
# JAX glue / parameters
# ----------------------------------------------------------------------------
def _anchor_dims(sizes, aspect_ratios):
    # DefaultAnchorGenerator cell anchors: widths/heights only (centers are
    # the grid shifts), same (size outer, ratio inner) ordering as detectron2.
    ws, hs = [], []
    for s in sizes:
        area = float(s) * float(s)
        for ar in aspect_ratios:
            w = math.sqrt(area / ar)
            h = ar * w
            ws.append(w)
            hs.append(h)
    return tuple(ws), tuple(hs)


def conv_w_to_taps(w_oihw):
    # torch (Cout, Cin, 3, 3) -> (9, Cin, Cout) per-tap matmul weights.
    cout, cin = w_oihw.shape[0], w_oihw.shape[1]
    return jnp.transpose(w_oihw, (2, 3, 1, 0)).reshape(9, cin, cout)


def init_params(key, c_in=3, c_feat=128, num_anchors=3, c_in_pad=8):
    ks = jax.random.split(key, 4)
    pixel_mean = jnp.asarray([103.530, 116.280, 123.675], jnp.float32)
    pixel_std = jnp.asarray([1.0, 1.0, 1.0], jnp.float32)

    backbone_w = 0.01 * jax.random.normal(ks[0], (c_feat, c_in, 3, 3), jnp.float32)
    backbone_b = jnp.zeros((c_feat,), jnp.float32)
    # Fold (x - mean) / std into the conv: w' = w/std, b' = b - sum(w' * mean).
    w_fold = backbone_w / pixel_std.reshape(1, c_in, 1, 1)
    b_fold = backbone_b - jnp.sum(w_fold * pixel_mean.reshape(1, c_in, 1, 1),
                                  axis=(1, 2, 3))
    w_taps = conv_w_to_taps(w_fold)                                    # (9, 3, Cf)
    w_taps = jnp.pad(w_taps, ((0, 0), (0, c_in_pad - c_in), (0, 0)))   # K: 3 -> 8
    backbone_w_packed = w_taps.reshape(9 * c_in_pad, c_feat)           # (72, Cf)

    rpn_conv_w = 0.01 * jax.random.normal(ks[1], (c_feat, c_feat, 3, 3), jnp.float32)
    rpn_w_packed = conv_w_to_taps(rpn_conv_w).reshape(9 * c_feat, c_feat)

    # StandardRPNHead 1x1 convs, torch layouts (A, Cf, 1, 1) / (4A, Cf, 1, 1);
    # the transposed head is repacked coordinate-major
    # [obj_A | dx_A | dy_A | dw_A | dh_A] so the kernel's delta slices are
    # contiguous, and padded to a multiple of 8 rows.
    A = num_anchors
    obj_w = 0.01 * jax.random.normal(ks[2], (A, c_feat, 1, 1), jnp.float32)
    anchor_w = 0.01 * jax.random.normal(ks[3], (4 * A, c_feat, 1, 1), jnp.float32)
    deltas_cm = anchor_w[:, :, 0, 0].reshape(A, 4, c_feat)
    deltas_cm = jnp.transpose(deltas_cm, (1, 0, 2)).reshape(4 * A, c_feat)
    head_w_t = jnp.concatenate([obj_w[:, :, 0, 0], deltas_cm], axis=0)  # (5A, Cf)
    head_pad = -(-5 * A // 8) * 8
    head_w_t = jnp.pad(head_w_t, ((0, head_pad - 5 * A), (0, 0)))

    anchor_ws, anchor_hs = _anchor_dims((8.0,), (0.5, 1.0, 2.0))
    assert len(anchor_ws) == A

    return {
        "pixel_mean": pixel_mean,
        "backbone_w": backbone_w_packed.astype(jnp.bfloat16),           # (72, Cf)
        "backbone_b": b_fold.reshape(1, c_feat).astype(jnp.float32),
        "rpn_conv_w": rpn_w_packed.astype(jnp.bfloat16),                # (1152, Cf)
        "rpn_conv_b": jnp.zeros((1, c_feat), jnp.float32),
        "head_w_t": head_w_t.astype(jnp.bfloat16),                      # (16, Cf)
        "head_b_t": jnp.zeros((head_pad, 1), jnp.float32),
        "num_anchors": A,
        "anchor_ws": anchor_ws,
        "anchor_hs": anchor_hs,
        "anchor_stride": 1.0,
    }


def proposal_network_forward(images_nchw, image_sizes, params, post_topk=100):
    images = jnp.transpose(images_nchw, (0, 2, 3, 1)).astype(jnp.float32)  # NHWC
    N, H, W, C = images.shape
    c_in_pad = params["backbone_w"].shape[0] // 9
    A = params["num_anchors"]
    th = _pick_row_tile(H, W)

    # Backbone conv input: channels zero-padded to c_in_pad, spatial halo
    # filled with pixel_mean so the folded normalization stays exact at the
    # conv's pad=1 boundary (normalized(mean) == 0).
    mean_pad = jnp.pad(params["pixel_mean"], (0, c_in_pad - C)).reshape(1, 1, 1, c_in_pad)
    x_pad = jnp.broadcast_to(mean_pad, (N, H + 2, W + 2, c_in_pad))
    x_chan = jnp.pad(images, ((0, 0), (0, 0), (0, 0), (0, c_in_pad - C)))
    x_pad = x_pad.at[:, 1:H + 1, 1:W + 1, :].set(x_chan).astype(jnp.bfloat16)

    # 1+2) backbone 3x3 conv + ReLU with normalization folded in (bf16 MXU).
    feat = backbone_conv(x_pad, params["backbone_w"], params["backbone_b"],
                         out_dtype=jnp.bfloat16, th=th)                # (N,H,W,Cf)

    # 3+4+5) shared RPN conv + fused heads + vectorized box decode, one kernel
    # (consumes the UNPADDED feature map; halo built in VMEM scratch).
    logits, boxes = rpn_fused(image_sizes, feat,
                              params["rpn_conv_w"], params["rpn_conv_b"],
                              params["head_w_t"], params["head_b_t"],
                              A, params["anchor_ws"], params["anchor_hs"],
                              params["anchor_stride"], th)

    # Kernel outputs are lane-dense (N, A, HW) / (N, 4, A, HW); restore
    # detectron2's (h, w, a) flattening order before top_k so index ordering
    # (and tie-breaking) matches the reference.
    HWA = H * W * A
    logits_flat = jnp.transpose(logits, (0, 2, 1)).reshape(N, HWA)
    boxes_flat = jnp.transpose(boxes, (0, 3, 2, 1)).reshape(N, HWA, 4)

    # 6) proposal selection + detector_postprocess
    # TODO(synk): batched NMS / find_top_rpn_proposals is data-dependent
    #             suppression with no clean Pallas equivalent; only score
    #             top-k selection is performed here.
    k = min(post_topk, HWA)
    top_logits, top_idx = jax.lax.top_k(logits_flat, k)
    top_boxes = jnp.take_along_axis(boxes_flat, top_idx[..., None], axis=1)

    # detector_postprocess: output size defaults to each image's own size,
    # so the per-image rescale factor is 1 (kept for structural fidelity).
    sizes_f = image_sizes.astype(jnp.float32)
    out_sizes_f = sizes_f
    scale = jnp.stack([out_sizes_f[:, 1] / sizes_f[:, 1],
                       out_sizes_f[:, 0] / sizes_f[:, 0],
                       out_sizes_f[:, 1] / sizes_f[:, 1],
                       out_sizes_f[:, 0] / sizes_f[:, 0]], axis=1)
    top_boxes = top_boxes * scale[:, None, :]

    return [
        {"proposals": {"proposal_boxes": top_boxes[i],
                       "objectness_logits": top_logits[i]}}
        for i in range(N)
    ]


if __name__ == "__main__":
    key = jax.random.PRNGKey(0)
    k_img, k_par = jax.random.split(key)
    # synthetic batched_inputs: 2 images, 3 channels, 16x16 (NCHW like PyTorch)
    images = jax.random.uniform(k_img, (2, 3, 16, 16), jnp.float32) * 255.0
    image_sizes = jnp.asarray([[16, 16], [16, 16]], jnp.int32)  # ImageList.image_sizes
    params = init_params(k_par)

    results = proposal_network_forward(images, image_sizes, params, post_topk=100)
    for r in results:
        jax.block_until_ready(r["proposals"]["proposal_boxes"])
        jax.block_until_ready(r["proposals"]["objectness_logits"])

    b = results[0]["proposals"]["proposal_boxes"]
    l = results[0]["proposals"]["objectness_logits"]
    assert b.shape == (100, 4) and l.shape == (100,)
    print("KERNEL_OK")
</pallas_src>

<mosaic_0001>
module attributes {stable_mosaic.version = 11 : i64} {
  func.func @_backbone_conv_kernel(%arg0: i32, %arg1: i32, %arg2: memref<1x18x18x8xbf16, #tpu.memory_space<vmem>>, %arg3: memref<72x128xbf16, #tpu.memory_space<vmem>>, %arg4: memref<1x128xf32, #tpu.memory_space<vmem>>, %arg5: memref<1x16x16x128xbf16, #tpu.memory_space<vmem>>) attributes {dimension_semantics = [#tpu.dimension_semantics<parallel>, #tpu.dimension_semantics<parallel>], iteration_bounds = array<i64: 2, 1>, scalar_prefetch = 0 : i64, scratch_operands = 0 : i64, tpu.core_type = #tpu.core_type<tc>, window_params = [{transform_indices = @transform_0, window_bounds = array<i64: 1, 18, 18, 8>}, {pipeline_mode = #tpu.pipeline_mode<synchronous>, transform_indices = @transform_1, window_bounds = array<i64: 72, 128>}, {pipeline_mode = #tpu.pipeline_mode<synchronous>, transform_indices = @transform_2, window_bounds = array<i64: 1, 128>}, {transform_indices = @transform_3, window_bounds = array<i64: 1, 16, 16, 128>}]} {
    %c16_i32 = arith.constant 16 : i32
    %0 = arith.muli %arg1, %c16_i32 : i32
    %1 = tpu.assume_multiple %0, 16 : i32
    %c0_i32 = arith.constant 0 : i32
    %2 = arith.addi %1, %c0_i32 : i32
    %c0 = arith.constant 0 : index
    %3 = arith.index_cast %2 : i32 to index
    %c0_0 = arith.constant 0 : index
    %c0_1 = arith.constant 0 : index
    %4 = vector.load %arg2[%c0, %3, %c0_0, %c0_1] : memref<1x18x18x8xbf16, #tpu.memory_space<vmem>>, vector<1x16x16x8xbf16>
    %5 = vector.shape_cast %4 : vector<1x16x16x8xbf16> to vector<16x16x8xbf16>
    %6 = vector.shape_cast %5 : vector<16x16x8xbf16> to vector<256x8xbf16>
    %c0_i32_2 = arith.constant 0 : i32
    %7 = arith.addi %1, %c0_i32_2 : i32
    %c0_3 = arith.constant 0 : index
    %8 = arith.index_cast %7 : i32 to index
    %c1 = arith.constant 1 : index
    %c0_4 = arith.constant 0 : index
    %9 = vector.load %arg2[%c0_3, %8, %c1, %c0_4] : memref<1x18x18x8xbf16, #tpu.memory_space<vmem>>, vector<1x16x16x8xbf16>
    %10 = vector.shape_cast %9 : vector<1x16x16x8xbf16> to vector<16x16x8xbf16>
    %11 = vector.shape_cast %10 : vector<16x16x8xbf16> to vector<256x8xbf16>
    %c0_i32_5 = arith.constant 0 : i32
    %12 = arith.addi %1, %c0_i32_5 : i32
    %c0_6 = arith.constant 0 : index
    %13 = arith.index_cast %12 : i32 to index
    %c2 = arith.constant 2 : index
    %c0_7 = arith.constant 0 : index
    %14 = vector.load %arg2[%c0_6, %13, %c2, %c0_7] : memref<1x18x18x8xbf16, #tpu.memory_space<vmem>>, vector<1x16x16x8xbf16>
    %15 = vector.shape_cast %14 : vector<1x16x16x8xbf16> to vector<16x16x8xbf16>
    %16 = vector.shape_cast %15 : vector<16x16x8xbf16> to vector<256x8xbf16>
    %c1_i32 = arith.constant 1 : i32
    %17 = arith.addi %1, %c1_i32 : i32
    %c0_8 = arith.constant 0 : index
    %18 = arith.index_cast %17 : i32 to index
    %c0_9 = arith.constant 0 : index
    %c0_10 = arith.constant 0 : index
    %19 = vector.load %arg2[%c0_8, %18, %c0_9, %c0_10] : memref<1x18x18x8xbf16, #tpu.memory_space<vmem>>, vector<1x16x16x8xbf16>
    %20 = vector.shape_cast %19 : vector<1x16x16x8xbf16> to vector<16x16x8xbf16>
    %21 = vector.shape_cast %20 : vector<16x16x8xbf16> to vector<256x8xbf16>
    %c1_i32_11 = arith.constant 1 : i32
    %22 = arith.addi %1, %c1_i32_11 : i32
    %c0_12 = arith.constant 0 : index
    %23 = arith.index_cast %22 : i32 to index
    %c1_13 = arith.constant 1 : index
    %c0_14 = arith.constant 0 : index
    %24 = vector.load %arg2[%c0_12, %23, %c1_13, %c0_14] : memref<1x18x18x8xbf16, #tpu.memory_space<vmem>>, vector<1x16x16x8xbf16>
    %25 = vector.shape_cast %24 : vector<1x16x16x8xbf16> to vector<16x16x8xbf16>
    %26 = vector.shape_cast %25 : vector<16x16x8xbf16> to vector<256x8xbf16>
    %c1_i32_15 = arith.constant 1 : i32
    %27 = arith.addi %1, %c1_i32_15 : i32
    %c0_16 = arith.constant 0 : index
    %28 = arith.index_cast %27 : i32 to index
    %c2_17 = arith.constant 2 : index
    %c0_18 = arith.constant 0 : index
    %29 = vector.load %arg2[%c0_16, %28, %c2_17, %c0_18] : memref<1x18x18x8xbf16, #tpu.memory_space<vmem>>, vector<1x16x16x8xbf16>
    %30 = vector.shape_cast %29 : vector<1x16x16x8xbf16> to vector<16x16x8xbf16>
    %31 = vector.shape_cast %30 : vector<16x16x8xbf16> to vector<256x8xbf16>
    %c2_i32 = arith.constant 2 : i32
    %32 = arith.addi %1, %c2_i32 : i32
    %c0_19 = arith.constant 0 : index
    %33 = arith.index_cast %32 : i32 to index
    %c0_20 = arith.constant 0 : index
    %c0_21 = arith.constant 0 : index
    %34 = vector.load %arg2[%c0_19, %33, %c0_20, %c0_21] : memref<1x18x18x8xbf16, #tpu.memory_space<vmem>>, vector<1x16x16x8xbf16>
    %35 = vector.shape_cast %34 : vector<1x16x16x8xbf16> to vector<16x16x8xbf16>
    %36 = vector.shape_cast %35 : vector<16x16x8xbf16> to vector<256x8xbf16>
    %c2_i32_22 = arith.constant 2 : i32
    %37 = arith.addi %1, %c2_i32_22 : i32
    %c0_23 = arith.constant 0 : index
    %38 = arith.index_cast %37 : i32 to index
    %c1_24 = arith.constant 1 : index
    %c0_25 = arith.constant 0 : index
    %39 = vector.load %arg2[%c0_23, %38, %c1_24, %c0_25] : memref<1x18x18x8xbf16, #tpu.memory_space<vmem>>, vector<1x16x16x8xbf16>
    %40 = vector.shape_cast %39 : vector<1x16x16x8xbf16> to vector<16x16x8xbf16>
    %41 = vector.shape_cast %40 : vector<16x16x8xbf16> to vector<256x8xbf16>
    %c2_i32_26 = arith.constant 2 : i32
    %42 = arith.addi %1, %c2_i32_26 : i32
    %c0_27 = arith.constant 0 : index
    %43 = arith.index_cast %42 : i32 to index
    %c2_28 = arith.constant 2 : index
    %c0_29 = arith.constant 0 : index
    %44 = vector.load %arg2[%c0_27, %43, %c2_28, %c0_29] : memref<1x18x18x8xbf16, #tpu.memory_space<vmem>>, vector<1x16x16x8xbf16>
    %45 = vector.shape_cast %44 : vector<1x16x16x8xbf16> to vector<16x16x8xbf16>
    %46 = vector.shape_cast %45 : vector<16x16x8xbf16> to vector<256x8xbf16>
    %47 = tpu.concatenate %6, %11, %16, %21, %26, %31, %36, %41, %46 in 1 : vector<256x8xbf16>, vector<256x8xbf16>, vector<256x8xbf16>, vector<256x8xbf16>, vector<256x8xbf16>, vector<256x8xbf16>, vector<256x8xbf16>, vector<256x8xbf16>, vector<256x8xbf16> -> vector<256x72xbf16>
    %c0_30 = arith.constant 0 : index
    %c0_31 = arith.constant 0 : index
    %48 = vector.load %arg3[%c0_30, %c0_31] : memref<72x128xbf16, #tpu.memory_space<vmem>>, vector<72x128xbf16>
    %cst = arith.constant dense<0.000000e+00> : vector<256x128xf32>
    %49 = tpu.matmul %47, %48, %cst {dimension_numbers = #tpu.dot_dimension_numbers<[1], [0], [0], [1], [0, 0, 1, 1], [], []>} : vector<256x72xbf16>, vector<72x128xbf16>, vector<256x128xf32> -> vector<256x128xf32>
    %c0_32 = arith.constant 0 : index
    %c0_33 = arith.constant 0 : index
    %50 = vector.load %arg4[%c0_32, %c0_33] : memref<1x128xf32, #tpu.memory_space<vmem>>, vector<1x128xf32>
    %51 = vector.broadcast %50 : vector<1x128xf32> to vector<256x128xf32>
    %52 = arith.addf %49, %51 : vector<256x128xf32>
    %cst_34 = arith.constant 0.000000e+00 : f32
    %53 = vector.broadcast %cst_34 : f32 to vector<256x128xf32>
    %54 = arith.maximumf %52, %53 : vector<256x128xf32>
    %55 = vector.shape_cast %54 : vector<256x128xf32> to vector<16x16x128xf32>
    %56 = arith.truncf %55 : vector<16x16x128xf32> to vector<16x16x128xbf16>
    %c0_35 = arith.constant 0 : index
    %c0_36 = arith.constant 0 : index
    %c0_37 = arith.constant 0 : index
    %c0_38 = arith.constant 0 : index
    %57 = vector.load %arg5[%c0_35, %c0_36, %c0_37, %c0_38] : memref<1x16x16x128xbf16, #tpu.memory_space<vmem>>, vector<1x16x16x128xbf16>
    %58 = vector.shape_cast %57 : vector<1x16x16x128xbf16> to vector<16x16x128xbf16>
    %59 = vector.shape_cast %56 : vector<16x16x128xbf16> to vector<1x16x16x128xbf16>
    tpu.vector_store %arg5[%c0_35, %c0_36, %c0_37, %c0_38], %59 {strides = array<i32>} : memref<1x16x16x128xbf16, #tpu.memory_space<vmem>>, vector<1x16x16x128xbf16>,
    return
  }
  func.func @transform_0(%arg0: i32, %arg1: i32) -> (i32, i32, i32, i32) {
    %c0_i32 = arith.constant 0 : i32
    %c0_i32_0 = arith.constant 0 : i32
    %c0_i32_1 = arith.constant 0 : i32
    %c0_i32_2 = arith.constant 0 : i32
    return %arg0, %c0_i32, %c0_i32_0, %c0_i32_1 : i32, i32, i32, i32
  }
  func.func @transform_1(%arg0: i32, %arg1: i32) -> (i32, i32) {
    %c0_i32 = arith.constant 0 : i32
    %c0_i32_0 = arith.constant 0 : i32
    %c0_i32_1 = arith.constant 0 : i32
    return %c0_i32, %c0_i32_0 : i32, i32
  }
  func.func @transform_2(%arg0: i32, %arg1: i32) -> (i32, i32) {
    %c0_i32 = arith.constant 0 : i32
    %c0_i32_0 = arith.constant 0 : i32
    %c0_i32_1 = arith.constant 0 : i32
    return %c0_i32, %c0_i32_0 : i32, i32
  }
  func.func @transform_3(%arg0: i32, %arg1: i32) -> (i32, i32, i32, i32) {
    %c0_i32 = arith.constant 0 : i32
    %c0_i32_0 = arith.constant 0 : i32
    %c0_i32_1 = arith.constant 0 : i32
    return %arg0, %arg1, %c0_i32, %c0_i32_0 : i32, i32, i32, i32
  }
}

</mosaic_0001>

<bundles_post_ra>
// kernel: tpu_custom_call.1
= control target key start
LH: loop header
LB: loop body
LE: loop exit
PB: predicated region body
PF: predicated region fallthrough
CT: control target
= control target key end

     0   :  { %8 = vsyncpa [#allocation3], 0  ;;  %s6458_s0 = inlined_call_operand.vmem [shape: bf16[2,18,18,8], index: 0, kind: input, shape index: {}]   ;;  %s6459_s1 = inlined_call_operand.vmem [shape: bf16[72,128], index: 1, kind: input, shape index: {}]   ;;  %s6460_s2 = inlined_call_operand.vmem [shape: f32[1,128], index: 2, kind: input, shape index: {}]   ;;  %s6461_s3 = inlined_call_operand.hbm [shape: bf16[2,16,16,128], index: 3, kind: output, shape index: {}]  }
   0x1   :  { %10 = vsyncpa [#allocation3 + $0x1], 0  ;;  %s4423_s12 = smov 0   ;;  %s4425_s13 = smov 0  }
   0x2   :  { %s4427_s14 = smov 0   ;;  %s4429_s15 = smov 0  }
   0x3   :  { %s4431_s16 = smov 0   ;;  %s4433_s17 = smov 0  }
   0x4 LB: > { %s3576_s18 = sadd.s32 4294967295, %s4391_s17   ;;  %s3577_s19 = sadd.s32 4294967294, %s4391_s17   ;;  %s4391_s17 = sphi %s4433_s17, %s16_s17   ;;  %s4387_s16 = sphi %s4431_s16, %s6472_s16   ;;  %s4383_s15 = sphi %s4429_s15, %s6471_s15   ;;  %s4379_s14 = sphi %s4427_s14, %s6470_s14   ;;  %s4375_s13 = sphi %s4425_s13, %s6469_s13   ;;  %s4371_s12 = sphi %s4423_s12, %s6468_s12  }
   0x5   : > { %s28_s20 = sadd.s32 1, %s4387_s16  ;;  %s105_s21 = sadd.s32 1, %s4379_s14 }
   0x6   : > { %p30_p0 = scmp.ge.s32.totalorder %s28_s20, 2  ;;  %p115_p1 = scmp.ne.s32.totalorder %s4379_s14, %s4375_s13 }
   0x7   : > { %p116_p2 = scmp.eq.s32.totalorder %s3576_s18, 1  ;;  %p121_p3 = scmp.ne.s32.totalorder %s4375_s13, %s4371_s12 }
   0x8   : > { %s6474_s20 = smov (%p30_p0, %s28_s20), 0  ;;  %p122_p5 = scmp.eq.s32.totalorder %s3577_s19, 1 }
   0x9   : > { %p4463_p4 = por %p116_p2, %p115_p1  ;;  %s100_s23 = ssub.s32 %s4387_s16, %s6474_s20 }
   0xa   : > { %p3580_p6 = scmp.ge.s32.totalorder %s4391_s17, 1  ;;  %p103_p7 = scmp.eq.s32.totalorder %s100_s23, 0 }
   0xb   : > { %p4470_p8 = por %p122_p5, %p121_p3  ;;  %p154_p9 = scmp.lt.s32.totalorder %s4391_s17, 3 }
   0xc   : > { %s4476_s25 = scalar_select %p103_p7, %s4379_s14, %s105_s21  }
   0xd   : > { %p155_p10 = pnand %p3580_p6, %p154_p9 }
   0xe   : > { %p178_p11 = scmp.lt.s32.totalorder (!%p155_p10), %s4383_s15, 1  ;;  %s4393_s4 = smov (!%p155_p10), 24  }
   0xf   : > { %158 = sbr.rel (%p155_p10) target bundleno = 682 (0x2aa), region = 32  ;;  %s4394_s5 = smov (!%p155_p10), 16  }
  0x10   : > { %s4395_s6 = smov (!%p155_p10), 8   ;;  %s4396_s7 = smov (!%p155_p10), 32  }
  0x11   : > { %s4397_s8 = smov (!%p155_p10), 40   ;;  %s4398_s9 = smov (!%p155_p10), 48  }
  0x12   : > { %s4399_s10 = smov (!%p155_p10), 56   ;;  %s4400_s11 = smov (!%p155_p10), 64  }
  0x14   : > { %s179_s26 = scalar_select %p178_p11, %s4383_s15, 1  ;;  %vm688_vm0 = vcmask 1042432   ;;  %vm689_vm1 = vcmask 1046532   ;;  %vm237_vm3 = vsmask.f32 3328  ;;  %vm2763_vm6 = vcmask 64512  }
  0x15   : > { %vm4514_vm2 = vmor %vm688_vm0, %vm689_vm1  ;;  %vm238_vm4 = vsmask.f32 7440  ;;  %vm2812_vm7 = vcmask 130048   ;;  %vm2845_vm8 = vcmask 195584   ;;  %vm2878_vm9 = vcmask 261120  }
  0x16   : > { %s4165_s27 = smul.u32 216, %s179_s26  ;;  %vm4572_vm5 = vmor %vm237_vm3, %vm238_vm4  ;;  %vm2911_vm10 = vcmask 326656   ;;  %vm2944_vm11 = vcmask 392192   ;;  %vm3119_vm12 = vcmask 1043456   ;;  %vm2977_vm13 = vcmask 457728  }
  0x17   : > { %vm3010_vm14 = vcmask 523264   ;;  %vm3086_vm15 = vcmask 588800  }
  0x18   : > { %s4483_s30 = scalar_lea.vmem %s6458_s0, %s4165_s27  ;;  %s4401_s27 = smov [#allocation2]  }
  0x19   : > { %v3615_v0 = vld [vmem:[%s4483_s30 + $0x6c] sm:$0xf]  ;;  %v4487_v1 = vld [vmem:[%s4483_s30 + $0x70] sm:$0xf]  ;;  %v4500_v12 = vld [vmem:[%s4483_s30 + $0x64] sm:$0xf] }
  0x1a   : > { %v3599_v2 = vld [vmem:[%s4483_s30 + $0xc] sm:$0xf]  ;;  %v1057_v3 = vshll.u32 %v4487_v1, 16  ;;  %v1061_v4 = vshrl.u32 %v4487_v1, 16  ;;  %v3815_v5 = vcombine.low %v3615_v0, %v4487_v1  ;;  %v1048_v6 = vshrl.u32 %v3615_v0, 16  ;;  %s4319_s28 = sshll.u32 %s4401_s27, 4  ;;  %s4320_s28 = int_to_ptr.vmem [resolvable:$false] %s4319_s28 }
  0x1b   : > { %v4494_v7 = vld [vmem:[%s4483_s30 + $0x10] sm:$0xf]  ;;  %v1051_v8 = vshll.u32 %v3615_v0, 16  ;;  %v856_v15 = vshrl.u32 %v3599_v2, 16  ;;  %v859_v16 = vshll.u32 %v3599_v2, 16  ;;  %v749_v22 = vrot.slane %v4500_v12, 5 }
  0x1c   : > { %v865_v9 = vshll.u32 %v4494_v7, 16  ;;  %v869_v10 = vshrl.u32 %v4494_v7, 16  ;;  %v3807_v11 = vcombine.low %v3599_v2, %v4494_v7  ;;  %v4502_v13 = vrot.slane %v1061_v4, 4  ;;  %2331 = vrot.lane.b32.xlu1 %v3815_v5, %s4393_s4  ;;  %v4506_v17 = vld [vmem:[%s4483_s30 + $0x68] sm:$0x1]  ;;  %s4321_s29 = scalar_lea.vmem %s4320_s28, 4096 }
  0x1d   : > { %v1050_v14 = vrot.slane %v1048_v6, 4  ;;  %v1053_v18 = vrot.slane %v1051_v8, 5  ;;  %v632_v20 = vld [vmem:[%s4483_s30 + $0x60] sm:$0xe]  ;;  %v752_v23 = vrot.slane %v4506_v17, 5  ;;  %v858_v24 = vrot.slane %v856_v15, 4 }
  0x1e   : > { %v4508_v19 = vrot.slane %v869_v10, 4  ;;  %2315 = vrot.lane.b32.xlu0 %v3807_v11, %s4393_s4  ;;  %v861_v25 = vrot.slane %v859_v16, 5  ;;  %v3591_v26 = vrot.slane %v632_v20, 9  ;;  %v4521_v27 = vld [vmem:[%s4483_s30 + $0x4] sm:$0xf]  ;;  %v442_v28 = vshll.u32 %v4500_v12, 16 }
  0x1f   : > { %v1054_v29 = vor.u32 %v1053_v18, %v1050_v14  ;;  %v751_v30 = vrot.slane %v749_v22, 4  ;;  %v4525_v31 = vld [vmem:[%s4483_s30 + $0x8] sm:$0x1]  ;;  %v624_v32 = vld [vmem:[%s4483_s30] sm:$0xe]  ;;  %v693_v33 = vrot.slane %v4521_v27, 5 }
  0x20   : > { %v862_v34 = vor.u32 %v861_v25, %v858_v24  ;;  %v750_v35 = vsel %vm4514_vm2, %v3591_v26, %v749_v22  ;;  %v3583_v36 = vrot.slane %v624_v32, 9  ;;  %v696_v37 = vrot.slane %v4525_v31, 5  ;;  %v4533_v38 = vld [vmem:[%s4483_s30 + $0x70] sm:$0xf]  ;;  %v4536_v39 = vld [vmem:[%s4483_s30 + $0x74] sm:$0x1] }
  0x21   : > { %v4538_v40 = vrot.slane %v1054_v29, 4  ;;  %v753_v41 = vsel %vm4514_vm2, %v751_v30, %v752_v23  ;;  %v695_v42 = vrot.slane %v693_v33, 4  ;;  %v633_v43 = vld [vmem:[%s4483_s30 + $0x6c] sm:$0xe]  ;;  %v756_v44 = vrot.slane %v4533_v38, 5 }
  0x22   : > { %v4544_v45 = vrot.slane %v862_v34, 4  ;;  %v3799_v46 = vcombine.low %v750_v35, %v753_v41  ;;  %v694_v47 = vsel %vm4514_vm2, %v3583_v36, %v693_v33  ;;  %v3592_v48 = vrot.slane %v633_v43, 9  ;;  %v192_v49 = vld [vmem:[%s4483_s30 + $0x10] sm:$0xf]  ;;  %v222_v50 = vld [vmem:[%s4483_s30 + $0x14] sm:$0x1] }
  0x23   : > { %v697_v51 = vsel %vm4514_vm2, %v695_v42, %v696_v37  ;;  %v758_v52 = vrot.slane %v756_v44, 4  ;;  %v759_v53 = vrot.slane %v4536_v39, 5  ;;  %v625_v54 = vld [vmem:[%s4483_s30 + $0xc] sm:$0xe]  ;;  %v700_v55 = vrot.slane %v192_v49, 5 }
  0x24   : > { %2235 = vrot.lane.b32.xlu1 %v3799_v46, %s4394_s5  ;;  %v3791_v56 = vcombine.low %v694_v47, %v697_v51  ;;  %v757_v57 = vsel %vm4514_vm2, %v3592_v48, %v756_v44  ;;  %v3584_v58 = vrot.slane %v625_v54, 9  ;;  %v703_v59 = vrot.slane %v222_v50, 5  ;;  %v191_v60 = vld [vmem:[%s4483_s30 + $0xc] sm:$0xf]  ;;  %v189_v2 = vld [vmem:[%s4483_s30] sm:$0xf] }
  0x25   : > { %v760_v61 = vsel %vm4514_vm2, %v758_v52, %v759_v53  ;;  %v702_v62 = vrot.slane %v700_v55, 4  ;;  %v265_v63 = vshrl.u32 %v191_v60, 16  ;;  %v268_v0 = vshll.u32 %v191_v60, 16  ;;  %v207_v23 = vld [vmem:[%s4483_s30 + $0x6c] sm:$0xf] }
  0x26   : > { %2219 = vrot.lane.b32.xlu0 %v3791_v56, %s4394_s5  ;;  %v3800_v4 = vcombine.low %v757_v57, %v760_v61  ;;  %v701_v5 = vsel %vm4514_vm2, %v3584_v58, %v700_v55  ;;  %v274_v6 = vshll.u32 %v192_v49, 16  ;;  %v278_v8 = vshrl.u32 %v192_v49, 16  ;;  %v205_v52 = vld [vmem:[%s4483_s30 + $0x60] sm:$0xf]  ;;  %v4301_v21 = vld [vmem:[%s4483_s30 + $0x30] sm:$0xf] }
  0x27   : > { %v704_v10 = vsel %vm4514_vm2, %v702_v62, %v703_v59  ;;  %v267_v11 = vrot.slane %v265_v63, 4  ;;  %v270_v14 = vrot.slane %v268_v0, 5  ;;  %v284_v15 = vshll.u32 %v222_v50, 16 }
  0x28   : > { %2237 = vrot.lane.b32.xlu1 %v3800_v4, %s4394_s5  ;;  %v3792_v16 = vcombine.low %v701_v5, %v704_v10  ;;  %v276_v18 = vrot.slane %v274_v6, 5  ;;  %v280_v20 = vrot.slane %v278_v8, 4  ;;  %v241_v22 = vshrl.u32 %v189_v2, 16  ;;  %v3617_v4 = vld [vmem:[%s4483_s30 + $0x78] sm:$0xf] }
  0x29   : > { %v271_v24 = vor.u32 %v270_v14, %v267_v11  ;;  %v286_v25 = vrot.slane %v284_v15, 5  ;;  %v244_v26 = vshll.u32 %v189_v2, 16  ;;  %v250_v29 = vshll.u32 %v4521_v27, 16  ;;  %v4595_v10 = vld [vmem:[%s4483_s30 + $0x7c] sm:$0xf] }
  0x2a   : > { %2221 = vrot.lane.b32.xlu0 %v3792_v16, %s4394_s5  ;;  %v281_v32 = vor.u32 %v280_v20, %v276_v18  ;;  %v243_v33 = vrot.slane %v241_v22, 4  ;;  %v254_v34 = vshrl.u32 %v4521_v27, 16  ;;  %v260_v35 = vshll.u32 %v4525_v31, 16 }
  0x2b   : > { %v272_v36 = vrot.slane %v271_v24, 4  ;;  %v246_v37 = vrot.slane %v244_v26, 5  ;;  %v252_v41 = vrot.slane %v250_v29, 5  ;;  %v457_v42 = vshrl.u32 %v207_v23, 16 }
  0x2c   : > { %v282_v43 = vrot.slane %v281_v32, 4  ;;  %v256_v44 = vrot.slane %v254_v34, 4  ;;  %v262_v46 = vrot.slane %v260_v35, 5  ;;  %v460_v47 = vshll.u32 %v207_v23, 16  ;;  %v4602_v23 = vld [vmem:[%s4483_s30 + $0x18] sm:$0xf] }
  0x2d   : > { %v277_v48 = vsel %vm4572_vm5, %v272_v36, %v276_v18  ;;  %v247_v49 = vor.u32 %v246_v37, %v243_v33  ;;  %v459_v50 = vrot.slane %v457_v42, 4  ;;  %v466_v51 = vshll.u32 %v4533_v38, 16  ;;  %v4613_v35 = vld [vmem:[%s4483_s30 + $0x74] sm:$0x1] }
  0x2e   : > { %v287_v27 = vsel %vm4572_vm5, %v282_v43, %v286_v25  ;;  %v257_v31 = vor.u32 %v256_v44, %v252_v41  ;;  %v462_v53 = vrot.slane %v460_v47, 5  ;;  %v470_v54 = vshrl.u32 %v4533_v38, 16 }
  0x2f   : > { %v3776_v55 = vcombine.low %v277_v48, %v287_v27  ;;  %v248_v56 = vrot.slane %v247_v49, 4  ;;  %v468_v57 = vrot.slane %v466_v51, 5  ;;  %v476_v58 = vshll.u32 %v4536_v39, 16  ;;  %v4623_v48 = vld [vmem:[%s4483_s30 + $0x14] sm:$0x1] }
  0x30   : > { %v258_v59 = vrot.slane %v257_v31, 4  ;;  %v463_v60 = vor.u32 %v462_v53, %v459_v50  ;;  %v472_v61 = vrot.slane %v470_v54, 4  ;;  %v433_v62 = vshrl.u32 %v205_v52, 16 }
  0x31   : > { %2141 = vrot.lane.b32.xlu1 %v3776_v55, %s4395_s6  ;;  %v253_v63 = vsel %vm4572_vm5, %v248_v56, %v252_v41  ;;  %v478_v0 = vrot.slane %v476_v58, 5  ;;  %v436_v2 = vshll.u32 %v205_v52, 16  ;;  %v444_v38 = vrot.slane %v442_v28, 5 }
  0x32   : > { %v263_v39 = vsel %vm4572_vm5, %v258_v59, %v262_v46  ;;  %v464_v5 = vrot.slane %v463_v60, 4  ;;  %v473_v6 = vor.u32 %v472_v61, %v468_v57  ;;  %v435_v8 = vrot.slane %v433_v62, 4 }
  0x33   : > { %v3775_v11 = vcombine.low %v253_v63, %v263_v39  ;;  %v438_v14 = vrot.slane %v436_v2, 5  ;;  %v446_v15 = vshrl.u32 %v4500_v12, 16  ;;  %v452_v16 = vshll.u32 %v4506_v17, 16  ;;  %v4607_v12 = vld [vmem:[%s4483_s30 + $0x1c] sm:$0xf] }
  0x34   : > { %v469_v28 = vsel %vm4572_vm5, %v464_v5, %v468_v57  ;;  %v474_v18 = vrot.slane %v473_v6, 4  ;;  %v1072_v20 = vshrl.u32 %v3617_v4, 16  ;;  %v1075_v22 = vshll.u32 %v3617_v4, 16  ;;  %v4639_v57 = vld [vmem:[%s4483_s30 + $0x80] sm:$0x1] }
  0x35   : > { %2139 = vrot.lane.b32.xlu0 %v3775_v11, %s4395_s6  ;;  %v439_v24 = vor.u32 %v438_v14, %v435_v8  ;;  %v448_v25 = vrot.slane %v446_v15, 4  ;;  %v454_v26 = vrot.slane %v452_v16, 5  ;;  %v1085_v29 = vshrl.u32 %v4595_v10, 16  ;;  %v3655_v8 = vld [vmem:[%s4483_s30 + $0x6c] sm:$0xe] }
  0x36   : > { %v479_v17 = vsel %vm4572_vm5, %v474_v18, %v478_v0  ;;  %v1074_v32 = vrot.slane %v1072_v20, 4  ;;  %v1077_v33 = vrot.slane %v1075_v22, 5  ;;  %v3816_v34 = vcombine.low %v3617_v4, %v4595_v10  ;;  %v4648_v0 = vld [vmem:[%s4483_s30 + $0x20] sm:$0x1] }
  0x37   : > { %v3784_v36 = vcombine.low %v469_v28, %v479_v17  ;;  %v440_v37 = vrot.slane %v439_v24, 4  ;;  %v449_v41 = vor.u32 %v448_v25, %v444_v38  ;;  %v880_v42 = vshrl.u32 %v4602_v23, 16  ;;  %v3647_v28 = vld [vmem:[%s4483_s30 + $0xc] sm:$0xe]  ;;  %v3656_v17 = vld [vmem:[%s4483_s30 + $0x78] sm:$0xe] }
  0x38   : > { %v883_v43 = vshll.u32 %v4602_v23, 16  ;;  %v893_v44 = vshrl.u32 %v4607_v12, 16  ;;  %v3808_v46 = vcombine.low %v4602_v23, %v4607_v12  ;;  %v1059_v47 = vrot.slane %v1057_v3, 5 }
  0x39   : > { %2157 = vrot.lane.b32.xlu1 %v3784_v36, %s4395_s6  ;;  %v445_v49 = vsel %vm4572_vm5, %v440_v37, %v444_v38  ;;  %v450_v50 = vrot.slane %v449_v41, 4  ;;  %v882_v51 = vrot.slane %v880_v42, 4  ;;  %v1067_v52 = vshll.u32 %v4613_v35, 16 }
  0x3a   : > { %v885_v27 = vrot.slane %v883_v43, 5  ;;  %v1060_v31 = vsel %vm4572_vm5, %v4538_v40, %v1059_v47  ;;  %v1064_v53 = vor.u32 %v4502_v13, %v1059_v47  ;;  %v867_v3 = vrot.slane %v865_v9, 5  ;;  %v3648_v47 = vld [vmem:[%s4483_s30 + $0x18] sm:$0xe] }
  0x3b   : > { %v455_v54 = vsel %vm4572_vm5, %v450_v50, %v454_v26  ;;  %v1069_v55 = vrot.slane %v1067_v52, 5  ;;  %v875_v56 = vshll.u32 %v4623_v48, 16  ;;  %v1078_v58 = vor.u32 %v1077_v33, %v1074_v32 }
  0x3c   : > { %v3783_v59 = vcombine.low %v445_v49, %v455_v54  ;;  %v1065_v60 = vrot.slane %v1064_v53, 4  ;;  %v868_v40 = vsel %vm4572_vm5, %v4544_v45, %v867_v3  ;;  %v872_v13 = vor.u32 %v4508_v19, %v867_v3  ;;  %v4690_v53 = vld [vmem:[%s4483_s30 + $0x7c] sm:$0xf] }
  0x3d   : > { %2333 = vrot.lane.b32.xlu1 %v3816_v34, %s4393_s4  ;;  %v877_v9 = vrot.slane %v875_v56, 5  ;;  %v1079_v61 = vrot.slane %v1078_v58, 4  ;;  %v1081_v62 = vshll.u32 %v4595_v10, 16  ;;  %v1087_v63 = vrot.slane %v1085_v29, 4  ;;  %v4697_v58 = vld [vmem:[%s4483_s30 + $0x18] sm:$0xf] }
  0x3e   : > { %2155 = vrot.lane.b32.xlu0 %v3783_v59, %s4395_s6  ;;  %v1070_v2 = vsel %vm4572_vm5, %v1065_v60, %v1069_v55  ;;  %v873_v38 = vrot.slane %v872_v13, 4  ;;  %v1091_v45 = vshll.u32 %v4639_v57, 16  ;;  %v886_v19 = vor.u32 %v885_v27, %v882_v51  ;;  %v4683_v51 = vld [vmem:[%s4483_s30 + $0x78] sm:$0xf] }
  0x3f   : > { %v3831_v4 = vcombine.low %v1060_v31, %v1070_v2  ;;  %v1083_v39 = vrot.slane %v1081_v62, 5  ;;  %v889_v5 = vshll.u32 %v4607_v12, 16  ;;  %v895_v6 = vrot.slane %v893_v44, 4 }
  0x40   : > { %v878_v11 = vsel %vm4572_vm5, %v873_v38, %v877_v9  ;;  %v1093_v14 = vrot.slane %v1091_v45, 5  ;;  %v887_v15 = vrot.slane %v886_v19, 4  ;;  %v899_v16 = vshll.u32 %v4648_v0, 16  ;;  %v4703_v9 = vld [vmem:[%s4483_s30 + $0x1c] sm:$0xf] }
  0x41   : > { %2411 = vrot.lane.b32.xlu1 %v3831_v4, %s4396_s7  ;;  %v3823_v18 = vcombine.low %v868_v40, %v878_v11  ;;  %v1084_v20 = vsel %vm4572_vm5, %v1079_v61, %v1083_v39  ;;  %v1088_v22 = vor.u32 %v1087_v63, %v1083_v39  ;;  %v891_v23 = vrot.slane %v889_v5, 5  ;;  %v4718_v19 = vld [vmem:[%s4483_s30 + $0x88] sm:$0xf] }
  0x42   : > { %2317 = vrot.lane.b32.xlu0 %v3808_v46, %s4393_s4  ;;  %v901_v24 = vrot.slane %v899_v16, 5  ;;  %v3671_v25 = vrot.slane %v3655_v8, 9  ;;  %v1361_v26 = vrot.slane %v4487_v1, 5  ;;  %v1364_v29 = vrot.slane %v4613_v35, 5  ;;  %v4725_v8 = vld [vmem:[%s4483_s30 + $0x24] sm:$0xf] }
  0x43   : > { %v1089_v32 = vrot.slane %v1088_v22, 4  ;;  %v892_v33 = vsel %vm4572_vm5, %v887_v15, %v891_v23  ;;  %v896_v34 = vor.u32 %v895_v6, %v891_v23  ;;  %v3663_v36 = vrot.slane %v3647_v28, 9  ;;  %v4734_v28 = vld [vmem:[%s4483_s30 + $0x28] sm:$0xf] }
  0x44   : > { %v1362_v37 = vsel %vm4514_vm2, %v3671_v25, %v1361_v26  ;;  %v1363_v41 = vrot.slane %v1361_v26, 4  ;;  %v1305_v42 = vrot.slane %v4494_v7, 5  ;;  %v1308_v43 = vrot.slane %v4623_v48, 5 }
  0x45   : > { %v1094_v1 = vsel %vm4572_vm5, %v1089_v32, %v1093_v14  ;;  %v897_v35 = vrot.slane %v896_v34, 4  ;;  %v3672_v44 = vrot.slane %v3656_v17, 9  ;;  %v1368_v46 = vrot.slane %v4595_v10, 5 }
  0x46   : > { %2395 = vrot.lane.b32.xlu0 %v3823_v18, %s4396_s7  ;;  %v3832_v49 = vcombine.low %v1084_v20, %v1094_v1  ;;  %v1365_v50 = vsel %vm4514_vm2, %v1363_v41, %v1364_v29  ;;  %v1306_v7 = vsel %vm4514_vm2, %v3663_v36, %v1305_v42  ;;  %v1307_v48 = vrot.slane %v1305_v42, 4 }
  0x47   : > { %v902_v52 = vsel %vm4572_vm5, %v897_v35, %v901_v24  ;;  %v3847_v27 = vcombine.low %v1362_v37, %v1365_v50  ;;  %v1369_v10 = vsel %vm4514_vm2, %v3672_v44, %v1368_v46  ;;  %v1370_v31 = vrot.slane %v1368_v46, 4  ;;  %v4739_v24 = vld [vmem:[%s4483_s30 + $0x80] sm:$0x1] }
  0x48   : > { %2413 = vrot.lane.b32.xlu1 %v3832_v49, %s4396_s7  ;;  %v3824_v3 = vcombine.low %v892_v33, %v902_v52  ;;  %v1309_v54 = vsel %vm4514_vm2, %v1307_v48, %v1308_v43  ;;  %v1371_v55 = vrot.slane %v4639_v57, 5  ;;  %v3664_v56 = vrot.slane %v3648_v47, 9  ;;  %v4750_v37 = vld [vmem:[%s4483_s30 + $0x20] sm:$0x1] }
  0x49   : > { %v3839_v59 = vcombine.low %v1306_v7, %v1309_v54  ;;  %v1312_v60 = vrot.slane %v4607_v12, 5  ;;  %v1315_v40 = vrot.slane %v4648_v0, 5  ;;  %v1660_v13 = vshrl.u32 %v4683_v51, 16  ;;  %v4713_v12 = vld [vmem:[%s4483_s30 + $0x84] sm:$0xf] }
  0x4a   : > { %2397 = vrot.lane.b32.xlu0 %v3824_v3, %s4396_s7  ;;  %v1372_v61 = vsel %vm4514_vm2, %v1370_v31, %v1371_v55  ;;  %v1663_v57 = vshll.u32 %v4683_v51, 16  ;;  %v1673_v62 = vshrl.u32 %v4690_v53, 16  ;;  %v3863_v63 = vcombine.low %v4683_v51, %v4690_v53 }
  0x4b   : > { %v3848_v0 = vcombine.low %v1369_v10, %v1372_v61  ;;  %v1313_v2 = vsel %vm4514_vm2, %v3664_v56, %v1312_v60  ;;  %v1314_v38 = vrot.slane %v1312_v60, 4  ;;  %v1662_v45 = vrot.slane %v1660_v13, 4 }
  0x4c   : > { %2491 = vrot.lane.b32.xlu1 %v3847_v27, %s4397_s8  ;;  %v1665_v4 = vrot.slane %v1663_v57, 5  ;;  %v1468_v39 = vshrl.u32 %v4697_v58, 16  ;;  %v1471_v5 = vshll.u32 %v4697_v58, 16  ;;  %v1481_v6 = vshrl.u32 %v4703_v9, 16  ;;  %v4759_v27 = vld [vmem:[%s4483_s30 + $0x8c] sm:$0x1] }
  0x4d   : > { %v1316_v11 = vsel %vm4514_vm2, %v1314_v38, %v1315_v40  ;;  %v3855_v14 = vcombine.low %v4697_v58, %v4703_v9  ;;  %v1684_v15 = vshrl.u32 %v4713_v12, 16  ;;  %v1687_v16 = vshll.u32 %v4713_v12, 16  ;;  %v4769_v57 = vld [vmem:[%s4483_s30 + $0x2c] sm:$0x1] }
  0x4e   : > { %2475 = vrot.lane.b32.xlu0 %v3839_v59, %s4397_s8  ;;  %v3840_v18 = vcombine.low %v1313_v2, %v1316_v11  ;;  %v1470_v20 = vrot.slane %v1468_v39, 4  ;;  %v1473_v22 = vrot.slane %v1471_v5, 5  ;;  %v1697_v23 = vshrl.u32 %v4718_v19, 16 }
  0x4f   : > { %v1686_v25 = vrot.slane %v1684_v15, 4  ;;  %v1689_v26 = vrot.slane %v1687_v16, 5  ;;  %v3864_v29 = vcombine.low %v4713_v12, %v4718_v19  ;;  %v1492_v17 = vshrl.u32 %v4725_v8, 16  ;;  %v3727_v16 = vld [vmem:[%s4483_s30 + $0x18] sm:$0xe] }
  0x50   : > { %2493 = vrot.lane.b32.xlu1 %v3848_v0, %s4397_s8  ;;  %v1495_v32 = vshll.u32 %v4725_v8, 16  ;;  %v1505_v33 = vshrl.u32 %v4734_v28, 16  ;;  %v3856_v34 = vcombine.low %v4725_v8, %v4734_v28  ;;  %v1666_v36 = vor.u32 %v1665_v4, %v1662_v45  ;;  %v3735_v45 = vld [vmem:[%s4483_s30 + $0x78] sm:$0xe] }
  0x51   : > { %v1494_v41 = vrot.slane %v1492_v17, 4  ;;  %v1669_v42 = vshll.u32 %v4690_v53, 16  ;;  %v1675_v43 = vrot.slane %v1673_v62, 4  ;;  %v1679_v1 = vshll.u32 %v4739_v24, 16 }
  0x52   : > { %2477 = vrot.lane.b32.xlu0 %v3840_v18, %s4397_s8  ;;  %v1497_v35 = vrot.slane %v1495_v32, 5  ;;  %v1667_v44 = vrot.slane %v1666_v36, 4  ;;  %v1474_v46 = vor.u32 %v1473_v22, %v1470_v20  ;;  %v1477_v47 = vshll.u32 %v4703_v9, 16 }
  0x53   : > { %v1671_v49 = vrot.slane %v1669_v42, 5  ;;  %v1681_v50 = vrot.slane %v1679_v1, 5  ;;  %v1483_v7 = vrot.slane %v1481_v6, 4  ;;  %v1487_v48 = vshll.u32 %v4750_v37, 16  ;;  %v4793_v42 = vld [vmem:[%s4483_s30 + $0x7c] sm:$0xf] }
  0x54   : > { %2587 = vrot.lane.b32.xlu1 %v3863_v63, %s4398_s9  ;;  %v1475_v51 = vrot.slane %v1474_v46, 4  ;;  %v1479_v52 = vrot.slane %v1477_v47, 5  ;;  %v1690_v10 = vor.u32 %v1689_v26, %v1686_v25  ;;  %v1693_v31 = vshll.u32 %v4718_v19, 16  ;;  %v209_v25 = vld [vmem:[%s4483_s30 + $0x78] sm:$0xf] }
  0x55   : > { %v1672_v3 = vsel %vm4572_vm5, %v1667_v44, %v1671_v49  ;;  %v1676_v54 = vor.u32 %v1675_v43, %v1671_v49  ;;  %v1489_v55 = vrot.slane %v1487_v48, 5  ;;  %v1699_v56 = vrot.slane %v1697_v23, 4  ;;  %v4804_v46 = vld [vmem:[%s4483_s30 + $0x80] sm:$0x1]  ;;  %v193_v49 = vld [vmem:[%s4483_s30 + $0x18] sm:$0xf] }
  0x56   : > { %2571 = vrot.lane.b32.xlu0 %v3855_v14, %s4398_s9  ;;  %v1480_v58 = vsel %vm4572_vm5, %v1475_v51, %v1479_v52  ;;  %v1484_v59 = vor.u32 %v1483_v7, %v1479_v52  ;;  %v1691_v60 = vrot.slane %v1690_v10, 4  ;;  %v1695_v40 = vrot.slane %v1693_v31, 5  ;;  %v4812_v51 = vld [vmem:[%s4483_s30 + $0x1c] sm:$0xf] }
  0x57   : > { %v1677_v13 = vrot.slane %v1676_v54, 4  ;;  %v1703_v61 = vshll.u32 %v4759_v27, 16  ;;  %v1498_v62 = vor.u32 %v1497_v35, %v1494_v41  ;;  %v1501_v63 = vshll.u32 %v4734_v28, 16  ;;  %v4818_v54 = vld [vmem:[%s4483_s30 + $0x20] sm:$0x1] }
  0x58   : > { %2589 = vrot.lane.b32.xlu1 %v3864_v29, %s4398_s9  ;;  %v1485_v12 = vrot.slane %v1484_v59, 4  ;;  %v1696_v0 = vsel %vm4572_vm5, %v1691_v60, %v1695_v40  ;;  %v1700_v2 = vor.u32 %v1699_v56, %v1695_v40  ;;  %v1507_v38 = vrot.slane %v1505_v33, 4 }
  0x59   : > { %v1682_v4 = vsel %vm4572_vm5, %v1677_v13, %v1681_v50  ;;  %v1705_v39 = vrot.slane %v1703_v61, 5  ;;  %v1499_v5 = vrot.slane %v1498_v62, 4  ;;  %v1503_v6 = vrot.slane %v1501_v63, 5  ;;  %v3736_v62 = vld [vmem:[%s4483_s30 + $0x84] sm:$0xe] }
  0x5a   : > { %2573 = vrot.lane.b32.xlu0 %v3856_v34, %s4398_s9  ;;  %v3879_v8 = vcombine.low %v1672_v3, %v1682_v4  ;;  %v1490_v11 = vsel %vm4572_vm5, %v1485_v12, %v1489_v55  ;;  %v1701_v14 = vrot.slane %v1700_v2, 4  ;;  %v1511_v15 = vshll.u32 %v4769_v57, 16 }
  0x5b   : > { %v3871_v18 = vcombine.low %v1480_v58, %v1490_v11  ;;  %v1504_v20 = vsel %vm4572_vm5, %v1499_v5, %v1503_v6  ;;  %v1508_v22 = vor.u32 %v1507_v38, %v1503_v6  ;;  %v3751_v23 = vrot.slane %v3735_v45, 9  ;;  %v3728_v5 = vld [vmem:[%s4483_s30 + $0x24] sm:$0xe] }
  0x5c   : > { %2667 = vrot.lane.b32.xlu1 %v3879_v8, %s4399_s10  ;;  %v1706_v26 = vsel %vm4572_vm5, %v1701_v14, %v1705_v39  ;;  %v1513_v29 = vrot.slane %v1511_v15, 5  ;;  %v1973_v17 = vrot.slane %v4690_v53, 5  ;;  %v1976_v32 = vrot.slane %v4739_v24, 5 }
  0x5d   : > { %v3880_v33 = vcombine.low %v1696_v0, %v1706_v26  ;;  %v1509_v34 = vrot.slane %v1508_v22, 4  ;;  %v3743_v36 = vrot.slane %v3727_v16, 9  ;;  %v1917_v41 = vrot.slane %v4703_v9, 5  ;;  %v211_v22 = vld [vmem:[%s4483_s30 + $0x84] sm:$0xf] }
  0x5e   : > { %2651 = vrot.lane.b32.xlu0 %v3871_v18, %s4399_s10  ;;  %v1974_v43 = vsel %vm4514_vm2, %v3751_v23, %v1973_v17  ;;  %v1975_v1 = vrot.slane %v1973_v17, 4  ;;  %v1920_v35 = vrot.slane %v4750_v37, 5  ;;  %v481_v53 = vshrl.u32 %v209_v25, 16 }
  0x5f   : > { %v1514_v24 = vsel %vm4572_vm5, %v1509_v34, %v1513_v29  ;;  %v1918_v44 = vsel %vm4514_vm2, %v3743_v36, %v1917_v41  ;;  %v1919_v9 = vrot.slane %v1917_v41, 4  ;;  %v484_v47 = vshll.u32 %v209_v25, 16  ;;  %v4841_v34 = vld [vmem:[%s4483_s30 + $0x88] sm:$0xf] }
  0x60   : > { %2669 = vrot.lane.b32.xlu1 %v3880_v33, %s4399_s10  ;;  %v3872_v50 = vcombine.low %v1504_v20, %v1514_v24  ;;  %v1977_v7 = vsel %vm4514_vm2, %v1975_v1, %v1976_v32  ;;  %v483_v37 = vrot.slane %v481_v53, 4  ;;  %v490_v48 = vshll.u32 %v4793_v42, 16  ;;  %v195_v24 = vld [vmem:[%s4483_s30 + $0x24] sm:$0xf] }
  0x61   : > { %v3895_v52 = vcombine.low %v1974_v43, %v1977_v7  ;;  %v1921_v10 = vsel %vm4514_vm2, %v1919_v9, %v1920_v35  ;;  %v486_v31 = vrot.slane %v484_v47, 5  ;;  %v494_v3 = vshrl.u32 %v4793_v42, 16  ;;  %v4846_v43 = vld [vmem:[%s4483_s30 + $0x8c] sm:$0x1] }
  0x62   : > { %2653 = vrot.lane.b32.xlu0 %v3872_v50, %s4399_s10  ;;  %v3887_v55 = vcombine.low %v1918_v44, %v1921_v10  ;;  %v492_v56 = vrot.slane %v490_v48, 5  ;;  %v500_v58 = vshll.u32 %v4804_v46, 16  ;;  %v289_v59 = vshrl.u32 %v193_v49, 16  ;;  %v4858_v50 = vld [vmem:[%s4483_s30 + $0x28] sm:$0xf] }
  0x63   : > { %v487_v60 = vor.u32 %v486_v31, %v483_v37  ;;  %v496_v40 = vrot.slane %v494_v3, 4  ;;  %v292_v13 = vshll.u32 %v193_v49, 16  ;;  %v298_v61 = vshll.u32 %v4812_v51, 16  ;;  %v4865_v10 = vld [vmem:[%s4483_s30 + $0x2c] sm:$0x1] }
  0x64   : > { %2747 = vrot.lane.b32.xlu1 %v3895_v52, %s4400_s11  ;;  %v502_v63 = vrot.slane %v500_v58, 5  ;;  %v291_v12 = vrot.slane %v289_v59, 4  ;;  %v302_v0 = vshrl.u32 %v4812_v51, 16  ;;  %v308_v2 = vshll.u32 %v4818_v54, 16  ;;  %v634_v58 = vld [vmem:[%s4483_s30 + $0x78] sm:$0xe] }
  0x65   : > { %v488_v38 = vrot.slane %v487_v60, 4  ;;  %v497_v45 = vor.u32 %v496_v40, %v492_v56  ;;  %v294_v4 = vrot.slane %v292_v13, 5  ;;  %v300_v39 = vrot.slane %v298_v61, 5 }
  0x66   : > { %2731 = vrot.lane.b32.xlu0 %v3887_v55, %s4400_s11  ;;  %v304_v6 = vrot.slane %v302_v0, 4  ;;  %v310_v8 = vrot.slane %v308_v2, 5  ;;  %v3752_v11 = vrot.slane %v3736_v62, 9  ;;  %v1980_v14 = vrot.slane %v4718_v19, 5  ;;  %v626_v0 = vld [vmem:[%s4483_s30 + $0x18] sm:$0xe] }
  0x67   : > { %v493_v15 = vsel %vm4572_vm5, %v488_v38, %v492_v56  ;;  %v498_v16 = vrot.slane %v497_v45, 4  ;;  %v295_v18 = vor.u32 %v294_v4, %v291_v12  ;;  %v1983_v20 = vrot.slane %v4759_v27, 5 }
  0x68   : > { %v305_v23 = vor.u32 %v304_v6, %v300_v39  ;;  %v1981_v25 = vsel %vm4514_vm2, %v3752_v11, %v1980_v14  ;;  %v1982_v26 = vrot.slane %v1980_v14, 4  ;;  %v3744_v29 = vrot.slane %v3728_v5, 9 }
  0x69   : > { %v503_v17 = vsel %vm4572_vm5, %v498_v16, %v502_v63  ;;  %v296_v19 = vrot.slane %v295_v18, 4  ;;  %v1924_v32 = vrot.slane %v4734_v28, 5  ;;  %v1927_v33 = vrot.slane %v4769_v57, 5  ;;  %v635_v18 = vld [vmem:[%s4483_s30 + $0x84] sm:$0xe] }
  0x6a   : > { %v3785_v27 = vcombine.low %v493_v15, %v503_v17  ;;  %v306_v36 = vrot.slane %v305_v23, 4  ;;  %v1984_v41 = vsel %vm4514_vm2, %v1982_v26, %v1983_v20  ;;  %v505_v1 = vshrl.u32 %v211_v22, 16 }
  0x6b   : > { %v301_v35 = vsel %vm4572_vm5, %v296_v19, %v300_v39  ;;  %v3896_v53 = vcombine.low %v1981_v25, %v1984_v41  ;;  %v1925_v28 = vsel %vm4514_vm2, %v3744_v29, %v1924_v32  ;;  %v1926_v57 = vrot.slane %v1924_v32, 4 }
  0x6c   : > { %2159 = vrot.lane.b32.xlu1 %v3785_v27, %s4395_s6  ;;  %v311_v44 = vsel %vm4572_vm5, %v306_v36, %v310_v8  ;;  %v507_v9 = vrot.slane %v505_v1, 4  ;;  %v508_v47 = vshll.u32 %v211_v22, 16  ;;  %v514_v49 = vshll.u32 %v4841_v34, 16 }
  0x6d   : > { %v3777_v7 = vcombine.low %v301_v35, %v311_v44  ;;  %v1928_v37 = vsel %vm4514_vm2, %v1926_v57, %v1927_v33  ;;  %v518_v48 = vshrl.u32 %v4841_v34, 16  ;;  %v524_v52 = vshll.u32 %v4846_v43, 16 }
  0x6e   : > { %v3888_v31 = vcombine.low %v1925_v28, %v1928_v37  ;;  %v510_v3 = vrot.slane %v508_v47, 5  ;;  %v516_v55 = vrot.slane %v514_v49, 5  ;;  %v313_v56 = vshrl.u32 %v195_v24, 16 }
  0x6f   : > { %2143 = vrot.lane.b32.xlu0 %v3777_v7, %s4395_s6  ;;  %v520_v59 = vrot.slane %v518_v48, 4  ;;  %v526_v60 = vrot.slane %v524_v52, 5  ;;  %v316_v40 = vshll.u32 %v195_v24, 16  ;;  %v322_v13 = vshll.u32 %v4858_v50, 16  ;;  %v4902_v24 = vld [vmem:[%s4483_s30 + $0x88] sm:$0xf] }
  0x70   : > { %2749 = vrot.lane.b32.xlu1 %v3896_v53, %s4400_s11  ;;  %v511_v61 = vor.u32 %v510_v3, %v507_v9  ;;  %v315_v62 = vrot.slane %v313_v56, 4  ;;  %v326_v63 = vshrl.u32 %v4858_v50, 16  ;;  %v332_v12 = vshll.u32 %v4865_v10, 16  ;;  %v4909_v7 = vld [vmem:[%s4483_s30 + $0x24] sm:$0xf] }
  0x71   : > { %v521_v2 = vor.u32 %v520_v59, %v516_v55  ;;  %v318_v38 = vrot.slane %v316_v40, 5  ;;  %v324_v45 = vrot.slane %v322_v13, 5  ;;  %v3593_v4 = vrot.slane %v634_v58, 9  ;;  %v4920_v3 = vld [vmem:[%s4483_s30 + $0x28] sm:$0xf] }
  0x72   : > { %v512_v39 = vrot.slane %v511_v61, 4  ;;  %v328_v5 = vrot.slane %v326_v63, 4  ;;  %v334_v6 = vrot.slane %v332_v12, 5  ;;  %v763_v8 = vrot.slane %v4793_v42, 5  ;;  %v4930_v40 = vld [vmem:[%s4483_s30 + $0x94] sm:$0xf] }
  0x73   : > { %2733 = vrot.lane.b32.xlu0 %v3888_v31, %s4400_s11  ;;  %v522_v11 = vrot.slane %v521_v2, 4  ;;  %v319_v14 = vor.u32 %v318_v38, %v315_v62  ;;  %v766_v15 = vrot.slane %v4804_v46, 5  ;;  %v3585_v16 = vrot.slane %v626_v0, 9  ;;  %v627_v46 = vld [vmem:[%s4483_s30 + $0x24] sm:$0xe] }
  0x74   : > { %v517_v20 = vsel %vm4572_vm5, %v512_v39, %v516_v55  ;;  %v329_v22 = vor.u32 %v328_v5, %v324_v45  ;;  %v764_v23 = vsel %vm4514_vm2, %v3593_v4, %v763_v8  ;;  %v765_v25 = vrot.slane %v763_v8, 4  ;;  %v4936_v12 = vld [vmem:[%s4483_s30 + $0x30] sm:$0xf]  ;;  %v4939_v0 = vld [vmem:[%s4483_s30 + $0x34] sm:$0xf] }
  0x75   : > { %v527_v42 = vsel %vm4572_vm5, %v522_v11, %v526_v60  ;;  %v320_v26 = vrot.slane %v319_v14, 4  ;;  %v707_v29 = vrot.slane %v4812_v51, 5  ;;  %v710_v17 = vrot.slane %v4818_v54, 5  ;;  %v4894_v51 = vld [vmem:[%s4483_s30 + $0x84] sm:$0xf] }
  0x76   : > { %v3786_v19 = vcombine.low %v517_v20, %v527_v42  ;;  %v330_v32 = vrot.slane %v329_v22, 4  ;;  %v767_v33 = vsel %vm4514_vm2, %v765_v25, %v766_v15  ;;  %v3594_v27 = vrot.slane %v635_v18, 9  ;;  %v3621_v60 = vld [vmem:[%s4483_s30 + $0x90] sm:$0xf]  ;;  %v4952_v18 = vld [vmem:[%s4483_s30 + $0x8c] sm:$0x1] }
  0x77   : > { %v325_v36 = vsel %vm4572_vm5, %v320_v26, %v324_v45  ;;  %v3801_v41 = vcombine.low %v764_v23, %v767_v33  ;;  %v708_v1 = vsel %vm4514_vm2, %v3585_v16, %v707_v29  ;;  %v709_v35 = vrot.slane %v707_v29, 4  ;;  %v4957_v42 = vld [vmem:[%s4483_s30 + $0x2c] sm:$0x1] }
  0x78   : > { %2161 = vrot.lane.b32.xlu1 %v3786_v19, %s4395_s6  ;;  %v335_v54 = vsel %vm4572_vm5, %v330_v32, %v334_v6  ;;  %v770_v53 = vrot.slane %v4841_v34, 5  ;;  %v773_v28 = vrot.slane %v4846_v43, 5  ;;  %v3586_v57 = vrot.slane %v627_v46, 9 }
  0x79   : > { %v3778_v44 = vcombine.low %v325_v36, %v335_v54  ;;  %v711_v9 = vsel %vm4514_vm2, %v709_v35, %v710_v17  ;;  %v714_v47 = vrot.slane %v4858_v50, 5  ;;  %v717_v49 = vrot.slane %v4865_v10, 5 }
  0x7a   : > { %v3793_v37 = vcombine.low %v708_v1, %v711_v9  ;;  %v771_v34 = vsel %vm4514_vm2, %v3594_v27, %v770_v53  ;;  %v772_v43 = vrot.slane %v770_v53, 4  ;;  %v1096_v48 = vshrl.u32 %v4894_v51, 16 }
  0x7b   : > { %2145 = vrot.lane.b32.xlu0 %v3778_v44, %s4395_s6  ;;  %v715_v52 = vsel %vm4514_vm2, %v3586_v57, %v714_v47  ;;  %v716_v50 = vrot.slane %v714_v47, 4  ;;  %v1099_v10 = vshll.u32 %v4894_v51, 16  ;;  %v1109_v31 = vshrl.u32 %v4902_v24, 16 }
  0x7c   : > { %2239 = vrot.lane.b32.xlu1 %v3801_v41, %s4394_s5  ;;  %v774_v55 = vsel %vm4514_vm2, %v772_v43, %v773_v28  ;;  %v1098_v56 = vrot.slane %v1096_v48, 4  ;;  %v3817_v58 = vcombine.low %v4894_v51, %v4902_v24  ;;  %v904_v59 = vshrl.u32 %v4909_v7, 16  ;;  %v4966_v28 = vld [vmem:[%s4483_s30 + $0x98] sm:$0x1] }
  0x7d   : > { %v3802_v13 = vcombine.low %v771_v34, %v774_v55  ;;  %v718_v61 = vsel %vm4514_vm2, %v716_v50, %v717_v49  ;;  %v1101_v62 = vrot.slane %v1099_v10, 5  ;;  %v907_v63 = vshll.u32 %v4909_v7, 16  ;;  %v4977_v50 = vld [vmem:[%s4483_s30 + $0x38] sm:$0x1] }
  0x7e   : > { %v3794_v2 = vcombine.low %v715_v52, %v718_v61  ;;  %v906_v38 = vrot.slane %v904_v59, 4  ;;  %v917_v45 = vshrl.u32 %v4920_v3, 16  ;;  %v3809_v4 = vcombine.low %v4909_v7, %v4920_v3 }
  0x7f   : > { %2223 = vrot.lane.b32.xlu0 %v3793_v37, %s4394_s5  ;;  %v909_v39 = vrot.slane %v907_v63, 5  ;;  %v1120_v5 = vshrl.u32 %v3621_v60, 16  ;;  %v1123_v6 = vshll.u32 %v3621_v60, 16  ;;  %v1133_v8 = vshrl.u32 %v4930_v40, 16 }
  0x80   : > { %2241 = vrot.lane.b32.xlu1 %v3802_v13, %s4394_s5  ;;  %v3818_v11 = vcombine.low %v3621_v60, %v4930_v40  ;;  %v928_v14 = vshrl.u32 %v4936_v12, 16  ;;  %v931_v15 = vshll.u32 %v4936_v12, 16  ;;  %v941_v16 = vshrl.u32 %v4939_v0, 16  ;;  %v3657_v60 = vld [vmem:[%s4483_s30 + $0x84] sm:$0xe] }
  0x81   : > { %v1122_v20 = vrot.slane %v1120_v5, 4  ;;  %v1125_v22 = vrot.slane %v1123_v6, 5  ;;  %v3810_v23 = vcombine.low %v4936_v12, %v4939_v0  ;;  %v1102_v25 = vor.u32 %v1101_v62, %v1098_v56 }
  0x82   : > { %v930_v26 = vrot.slane %v928_v14, 4  ;;  %v933_v29 = vrot.slane %v931_v15, 5  ;;  %v1105_v17 = vshll.u32 %v4902_v24, 16  ;;  %v1111_v46 = vrot.slane %v1109_v31, 4 }
  0x83   : > { %2225 = vrot.lane.b32.xlu0 %v3794_v2, %s4394_s5  ;;  %v1103_v19 = vrot.slane %v1102_v25, 4  ;;  %v1115_v32 = vshll.u32 %v4952_v18, 16  ;;  %v910_v33 = vor.u32 %v909_v39, %v906_v38  ;;  %v913_v27 = vshll.u32 %v4920_v3, 16 }
  0x84   : > { %2335 = vrot.lane.b32.xlu1 %v3817_v58, %s4393_s4  ;;  %v1107_v36 = vrot.slane %v1105_v17, 5  ;;  %v919_v41 = vrot.slane %v917_v45, 4  ;;  %v923_v1 = vshll.u32 %v4957_v42, 16  ;;  %v1126_v35 = vor.u32 %v1125_v22, %v1122_v20 }
  0x85   : > { %v1117_v51 = vrot.slane %v1115_v32, 5  ;;  %v911_v54 = vrot.slane %v910_v33, 4  ;;  %v915_v53 = vrot.slane %v913_v27, 5  ;;  %v1129_v57 = vshll.u32 %v4930_v40, 16  ;;  %v5010_v27 = vld [vmem:[%s4483_s30 + $0x90] sm:$0xf] }
  0x86   : > { %v1108_v44 = vsel %vm4572_vm5, %v1103_v19, %v1107_v36  ;;  %v1112_v9 = vor.u32 %v1111_v46, %v1107_v36  ;;  %v925_v47 = vrot.slane %v923_v1, 5  ;;  %v1127_v49 = vrot.slane %v1126_v35, 4  ;;  %v5017_v35 = vld [vmem:[%s4483_s30 + $0x94] sm:$0xf] }
  0x87   : > { %2319 = vrot.lane.b32.xlu0 %v3809_v4, %s4393_s4  ;;  %v916_v7 = vsel %vm4572_vm5, %v911_v54, %v915_v53  ;;  %v920_v37 = vor.u32 %v919_v41, %v915_v53  ;;  %v1131_v34 = vrot.slane %v1129_v57, 5  ;;  %v1135_v43 = vrot.slane %v1133_v8, 4  ;;  %v3649_v4 = vld [vmem:[%s4483_s30 + $0x24] sm:$0xe]  ;;  %v5024_v57 = vld [vmem:[%s4483_s30 + $0x30] sm:$0xf] }
  0x88   : > { %2337 = vrot.lane.b32.xlu1 %v3818_v11, %s4393_s4  ;;  %v1113_v48 = vrot.slane %v1112_v9, 4  ;;  %v1139_v52 = vshll.u32 %v4966_v28, 16  ;;  %v934_v10 = vor.u32 %v933_v29, %v930_v26  ;;  %v937_v31 = vshll.u32 %v4939_v0, 16  ;;  %v3658_v11 = vld [vmem:[%s4483_s30 + $0x90] sm:$0xe] }
  0x89   : > { %v921_v55 = vrot.slane %v920_v37, 4  ;;  %v1132_v56 = vsel %vm4572_vm5, %v1127_v49, %v1131_v34  ;;  %v1136_v58 = vor.u32 %v1135_v43, %v1131_v34  ;;  %v943_v59 = vrot.slane %v941_v16, 4  ;;  %v3650_v29 = vld [vmem:[%s4483_s30 + $0x30] sm:$0xe]  ;;  %v5031_v49 = vld [vmem:[%s4483_s30 + $0x34] sm:$0xf] }
  0x8a   : > { %v1118_v13 = vsel %vm4572_vm5, %v1113_v48, %v1117_v51  ;;  %v1141_v61 = vrot.slane %v1139_v52, 5  ;;  %v935_v62 = vrot.slane %v934_v10, 4  ;;  %v939_v63 = vrot.slane %v937_v31, 5 }
  0x8b   : > { %2321 = vrot.lane.b32.xlu0 %v3810_v23, %s4393_s4  ;;  %v3833_v12 = vcombine.low %v1108_v44, %v1118_v13  ;;  %v926_v2 = vsel %vm4572_vm5, %v921_v55, %v925_v47  ;;  %v1137_v38 = vrot.slane %v1136_v58, 4  ;;  %v947_v45 = vshll.u32 %v4977_v50, 16  ;;  %v5048_v55 = vld [vmem:[%s4483_s30 + $0xa0] sm:$0xf]  ;;  %v5054_v13 = vld [vmem:[%s4483_s30 + $0x3c] sm:$0xf] }
  0x8c   : > { %v3825_v39 = vcombine.low %v916_v7, %v926_v2  ;;  %v940_v5 = vsel %vm4572_vm5, %v935_v62, %v939_v63  ;;  %v944_v6 = vor.u32 %v943_v59, %v939_v63  ;;  %v3673_v8 = vrot.slane %v3657_v60, 9  ;;  %v5064_v2 = vld [vmem:[%s4483_s30 + $0x40] sm:$0xf] }
  0x8d   : > { %2415 = vrot.lane.b32.xlu1 %v3833_v12, %s4396_s7  ;;  %v1142_v14 = vsel %vm4572_vm5, %v1137_v38, %v1141_v61  ;;  %v949_v15 = vrot.slane %v947_v45, 5  ;;  %v1375_v16 = vrot.slane %v4902_v24, 5  ;;  %v1378_v20 = vrot.slane %v4952_v18, 5 }
  0x8e   : > { %v3834_v22 = vcombine.low %v1132_v56, %v1142_v14  ;;  %v945_v23 = vrot.slane %v944_v6, 4  ;;  %v3665_v25 = vrot.slane %v3649_v4, 9  ;;  %v1319_v26 = vrot.slane %v4920_v3, 5  ;;  %v5033_v7 = vpop.permute.xlu1 %2331 }
  0x8f   : > { %2399 = vrot.lane.b32.xlu0 %v3825_v39, %s4396_s7  ;;  %v1376_v17 = vsel %vm4514_vm2, %v3673_v8, %v1375_v16  ;;  %v1377_v46 = vrot.slane %v1375_v16, 4  ;;  %v1322_v19 = vrot.slane %v4957_v42, 5  ;;  %v3674_v32 = vrot.slane %v3658_v11, 9 }
  0x90   : > { %v950_v24 = vsel %vm4572_vm5, %v945_v23, %v949_v15  ;;  %v1320_v18 = vsel %vm4514_vm2, %v3665_v25, %v1319_v26  ;;  %v1321_v33 = vrot.slane %v1319_v26, 4  ;;  %v1382_v3 = vrot.slane %v4930_v40, 5  ;;  %v5070_v6 = vpop.permute.xlu0 %2315  ;;  %v5083_v26 = vld [vmem:[%s4483_s30 + $0x38] sm:$0x1] }
  0x91   : > { %2417 = vrot.lane.b32.xlu1 %v3834_v22, %s4396_s7  ;;  %v3826_v36 = vcombine.low %v940_v5, %v950_v24  ;;  %v1379_v42 = vsel %vm4514_vm2, %v1377_v46, %v1378_v20  ;;  %v1385_v41 = vrot.slane %v4966_v28, 5  ;;  %v3666_v1 = vrot.slane %v3650_v29, 9  ;;  %v5068_v5 = vld [vmem:[%s4483_s30 + $0x98] sm:$0x1] }
  0x92   : > { %v3849_v51 = vcombine.low %v1376_v17, %v1379_v42  ;;  %v1323_v54 = vsel %vm4514_vm2, %v1321_v33, %v1322_v19  ;;  %v1383_v40 = vsel %vm4514_vm2, %v3674_v32, %v1382_v3  ;;  %v1384_v53 = vrot.slane %v1382_v3, 4 }
  0x93   : > { %2401 = vrot.lane.b32.xlu0 %v3826_v36, %s4396_s7  ;;  %v3841_v44 = vcombine.low %v1320_v18, %v1323_v54  ;;  %v1326_v28 = vrot.slane %v4939_v0, 5  ;;  %v1329_v9 = vrot.slane %v4977_v50, 5  ;;  %v1708_v47 = vshrl.u32 %v5010_v27, 16  ;;  %v5042_v0 = vld [vmem:[%s4483_s30 + $0x9c] sm:$0xf] }
  0x94   : > { %v1386_v37 = vsel %vm4514_vm2, %v1384_v53, %v1385_v41  ;;  %v1711_v34 = vshll.u32 %v5010_v27, 16  ;;  %v1721_v43 = vshrl.u32 %v5017_v35, 16  ;;  %v3865_v48 = vcombine.low %v5010_v27, %v5017_v35 }
  0x95   : > { %2495 = vrot.lane.b32.xlu1 %v3849_v51, %s4397_s8  ;;  %v3850_v52 = vcombine.low %v1383_v40, %v1386_v37  ;;  %v1327_v50 = vsel %vm4514_vm2, %v3666_v1, %v1326_v28  ;;  %v1328_v10 = vrot.slane %v1326_v28, 4  ;;  %v1710_v31 = vrot.slane %v1708_v47, 4  ;;  %v5092_v51 = vld [vmem:[%s4483_s30 + $0xa4] sm:$0x1] }
  0x96   : > { %v1713_v56 = vrot.slane %v1711_v34, 5  ;;  %v1516_v58 = vshrl.u32 %v5024_v57, 16  ;;  %v1519_v59 = vshll.u32 %v5024_v57, 16  ;;  %v1529_v60 = vshrl.u32 %v5031_v49, 16  ;;  %v5076_v16 = vpop.permute.xlu1 %2235 }
  0x97   : > { %2479 = vrot.lane.b32.xlu0 %v3841_v44, %s4397_s8  ;;  %v1330_v61 = vsel %vm4514_vm2, %v1328_v10, %v1329_v9  ;;  %v3857_v62 = vcombine.low %v5024_v57, %v5031_v49  ;;  %v1732_v63 = vshrl.u32 %v5042_v0, 16  ;;  %v1735_v12 = vshll.u32 %v5042_v0, 16 }
  0x98   : > { %v3842_v38 = vcombine.low %v1327_v50, %v1330_v61  ;;  %v1518_v45 = vrot.slane %v1516_v58, 4  ;;  %v1521_v4 = vrot.slane %v1519_v59, 5  ;;  %v1745_v39 = vshrl.u32 %v5048_v55, 16  ;;  %v5095_v53 = vpop.permute.xlu0 %2219  ;;  %v5107_v50 = vld [vmem:[%s4483_s30 + $0x44] sm:$0x1] }
  0x99   : > { %2497 = vrot.lane.b32.xlu1 %v3850_v52, %s4397_s8  ;;  %v1734_v8 = vrot.slane %v1732_v63, 4  ;;  %v1737_v11 = vrot.slane %v1735_v12, 5  ;;  %v3866_v14 = vcombine.low %v5042_v0, %v5048_v55  ;;  %v1540_v15 = vshrl.u32 %v5054_v13, 16 }
  0x9a   : > { %v1543_v20 = vshll.u32 %v5054_v13, 16  ;;  %v1553_v22 = vshrl.u32 %v5064_v2, 16  ;;  %v3858_v23 = vcombine.low %v5054_v13, %v5064_v2  ;;  %v1714_v25 = vor.u32 %v1713_v56, %v1710_v31  ;;  %v5100_v47 = vpop.permute.xlu1 %2237  ;;  %v3737_v13 = vld [vmem:[%s4483_s30 + $0x90] sm:$0xe] }
  0x9b   : > { %2481 = vrot.lane.b32.xlu0 %v3842_v38, %s4397_s8  ;;  %v1542_v29 = vrot.slane %v1540_v15, 4  ;;  %v1717_v17 = vshll.u32 %v5017_v35, 16  ;;  %v1723_v46 = vrot.slane %v1721_v43, 4  ;;  %v1727_v19 = vshll.u32 %v5068_v5, 16 }
  0x9c   : > { %v1545_v32 = vrot.slane %v1543_v20, 5  ;;  %v1715_v24 = vrot.slane %v1714_v25, 4  ;;  %v1522_v18 = vor.u32 %v1521_v4, %v1518_v45  ;;  %v1525_v33 = vshll.u32 %v5031_v49, 16 }
  0x9d   : > { %2591 = vrot.lane.b32.xlu1 %v3865_v48, %s4398_s9  ;;  %v1719_v3 = vrot.slane %v1717_v17, 5  ;;  %v1729_v27 = vrot.slane %v1727_v19, 5  ;;  %v1531_v36 = vrot.slane %v1529_v60, 4  ;;  %v1535_v42 = vshll.u32 %v5083_v26, 16 }
  0x9e   : > { %v1523_v41 = vrot.slane %v1522_v18, 4  ;;  %v1527_v1 = vrot.slane %v1525_v33, 5  ;;  %v1738_v54 = vor.u32 %v1737_v11, %v1734_v8  ;;  %v1741_v40 = vshll.u32 %v5048_v55, 16  ;;  %v3729_v8 = vld [vmem:[%s4483_s30 + $0x30] sm:$0xe]  ;;  %v5120_v11 = vpop.permute.xlu0 %2221 }
  0x9f   : > { %2575 = vrot.lane.b32.xlu0 %v3857_v62, %s4398_s9  ;;  %v1720_v57 = vsel %vm4572_vm5, %v1715_v24, %v1719_v3  ;;  %v1724_v44 = vor.u32 %v1723_v46, %v1719_v3  ;;  %v1537_v28 = vrot.slane %v1535_v42, 5  ;;  %v1747_v9 = vrot.slane %v1745_v39, 4  ;;  %v5135_v3 = vld [vmem:[%s4483_s30 + $0x94] sm:$0xf] }
  0xa0   : > { %v1528_v37 = vsel %vm4572_vm5, %v1523_v41, %v1527_v1  ;;  %v1532_v34 = vor.u32 %v1531_v36, %v1527_v1  ;;  %v1739_v43 = vrot.slane %v1738_v54, 4  ;;  %v1743_v48 = vrot.slane %v1741_v40, 5  ;;  %v5145_v54 = vld [vmem:[%s4483_s30 + $0x98] sm:$0x1]  ;;  %v197_v40 = vld [vmem:[%s4483_s30 + $0x30] sm:$0xf] }
  0xa1   : > { %2593 = vrot.lane.b32.xlu1 %v3866_v14, %s4398_s9  ;;  %v1725_v0 = vrot.slane %v1724_v44, 4  ;;  %v1751_v52 = vshll.u32 %v5092_v51, 16  ;;  %v1546_v10 = vor.u32 %v1545_v32, %v1542_v29  ;;  %v1549_v31 = vshll.u32 %v5064_v2, 16 }
  0xa2   : > { %v1533_v56 = vrot.slane %v1532_v34, 4  ;;  %v1744_v58 = vsel %vm4572_vm5, %v1739_v43, %v1743_v48  ;;  %v1748_v59 = vor.u32 %v1747_v9, %v1743_v48  ;;  %v1555_v60 = vrot.slane %v1553_v22, 4  ;;  %v5153_v9 = vld [vmem:[%s4483_s30 + $0x34] sm:$0xf] }
  0xa3   : > { %2577 = vrot.lane.b32.xlu0 %v3858_v23, %s4398_s9  ;;  %v1730_v61 = vsel %vm4572_vm5, %v1725_v0, %v1729_v27  ;;  %v1753_v62 = vrot.slane %v1751_v52, 5  ;;  %v1547_v63 = vrot.slane %v1546_v10, 4  ;;  %v1551_v12 = vrot.slane %v1549_v31, 5  ;;  %v213_v23 = vld [vmem:[%s4483_s30 + $0x90] sm:$0xf]  ;;  %v5125_v25 = vpop.permute.xlu1 %2141 }
  0xa4   : > { %v3881_v38 = vcombine.low %v1720_v57, %v1730_v61  ;;  %v1538_v45 = vsel %vm4572_vm5, %v1533_v56, %v1537_v28  ;;  %v1749_v4 = vrot.slane %v1748_v59, 4  ;;  %v1559_v39 = vshll.u32 %v5107_v50, 16  ;;  %v5161_v52 = vld [vmem:[%s4483_s30 + $0x38] sm:$0x1] }
  0xa5   : > { %v3873_v14 = vcombine.low %v1528_v37, %v1538_v45  ;;  %v1552_v15 = vsel %vm4572_vm5, %v1547_v63, %v1551_v12  ;;  %v1556_v20 = vor.u32 %v1555_v60, %v1551_v12  ;;  %v3753_v22 = vrot.slane %v3737_v13, 9 }
  0xa6   : > { %2671 = vrot.lane.b32.xlu1 %v3881_v38, %s4399_s10  ;;  %v1754_v29 = vsel %vm4572_vm5, %v1749_v4, %v1753_v62  ;;  %v1561_v17 = vrot.slane %v1559_v39, 5  ;;  %v1987_v46 = vrot.slane %v5017_v35, 5  ;;  %v1990_v19 = vrot.slane %v5068_v5, 5 }
  0xa7   : > { %2655 = vrot.lane.b32.xlu0 %v3873_v14, %s4399_s10  ;;  %v3882_v32 = vcombine.low %v1744_v58, %v1754_v29  ;;  %v1557_v24 = vrot.slane %v1556_v20, 4  ;;  %v3745_v18 = vrot.slane %v3729_v8, 9  ;;  %v1931_v33 = vrot.slane %v5031_v49, 5  ;;  %v5155_v37 = vpop.permute.xlu0 %2139  ;;  %v4284_v29 = vld [vmem:[%s4483_s30 + $0xc] sm:$0xf] }
  0xa8   : > { %v1988_v27 = vsel %vm4514_vm2, %v3753_v22, %v1987_v46  ;;  %v1989_v36 = vrot.slane %v1987_v46, 4  ;;  %v1934_v42 = vrot.slane %v5083_v26, 5  ;;  %v529_v35 = vshrl.u32 %v213_v23, 16 }
  0xa9   : > { %v1562_v5 = vsel %vm4572_vm5, %v1557_v24, %v1561_v17  ;;  %v1932_v41 = vsel %vm4514_vm2, %v3745_v18, %v1931_v33  ;;  %v1933_v1 = vrot.slane %v1931_v33, 4  ;;  %v532_v49 = vshll.u32 %v213_v23, 16  ;;  %v4283_v23 = vld [vmem:[%s4483_s30 + $0x10] sm:$0xf] }
  0xaa   : > { %2673 = vrot.lane.b32.xlu1 %v3882_v32, %s4399_s10  ;;  %v3874_v57 = vcombine.low %v1552_v15, %v1562_v5  ;;  %v1991_v44 = vsel %vm4514_vm2, %v1989_v36, %v1990_v19  ;;  %v531_v26 = vrot.slane %v529_v35, 4  ;;  %v538_v28 = vshll.u32 %v5135_v3, 16  ;;  %v3738_v15 = vld [vmem:[%s4483_s30 + $0x9c] sm:$0xe]  ;;  %v4285_v5 = vld [vmem:[%s4483_s30 + $0x4] sm:$0xf] }
  0xab   : > { %v3897_v34 = vcombine.low %v1988_v27, %v1991_v44  ;;  %v1935_v43 = vsel %vm4514_vm2, %v1933_v1, %v1934_v42  ;;  %v534_v48 = vrot.slane %v532_v49, 5  ;;  %v542_v0 = vshrl.u32 %v5135_v3, 16  ;;  %v5163_v10 = vpop.permute.xlu1 %2157  ;;  %v3730_v36 = vld [vmem:[%s4483_s30 + $0x3c] sm:$0xe] }
  0xac   : > { %2657 = vrot.lane.b32.xlu0 %v3874_v57, %s4399_s10  ;;  %v3889_v31 = vcombine.low %v1932_v41, %v1935_v43  ;;  %v540_v56 = vrot.slane %v538_v28, 5  ;;  %v548_v58 = vshll.u32 %v5145_v54, 16  ;;  %v337_v59 = vshrl.u32 %v197_v40, 16  ;;  %v4286_v41 = vld [vmem:[%s4483_s30] sm:$0xf] }
  0xad   : > { %v535_v60 = vor.u32 %v534_v48, %v531_v26  ;;  %v544_v13 = vrot.slane %v542_v0, 4  ;;  %v340_v61 = vshll.u32 %v197_v40, 16  ;;  %v346_v62 = vshll.u32 %v5153_v9, 16  ;;  %v215_v28 = vld [vmem:[%s4483_s30 + $0x9c] sm:$0xf] }
  0xae   : > { %2751 = vrot.lane.b32.xlu1 %v3897_v34, %s4400_s11  ;;  %v550_v63 = vrot.slane %v548_v58, 5  ;;  %v339_v12 = vrot.slane %v337_v59, 4  ;;  %v350_v38 = vshrl.u32 %v5153_v9, 16  ;;  %v356_v45 = vshll.u32 %v5161_v52, 16  ;;  %v4287_v58 = vld [vmem:[%s4483_s30 + $0x70] sm:$0xf] }
  0xaf   : > { %v536_v4 = vrot.slane %v535_v60, 4  ;;  %v545_v39 = vor.u32 %v544_v13, %v540_v56  ;;  %v342_v8 = vrot.slane %v340_v61, 5  ;;  %v348_v14 = vrot.slane %v346_v62, 5  ;;  %v5172_v20 = vpop.permute.xlu1 %2333  ;;  %v4288_v59 = vld [vmem:[%s4483_s30 + $0x6c] sm:$0xf] }
  0xb0   : > { %2735 = vrot.lane.b32.xlu0 %v3889_v31, %s4400_s11  ;;  %v352_v22 = vrot.slane %v350_v38, 4  ;;  %v3760_v17 = vcombine.low %v4284_v29, %v4283_v23  ;;  %v5177_v46 = vpop.permute.xlu0 %2155  ;;  %v358_v33 = vrot.slane %v356_v45, 5  ;;  %v3754_v27 = vrot.slane %v3738_v15, 9  ;;  %v5209_v13 = vld [vmem:[%s4483_s30 + $0xa0] sm:$0xf] }
  0xb1   : > { %v541_v19 = vsel %vm4572_vm5, %v536_v4, %v540_v56  ;;  %v546_v32 = vrot.slane %v545_v39, 4  ;;  %v343_v24 = vor.u32 %v342_v8, %v339_v12  ;;  %v3759_v1 = vcombine.low %v4286_v41, %v4285_v5  ;;  %v4289_v45 = vld [vmem:[%s4483_s30 + $0x64] sm:$0xf]  ;;  %v4290_v4 = vld [vmem:[%s4483_s30 + $0x60] sm:$0xf] }
  0xb2   : > { %v353_v18 = vor.u32 %v352_v22, %v348_v14  ;;  %v1994_v49 = vrot.slane %v5048_v55, 5  ;;  %v5189_v44 = vsel %vm2763_vm6, %v3760_v17, %v5125_v25  ;;  %v1997_v26 = vrot.slane %v5092_v51, 5  ;;  %v199_v8 = vld [vmem:[%s4483_s30 + $0x3c] sm:$0xf]  ;;  %v5228_v17 = vld [vmem:[%s4483_s30 + $0x40] sm:$0xf] }
  0xb3   : > { %v551_v42 = vsel %vm4572_vm5, %v546_v32, %v550_v63  ;;  %v344_v35 = vrot.slane %v343_v24, 4  ;;  %v5195_v43 = vpop.permute.xlu1 %2411  ;;  %v3746_v31 = vrot.slane %v3730_v36, 9  ;;  %v1938_v25 = vrot.slane %v5064_v2, 5  ;;  %v5214_v63 = vld [vmem:[%s4483_s30 + $0xa4] sm:$0x1] }
  0xb4   : > { %v3787_v40 = vcombine.low %v541_v19, %v551_v42  ;;  %v354_v57 = vrot.slane %v353_v18, 4  ;;  %v5193_v34 = vpop.permute.xlu0 %2317  ;;  %v1995_v48 = vsel %vm4514_vm2, %v3754_v27, %v1994_v49  ;;  %v1996_v0 = vrot.slane %v1994_v49, 4 }
  0xb5   : > { %v349_v55 = vsel %vm4572_vm5, %v344_v35, %v348_v14  ;;  %v1941_v56 = vrot.slane %v5107_v50, 5  ;;  %v3768_v60 = vcombine.low %v4288_v59, %v4287_v58  ;;  %v553_v12 = vshrl.u32 %v215_v28, 16 }
  0xb6   : > { %2163 = vrot.lane.b32.xlu1 %v3787_v40, %s4395_s6  ;;  %v359_v51 = vsel %vm4572_vm5, %v354_v57, %v358_v33  ;;  %v1998_v62 = vsel %vm4514_vm2, %v1996_v0, %v1997_v26  ;;  %v1939_v2 = vsel %vm4514_vm2, %v3746_v31, %v1938_v25  ;;  %v1940_v50 = vrot.slane %v1938_v25, 4  ;;  %v5238_v33 = vld [vmem:[%s4483_s30 + $0x44] sm:$0x1] }
  0xb7   : > { %v3779_v61 = vcombine.low %v349_v55, %v359_v51  ;;  %v3898_v38 = vcombine.low %v1995_v48, %v1998_v62  ;;  %v3767_v39 = vcombine.low %v4290_v4, %v4289_v45  ;;  %v2766_v15 = vsel %vm2763_vm6, %v3759_v1, %v5155_v37 }
  0xb8   : > { %v5221_v14 = vpop.permute.xlu0 %2395  ;;  %v555_v22 = vrot.slane %v553_v12, 4  ;;  %v556_v23 = vshll.u32 %v215_v28, 16  ;;  %v562_v29 = vshll.u32 %v5209_v13, 16  ;;  %v1942_v19 = vsel %vm4514_vm2, %v1940_v50, %v1941_v56 }
  0xb9   : > { %2147 = vrot.lane.b32.xlu0 %v3779_v61, %s4395_s6  ;;  %v2793_v32 = vsel %vm2763_vm6, %v3768_v60, %v5163_v10  ;;  %v566_v24 = vshrl.u32 %v5209_v13, 16  ;;  %v572_v18 = vshll.u32 %v5214_v63, 16  ;;  %v3890_v27 = vcombine.low %v1939_v2, %v1942_v19 }
  0xba   : > { %2753 = vrot.lane.b32.xlu1 %v3898_v38, %s4400_s11  ;;  %v5240_v37 = vpop.permute.xlu1 %2413  ;;  %v558_v36 = vrot.slane %v556_v23, 5  ;;  %v564_v42 = vrot.slane %v562_v29, 5  ;;  %v361_v35 = vshrl.u32 %v199_v8, 16  ;;  %v2790_v5 = vsel %vm2763_vm6, %v3767_v39, %v5177_v46  ;;  %v636_v46 = vld [vmem:[%s4483_s30 + $0x90] sm:$0xe] }
  0xbb   : > { %v568_v41 = vrot.slane %v566_v24, 4  ;;  %v364_v1 = vshll.u32 %v199_v8, 16  ;;  %v370_v10 = vshll.u32 %v5228_v17, 16  ;;  %v374_v26 = vshrl.u32 %v5228_v17, 16  ;;  %v628_v38 = vld [vmem:[%s4483_s30 + $0x30] sm:$0xe] }
  0xbc   : > { %v5245_v49 = vpop.permute.xlu0 %2397  ;;  %v559_v40 = vor.u32 %v558_v36, %v555_v22  ;;  %v363_v57 = vrot.slane %v361_v35, 4  ;;  %v380_v28 = vshll.u32 %v5238_v33, 16  ;;  %v574_v48 = vrot.slane %v572_v18, 5 }
  0xbd   : > { %2737 = vrot.lane.b32.xlu0 %v3890_v27, %s4400_s11  ;;  %v569_v55 = vor.u32 %v568_v41, %v564_v42  ;;  %v366_v0 = vrot.slane %v364_v1, 5  ;;  %v372_v31 = vrot.slane %v370_v10, 5  ;;  %v2814_v25 = vsel %vm2812_vm7, %v2766_v15, %v5095_v53  ;;  %v629_v1 = vld [vmem:[%s4483_s30 + $0x3c] sm:$0xe] }
  0xbe   : > { %v5251_v51 = vpop.permute.xlu1 %2491  ;;  %v2830_v56 = vsel %vm2812_vm7, %v2790_v5, %v5076_v16  ;;  %v560_v58 = vrot.slane %v559_v40, 4  ;;  %v376_v59 = vrot.slane %v374_v26, 4  ;;  %v382_v62 = vrot.slane %v380_v28, 5 }
  0xbf   : > { %v570_v60 = vrot.slane %v569_v55, 4  ;;  %v367_v61 = vor.u32 %v366_v0, %v363_v57  ;;  %v2832_v12 = vsel %vm2812_vm7, %v2793_v32, %v5100_v47  ;;  %v3595_v53 = vrot.slane %v636_v46, 9  ;;  %v5301_v57 = vld [vmem:[%s4483_s30 + $0x9c] sm:$0xf] }
  0xc0   : > { %v5260_v2 = vpop.permute.xlu0 %2475  ;;  %v565_v50 = vsel %vm4572_vm5, %v560_v58, %v564_v42  ;;  %v377_v45 = vor.u32 %v376_v59, %v372_v31  ;;  %v777_v39 = vrot.slane %v5135_v3, 5  ;;  %v780_v8 = vrot.slane %v5145_v54, 5  ;;  %v637_v42 = vld [vmem:[%s4483_s30 + $0x9c] sm:$0xe]  ;;  %v5319_v58 = vld [vmem:[%s4483_s30 + $0xa0] sm:$0xf] }
  0xc1   : > { %v575_v16 = vsel %vm4572_vm5, %v570_v60, %v574_v48  ;;  %v368_v4 = vrot.slane %v367_v61, 4  ;;  %v3587_v23 = vrot.slane %v628_v38, 9  ;;  %v721_v29 = vrot.slane %v5153_v9, 5  ;;  %v3607_v46 = vld [vmem:[%s4483_s30 + $0x3c] sm:$0xf] }
  0xc2   : > { %v5268_v15 = vpop.permute.xlu1 %2493  ;;  %v3788_v47 = vcombine.low %v565_v50, %v575_v16  ;;  %v378_v22 = vrot.slane %v377_v45, 4  ;;  %v778_v32 = vsel %vm4514_vm2, %v3595_v53, %v777_v39  ;;  %v779_v24 = vrot.slane %v777_v39, 4  ;;  %v5343_v16 = vld [vmem:[%s4483_s30 + $0x40] sm:$0xf] }
  0xc3   : > { %v373_v19 = vsel %vm4572_vm5, %v368_v4, %v372_v31  ;;  %v724_v3 = vrot.slane %v5161_v52, 5  ;;  %v2816_v9 = vsel %vm2812_vm7, %v5189_v44, %v5120_v11  ;;  %v722_v27 = vsel %vm4514_vm2, %v3587_v23, %v721_v29 }
  0xc4   : > { %v5276_v18 = vpop.permute.xlu0 %2477  ;;  %2165 = vrot.lane.b32.xlu1 %v3788_v47, %s4395_s6  ;;  %v383_v54 = vsel %vm4572_vm5, %v378_v22, %v382_v62  ;;  %v723_v36 = vrot.slane %v721_v29, 4  ;;  %v2865_v52 = vsel %vm2845_vm8, %v2832_v12, %v5172_v20  ;;  %v2849_v5 = vsel %vm2845_vm8, %v2816_v9, %v5193_v34  ;;  %v3625_v12 = vld [vmem:[%s4483_s30 + $0xa8] sm:$0xf]  ;;  %v5348_v47 = vld [vmem:[%s4483_s30 + $0xac] sm:$0xf] }
  0xc5   : > { %v3780_v35 = vcombine.low %v373_v19, %v383_v54  ;;  %v781_v41 = vsel %vm4514_vm2, %v779_v24, %v780_v8  ;;  %v2863_v44 = vsel %vm2845_vm8, %v2830_v56, %v5033_v7  ;;  %v3596_v34 = vrot.slane %v637_v42, 9  ;;  %v3609_v22 = vld [vmem:[%s4483_s30 + $0x48] sm:$0xf]  ;;  %v5355_v24 = vld [vmem:[%s4483_s30 + $0x4c] sm:$0xf] }
  0xc6   : > { %v5294_v10 = vpop.permute.xlu1 %2587  ;;  %v3803_v40 = vcombine.low %v778_v32, %v781_v41  ;;  %v725_v11 = vsel %vm4514_vm2, %v723_v36, %v724_v3  ;;  %v784_v26 = vrot.slane %v5209_v13, 5  ;;  %v787_v28 = vrot.slane %v5214_v63, 5  ;;  %v5373_v41 = vld [vmem:[%s4483_s30 + $0xa4] sm:$0x1] }
  0xc7   : > { %2149 = vrot.lane.b32.xlu0 %v3780_v35, %s4395_s6  ;;  %v3795_v20 = vcombine.low %v722_v27, %v725_v11  ;;  %v2847_v48 = vsel %vm2845_vm8, %v2814_v25, %v5070_v6  ;;  %v3588_v0 = vrot.slane %v629_v1, 9  ;;  %v728_v7 = vrot.slane %v5228_v17, 5 }
  0xc8   : > { %v5306_v55 = vpop.permute.xlu0 %2571  ;;  %2243 = vrot.lane.b32.xlu1 %v3803_v40, %s4394_s5  ;;  %v731_v31 = vrot.slane %v5238_v33, 5  ;;  %v2896_v56 = vsel %vm2878_vm9, %v2863_v44, %v5195_v43  ;;  %v785_v13 = vsel %vm4514_vm2, %v3596_v34, %v784_v26  ;;  %v786_v63 = vrot.slane %v784_v26, 4 }
  0xc9   : > { %v1144_v59 = vshrl.u32 %v5301_v57, 16  ;;  %v2880_v17 = vsel %vm2878_vm9, %v2847_v48, %v5221_v14  ;;  %v729_v33 = vsel %vm4514_vm2, %v3588_v0, %v728_v7  ;;  %v730_v25 = vrot.slane %v728_v7, 4 }
  0xca   : > { %v5322_v6 = vpop.permute.xlu1 %2589  ;;  %v1147_v43 = vshll.u32 %v5301_v57, 16  ;;  %v788_v60 = vsel %vm4514_vm2, %v786_v63, %v787_v28  ;;  %v2898_v61 = vsel %vm2878_vm9, %v2865_v52, %v5240_v37  ;;  %v2882_v62 = vsel %vm2878_vm9, %v2849_v5, %v5245_v49 }
  0xcb   : > { %2227 = vrot.lane.b32.xlu0 %v3795_v20, %s4394_s5  ;;  %v952_v14 = vshrl.u32 %v3607_v46, 16  ;;  %v3804_v50 = vcombine.low %v785_v13, %v788_v60  ;;  %v732_v45 = vsel %vm4514_vm2, %v730_v25, %v731_v31  ;;  %v1157_v53 = vshrl.u32 %v5319_v58, 16  ;;  %v5395_v25 = vld [vmem:[%s4483_s30 + $0xb0] sm:$0x1] }
  0xcc   : > { %v5337_v38 = vpop.permute.xlu0 %2573  ;;  %v955_v4 = vshll.u32 %v3607_v46, 16  ;;  %v3796_v39 = vcombine.low %v729_v33, %v732_v45  ;;  %v1146_v8 = vrot.slane %v1144_v59, 4  ;;  %v1149_v37 = vrot.slane %v1147_v43, 5 }
  0xcd   : > { %v3819_v49 = vcombine.low %v5301_v57, %v5319_v58  ;;  %2245 = vrot.lane.b32.xlu1 %v3804_v50, %s4394_s5  ;;  %v954_v29 = vrot.slane %v952_v14, 4  ;;  %v1168_v19 = vshrl.u32 %v3625_v12, 16  ;;  %v1171_v32 = vshll.u32 %v3625_v12, 16 }
  0xce   : > { %v5351_v23 = vpop.permute.xlu1 %2667  ;;  %v957_v3 = vrot.slane %v955_v4, 5  ;;  %v965_v54 = vshrl.u32 %v5343_v16, 16  ;;  %v3811_v9 = vcombine.low %v3607_v46, %v5343_v16  ;;  %v5362_v27 = vsel %vm2911_vm10, %v2896_v56, %v5251_v51  ;;  %v5377_v51 = vld [vmem:[%s4483_s30 + $0x44] sm:$0x1] }
  0xcf   : > { %2229 = vrot.lane.b32.xlu0 %v3796_v39, %s4394_s5  ;;  %v5368_v42 = vsel %vm2911_vm10, %v2880_v17, %v5260_v2  ;;  %v1170_v35 = vrot.slane %v1168_v19, 4  ;;  %v1181_v52 = vshrl.u32 %v5348_v47, 16  ;;  %v3820_v5 = vcombine.low %v3625_v12, %v5348_v47 }
  0xd0   : > { %v5364_v36 = vpop.permute.xlu0 %2651  ;;  %v1173_v1 = vrot.slane %v1171_v32, 5  ;;  %v976_v40 = vshrl.u32 %v3609_v22, 16  ;;  %v979_v11 = vshll.u32 %v3609_v22, 16  ;;  %v989_v44 = vshrl.u32 %v5355_v24, 16 }
  0xd1   : > { %2339 = vrot.lane.b32.xlu1 %v3819_v49, %s4393_s4  ;;  %v3812_v2 = vcombine.low %v3609_v22, %v5355_v24  ;;  %v5385_v20 = vsel %vm2911_vm10, %v2898_v61, %v5268_v15  ;;  %v1150_v34 = vor.u32 %v1149_v37, %v1146_v8  ;;  %v1153_v26 = vshll.u32 %v5319_v58, 16  ;;  %v5412_v22 = vld [vmem:[%s4483_s30 + $0x50] sm:$0x1] }
  0xd2   : > { %v5379_v57 = vpop.permute.xlu1 %2669  ;;  %v1159_v28 = vrot.slane %v1157_v53, 4  ;;  %v1163_v48 = vshll.u32 %v5373_v41, 16  ;;  %v958_v0 = vor.u32 %v957_v3, %v954_v29  ;;  %v961_v7 = vshll.u32 %v5343_v16, 16 }
  0xd3   : > { %2323 = vrot.lane.b32.xlu0 %v3811_v9, %s4393_s4  ;;  %v1151_v31 = vrot.slane %v1150_v34, 4  ;;  %v1155_v46 = vrot.slane %v1153_v26, 5  ;;  %v967_v56 = vrot.slane %v965_v54, 4  ;;  %v971_v13 = vshll.u32 %v5377_v51, 16 }
  0xd4   : > { %v5392_v63 = vpop.permute.xlu0 %2653  ;;  %v978_v15 = vrot.slane %v976_v40, 4  ;;  %v981_v59 = vrot.slane %v979_v11, 5  ;;  %v959_v17 = vrot.slane %v958_v0, 4  ;;  %v963_v33 = vrot.slane %v961_v7, 5  ;;  %v4254_v40 = vld [vmem:[%s6459_s1 + $0x20] ss:$0 sps:$4 sm:$0xff]  }
  0xd5   : > { %2341 = vrot.lane.b32.xlu1 %v3820_v5, %s4393_s4  ;;  %v5400_v43 = vsel %vm2911_vm10, %v2882_v62, %v5276_v18  ;;  %v1156_v60 = vsel %vm4572_vm5, %v1151_v31, %v1155_v46  ;;  %v1160_v61 = vor.u32 %v1159_v28, %v1155_v46  ;;  %v1165_v14 = vrot.slane %v1163_v48, 5  ;;  %v3659_v11 = vld [vmem:[%s4483_s30 + $0x9c] sm:$0xe]  ;;  %4163 = vmatprep.subr.msk.bf16.mxu0 %vm3119_vm12, %v4254_v40 }
  0xd6   : > { %v964_v12 = vsel %vm4572_vm5, %v959_v17, %v963_v33  ;;  %v968_v50 = vor.u32 %v967_v56, %v963_v33  ;;  %v973_v45 = vrot.slane %v971_v13, 5  ;;  %v1174_v53 = vor.u32 %v1173_v1, %v1170_v35  ;;  %v5407_v4 = vpop.permute.xlu1 %2747  ;;  %v3651_v48 = vld [vmem:[%s4483_s30 + $0x3c] sm:$0xe]  ;;  %4164 = vmatprep.subr.msk.bf16.mxu1 %vm3119_vm12, %v4254_v40 }
  0xd7   : > { %2325 = vrot.lane.b32.xlu0 %v3812_v2, %s4393_s4  ;;  %v1161_v39 = vrot.slane %v1160_v61, 4  ;;  %v1177_v18 = vshll.u32 %v5348_v47, 16  ;;  %v1183_v62 = vrot.slane %v1181_v52, 4  ;;  %v1187_v8 = vshll.u32 %v5395_v25, 16 }
  0xd8   : > { %v969_v37 = vrot.slane %v968_v50, 4  ;;  %v1175_v49 = vrot.slane %v1174_v53, 4  ;;  %v982_v29 = vor.u32 %v981_v59, %v978_v15  ;;  %v985_v19 = vshll.u32 %v5355_v24, 16  ;;  %v5417_v9 = vpop.permute.xlu0 %2731  ;;  %v3660_v50 = vld [vmem:[%s4483_s30 + $0xa8] sm:$0xe] }
  0xd9   : > { %v1166_v32 = vsel %vm4572_vm5, %v1161_v39, %v1165_v14  ;;  %v1179_v3 = vrot.slane %v1177_v18, 5  ;;  %v991_v54 = vrot.slane %v989_v44, 4  ;;  %v1189_v26 = vrot.slane %v1187_v8, 5  ;;  %v3652_v8 = vld [vmem:[%s4483_s30 + $0x48] sm:$0xe] }
  0xda   : > { %v3835_v35 = vcombine.low %v1156_v60, %v1166_v32  ;;  %v974_v52 = vsel %vm4572_vm5, %v969_v37, %v973_v45  ;;  %v983_v5 = vrot.slane %v982_v29, 4  ;;  %v987_v1 = vrot.slane %v985_v19, 5  ;;  %v4256_v37 = vld [vmem:[%s6459_s1 + $0x10] sm:$0xff]  }
  0xdb   : > { %v3827_v2 = vcombine.low %v964_v12, %v974_v52  ;;  %v1184_v34 = vor.u32 %v1183_v62, %v1179_v3  ;;  %v995_v28 = vshll.u32 %v5412_v22, 16  ;;  %v2962_v44 = vsel %vm2944_vm11, %v5362_v27, %v5294_v10  ;;  %v4255_v10 = vld [vmem:[%s6459_s1 + $0x18] sm:$0xff]  }
  0xdc   : > { %2419 = vrot.lane.b32.xlu1 %v3835_v35, %s4396_s7  ;;  %v1180_v0 = vsel %vm4572_vm5, %v1175_v49, %v1179_v3  ;;  %v988_v7 = vsel %vm4572_vm5, %v983_v5, %v987_v1  ;;  %v992_v31 = vor.u32 %v991_v54, %v987_v1  ;;  %v3675_v15 = vrot.slane %v3659_v11, 9  ;;  %v5482_v1 = vld [vmem:[%s4483_s30 + $0x48] sm:$0xf] }
  0xdd   : > { %2403 = vrot.lane.b32.xlu0 %v3827_v2, %s4396_s7  ;;  %v1185_v56 = vrot.slane %v1184_v34, 4  ;;  %v997_v13 = vrot.slane %v995_v28, 5  ;;  %v1389_v59 = vrot.slane %v5319_v58, 5  ;;  %v1392_v17 = vrot.slane %v5373_v41, 5 }
  0xde   : > { %v5435_v46 = vpop.permute.xlu1 %2159  ;;  %v993_v27 = vrot.slane %v992_v31, 4  ;;  %v3667_v33 = vrot.slane %v3651_v48, 9  ;;  %v1333_v61 = vrot.slane %v5343_v16, 5  ;;  %v1336_v14 = vrot.slane %v5377_v51, 5 }
  0xdf   : > { %v1190_v60 = vsel %vm4572_vm5, %v1185_v56, %v1189_v26  ;;  %v3121_v12 = vsel %vm3119_vm12, %v4254_v40, 0  ;;  %v1390_v58 = vsel %vm4514_vm2, %v3675_v15, %v1389_v59  ;;  %v1391_v41 = vrot.slane %v1389_v59, 4  ;;  %v5533_v15 = vld [vmem:[%s4483_s30 + $0x54] sm:$0xf] }
  0xe0   : > { %v3836_v53 = vcombine.low %v1180_v0, %v1190_v60  ;;  %v998_v39 = vsel %vm4572_vm5, %v993_v27, %v997_v13  ;;  %4112 = vmatpush3.bf16.msra.mxu0 %v3121_v12  ;;  %4158 = vmatpush3.bf16.msra.mxu1 %v3121_v12  ;;  %v2946_v16 = vsel %vm2944_vm11, %v5368_v42, %v5306_v55  ;;  %v1335_v62 = vrot.slane %v1333_v61, 4 }
  0xe1   : > { %v5448_v45 = vpop.permute.xlu0 %2143  ;;  %v3828_v51 = vcombine.low %v988_v7, %v998_v39  ;;  %v1334_v18 = vsel %vm4514_vm2, %v3667_v33, %v1333_v61  ;;  %4113 = vmatprep.subr.bf16.mxu0 %v4255_v10  ;;  %4154 = vmatprep.subr.bf16.mxu1 %v4255_v10  ;;  %v2964_v49 = vsel %vm2944_vm11, %v5385_v20, %v5322_v6  ;;  %v3676_v42 = vrot.slane %v3660_v50, 9  ;;  %v5477_v6 = vld [vmem:[%s4483_s30 + $0xa8] sm:$0xf]  ;;  %v5520_v7 = vld [vmem:[%s4483_s30 + $0xb4] sm:$0xf] }
  0xe2   : > { %2421 = vrot.lane.b32.xlu1 %v3836_v53, %s4396_s7  ;;  %v1393_v55 = vsel %vm4514_vm2, %v1391_v41, %v1392_v17  ;;  %v5469_v29 = vpop.permute.xlu1 %2749  ;;  %v1337_v32 = vsel %vm4514_vm2, %v1335_v62, %v1336_v14  ;;  %v1396_v3 = vrot.slane %v5348_v47, 5  ;;  %v1399_v54 = vrot.slane %v5395_v25, 5  ;;  %v5547_v50 = vld [vmem:[%s4483_s30 + $0x58] sm:$0xf] }
  0xe3   : > { %2405 = vrot.lane.b32.xlu0 %v3828_v51, %s4396_s7  ;;  %v3851_v19 = vcombine.low %v1390_v58, %v1393_v55  ;;  %v3843_v20 = vcombine.low %v1334_v18, %v1337_v32  ;;  %v3668_v35 = vrot.slane %v3652_v8, 9  ;;  %v1340_v52 = vrot.slane %v5355_v24, 5  ;;  %v5494_v24 = vld [vmem:[%s4483_s30 + $0xac] sm:$0xf] }
  0xe4   : > { %v1343_v5 = vrot.slane %v5412_v22, 5  ;;  %4114 = vmatpush3.bf16.msra.mxu0 %v4255_v10  ;;  %4159 = vmatpush3.bf16.msra.mxu1 %v4255_v10  ;;  %v2948_v40 = vsel %vm2944_vm11, %v5400_v43, %v5337_v38  ;;  %v5489_v47 = vsel %vm2977_vm13, %v2962_v44, %v5351_v23  ;;  %v1397_v25 = vsel %vm4514_vm2, %v3676_v42, %v1396_v3  ;;  %v4259_v22 = vld [vmem:[%s6459_s1 + $0x8] sm:$0xff]  }
  0xe5   : > { %v1398_v11 = vrot.slane %v1396_v3, 4  ;;  %4115 = vmatprep.subr.bf16.mxu0 %v4256_v37  ;;  %4155 = vmatprep.subr.bf16.mxu1 %v4256_v37  ;;  %v5499_v2 = vpop.permute.xlu0 %2733  ;;  %v1341_v38 = vsel %vm4514_vm2, %v3668_v35, %v1340_v52  ;;  %v1342_v23 = vrot.slane %v1340_v52, 4  ;;  %v1756_v43 = vshrl.u32 %v5477_v6, 16  ;;  %v5516_v44 = vld [vmem:[%s4483_s30 + $0x4c] sm:$0xf] }
  0xe6   : > { %2499 = vrot.lane.b32.xlu1 %v3851_v19, %s4397_s8  ;;  %v1759_v34 = vshll.u32 %v5477_v6, 16  ;;  %v2979_v26 = vsel %vm2977_vm13, %v2946_v16, %v5364_v36  ;;  %v5513_v48 = vsel %vm2977_vm13, %v2964_v49, %v5379_v57  ;;  %v1564_v0 = vshrl.u32 %v5482_v1, 16  ;;  %v5530_v57 = vld [vmem:[%s4483_s30 + $0xb8] sm:$0xf] }
  0xe7   : > { %2483 = vrot.lane.b32.xlu0 %v3843_v20, %s4397_s8  ;;  %v1400_v28 = vsel %vm4514_vm2, %v1398_v11, %v1399_v54  ;;  %v1344_v56 = vsel %vm4514_vm2, %v1342_v23, %v1343_v5  ;;  %v5526_v36 = vsel %vm2977_vm13, %v2948_v40, %v5392_v63  ;;  %v1769_v13 = vshrl.u32 %v5494_v24, 16  ;;  %v4264_v63 = vld [vmem:[%s6459_s1] sm:$0xff]   ;;  %v5581_v5 = vld [vmem:[%s4483_s30 + $0x50] sm:$0x1] }
  0xe8   : > { %v3852_v31 = vcombine.low %v1397_v25, %v1400_v28  ;;  %4116 = vmatpush3.bf16.msra.mxu0 %v4256_v37  ;;  %4160 = vmatpush3.bf16.msra.mxu1 %v4256_v37  ;;  %v3844_v27 = vcombine.low %v1341_v38, %v1344_v56  ;;  %v1758_v59 = vrot.slane %v1756_v43, 4  ;;  %v3867_v17 = vcombine.low %v5477_v6, %v5494_v24  ;;  %v5561_v37 = vld [vmem:[%s4483_s30 + $0xb0] sm:$0x1]  ;;  %v4292_v25 = vld [vmem:[%s4483_s30 + $0x7c] sm:$0xf] }
  0xe9   : > { %v1567_v33 = vshll.u32 %v5482_v1, 16  ;;  %4117 = vmatprep.subr.bf16.mxu0 %v4259_v22  ;;  %4156 = vmatprep.subr.bf16.mxu1 %v4259_v22  ;;  %v1761_v60 = vrot.slane %v1759_v34, 5  ;;  %v1566_v61 = vrot.slane %v1564_v0, 4  ;;  %v1780_v14 = vshrl.u32 %v5520_v7, 16 }
  0xea   : > { %v5535_v10 = vpop.permute.xlu1 %2161  ;;  %2501 = vrot.lane.b32.xlu1 %v3852_v31, %s4397_s8  ;;  %v1783_v12 = vshll.u32 %v5520_v7, 16  ;;  %v1577_v53 = vshrl.u32 %v5516_v44, 16  ;;  %v3859_v39 = vcombine.low %v5482_v1, %v5516_v44  ;;  %v1793_v58 = vshrl.u32 %v5530_v57, 16  ;;  %v5597_v31 = vld [vmem:[%s4483_s30 + $0xbc] sm:$0x1] }
  0xeb   : > { %2485 = vrot.lane.b32.xlu0 %v3844_v27, %s4397_s8  ;;  %v1588_v41 = vshrl.u32 %v5533_v15, 16  ;;  %v1569_v51 = vrot.slane %v1567_v33, 5  ;;  %v1782_v18 = vrot.slane %v1780_v14, 4  ;;  %v3868_v62 = vcombine.low %v5520_v7, %v5530_v57 }
  0xec   : > { %v1591_v8 = vshll.u32 %v5533_v15, 16  ;;  %4118 = vmatpush3.bf16.msra.mxu0 %v4259_v22  ;;  %4161 = vmatpush3.bf16.msra.mxu1 %v4259_v22  ;;  %v1785_v55 = vrot.slane %v1783_v12, 5  ;;  %v1601_v42 = vshrl.u32 %v5547_v50, 16  ;;  %v3860_v32 = vcombine.low %v5533_v15, %v5547_v50 }
  0xed   : > { %v5555_v16 = vpop.permute.xlu0 %2145  ;;  %4119 = vmatprep.subr.bf16.mxu0 %v4264_v63  ;;  %4157 = vmatprep.subr.bf16.mxu1 %v4264_v63  ;;  %v5567_v19 = vrot.slane %v1588_v41, 4  ;;  %v3012_v3 = vsel %vm3010_vm14, %v2979_v26, %v5417_v9  ;;  %v3028_v54 = vsel %vm3010_vm14, %v5489_v47, %v5407_v4  ;;  %v1762_v6 = vor.u32 %v1761_v60, %v1758_v59  ;;  %v4291_v9 = vld [vmem:[%s4483_s30 + $0x78] sm:$0xf] }
  0xee   : > { %v5563_v49 = vpop.permute.xlu1 %2239  ;;  %2595 = vrot.lane.b32.xlu1 %v3867_v17, %s4398_s9  ;;  %4121 = vmatprep.mubr.msk.bf16.mxu0 %vm3086_vm15, %v3012_v3  ;;  %v1765_v20 = vshll.u32 %v5494_v24, 16  ;;  %v1771_v35 = vrot.slane %v1769_v13, 4  ;;  %v1775_v52 = vshll.u32 %v5561_v37, 16  ;;  %v1593_v40 = vrot.slane %v1591_v8, 5 }
  0xef   : > { %2579 = vrot.lane.b32.xlu0 %v3859_v39, %s4398_s9  ;;  %4137 = vmatprep.mubr.msk.bf16.mxu1 %vm3086_vm15, %v3028_v54  ;;  %v3769_v4 = vcombine.low %v4291_v9, %v4292_v25  ;;  %v1570_v47 = vor.u32 %v1569_v51, %v1566_v61  ;;  %v1573_v11 = vshll.u32 %v5516_v44, 16  ;;  %v1763_v38 = vrot.slane %v1762_v6, 4  ;;  %v4293_v51 = vld [vmem:[%s4483_s30 + $0x18] sm:$0xf]  ;;  %v3731_v25 = vld [vmem:[%s4483_s30 + $0x48] sm:$0xe] }
  0xf0   : > { %4120 = vmatpush3.bf16.msra.mxu0 %v4264_v63  ;;  %v1767_v23 = vrot.slane %v1765_v20, 5  ;;  %v1777_v43 = vrot.slane %v1775_v52, 5  ;;  %v1579_v34 = vrot.slane %v1577_v53, 4  ;;  %4162 = vmatpush3.bf16.msra.mxu1 %v4264_v63  ;;  %v1583_v0 = vshll.u32 %v5581_v5, 16  ;;  %v5611_v63 = vld [vmem:[%s4483_s30 + $0x5c] sm:$0x1] }
  0xf1   : > { %v5583_v1 = vpop.permute.xlu0 %2223  ;;  %v1571_v26 = vrot.slane %v1570_v47, 4  ;;  %v1575_v28 = vrot.slane %v1573_v11, 5  ;;  %v3030_v7 = vsel %vm3010_vm14, %v5513_v48, %v5469_v29  ;;  %v3014_v15 = vsel %vm3010_vm14, %v5526_v36, %v5499_v2 }
  0xf2   : > { %v5589_v22 = vpop.permute.xlu1 %2241  ;;  %2597 = vrot.lane.b32.xlu1 %v3868_v62, %s4398_s9  ;;  %v1768_v56 = vsel %vm4572_vm5, %v1763_v38, %v1767_v23  ;;  %v1772_v13 = vor.u32 %v1771_v35, %v1767_v23  ;;  %v1786_v27 = vor.u32 %v1785_v55, %v1782_v18  ;;  %v1585_v48 = vrot.slane %v1583_v0, 5  ;;  %v4294_v18 = vld [vmem:[%s4483_s30 + $0x1c] sm:$0xf] }
  0xf3   : > { %2581 = vrot.lane.b32.xlu0 %v3860_v32, %s4398_s9  ;;  %v1576_v17 = vsel %vm4572_vm5, %v1571_v26, %v1575_v28  ;;  %v1580_v29 = vor.u32 %v1579_v34, %v1575_v28  ;;  %v1789_v33 = vshll.u32 %v5530_v57, 16  ;;  %4122 = vmatmul.mubr.msk.bf16.vlgmr.msra.gmra.mxu0 %vm3086_vm15, %v3014_v15  ;;  %v1795_v61 = vrot.slane %v1793_v58, 4  ;;  %v3739_v32 = vld [vmem:[%s4483_s30 + $0xa8] sm:$0xe] }
  0xf4   : > { %4138 = vmatmul.mubr.msk.bf16.vlgmr.msra.gmra.mxu1 %vm3086_vm15, %v3030_v7  ;;  %v1773_v36 = vrot.slane %v1772_v13, 4  ;;  %v1787_v60 = vrot.slane %v1786_v27, 4  ;;  %v1799_v14 = vshll.u32 %v5597_v31, 16  ;;  %v1594_v39 = vor.u32 %v1593_v40, %v5567_v19 }
  0xf5   : > { %v5605_v59 = vpop.permute.xlu0 %2225  ;;  %v1581_v12 = vrot.slane %v1580_v29, 4  ;;  %v1791_v53 = vrot.slane %v1789_v33, 5  ;;  %v1597_v41 = vshll.u32 %v5547_v50, 16  ;;  %v3761_v62 = vcombine.low %v4293_v51, %v4294_v18  ;;  %v4298_v33 = vld [vmem:[%s4483_s30 + $0x28] sm:$0xf] }
  0xf6   : > { %v5615_v2 = vpop.permute.xlu1 %2335  ;;  %v1778_v8 = vsel %vm4572_vm5, %v1773_v36, %v1777_v43  ;;  %v1603_v55 = vrot.slane %v1601_v42, 4  ;;  %v1607_v58 = vshll.u32 %v5611_v63, 16  ;;  %v1801_v20 = vrot.slane %v1799_v14, 5  ;;  %v5669_v14 = vld [vmem:[%s4483_s30 + $0xac] sm:$0xf] }
  0xf7   : > { %v3883_v54 = vcombine.low %v1768_v56, %v1778_v8  ;;  %v1586_v19 = vsel %vm4572_vm5, %v1581_v12, %v1585_v48  ;;  %v1796_v6 = vor.u32 %v1795_v61, %v1791_v53  ;;  %v1595_v40 = vrot.slane %v1594_v39, 4  ;;  %v217_v56 = vld [vmem:[%s4483_s30 + $0xa8] sm:$0xf]  ;;  %v4297_v48 = vld [vmem:[%s4483_s30 + $0x24] sm:$0xf] }
  0xf8   : > { %v3875_v52 = vcombine.low %v1576_v17, %v1586_v19  ;;  %v1599_v9 = vrot.slane %v1597_v41, 5  ;;  %v5639_v42 = vsel %vm2763_vm6, %v3769_v4, %v5435_v46  ;;  %v1792_v47 = vsel %vm4572_vm5, %v1787_v60, %v1791_v53  ;;  %v4296_v17 = vld [vmem:[%s4483_s30 + $0x88] sm:$0xf]  ;;  %v5677_v39 = vld [vmem:[%s4483_s30 + $0xb0] sm:$0x1] }
  0xf9   : > { %v5630_v3 = vpop.permute.xlu0 %2319  ;;  %2675 = vrot.lane.b32.xlu1 %v3883_v54, %s4399_s10  ;;  %v1797_v11 = vrot.slane %v1796_v6, 4  ;;  %v3755_v38 = vrot.slane %v3739_v32, 9  ;;  %v1609_v43 = vrot.slane %v1607_v58, 5  ;;  %v2001_v34 = vrot.slane %v5494_v24, 5  ;;  %v201_v18 = vld [vmem:[%s4483_s30 + $0x48] sm:$0xf] }
  0xfa   : > { %v5634_v35 = vpop.permute.xlu1 %2337  ;;  %2659 = vrot.lane.b32.xlu0 %v3875_v52, %s4399_s10  ;;  %v1604_v23 = vor.u32 %v1603_v55, %v1599_v9  ;;  %v2004_v26 = vrot.slane %v5561_v37, 5  ;;  %v5651_v4 = vsel %vm2763_vm6, %v3761_v62, %v5448_v45  ;;  %v1600_v0 = vsel %vm4572_vm5, %v1595_v40, %v1599_v9  ;;  %v4295_v45 = vld [vmem:[%s4483_s30 + $0x84] sm:$0xf]  ;;  %v5687_v6 = vld [vmem:[%s4483_s30 + $0x4c] sm:$0xf] }
  0xfb   : > { %v1802_v28 = vsel %vm4572_vm5, %v1797_v11, %v1801_v20  ;;  %v3747_v7 = vrot.slane %v3731_v25, 9  ;;  %v2002_v37 = vsel %vm4514_vm2, %v3755_v38, %v2001_v34  ;;  %v2003_v15 = vrot.slane %v2001_v34, 4  ;;  %v5700_v25 = vld [vmem:[%s4483_s30 + $0x50] sm:$0x1] }
  0xfc   : > { %v3884_v24 = vcombine.low %v1792_v47, %v1802_v28  ;;  %v1605_v13 = vrot.slane %v1604_v23, 4  ;;  %v3770_v29 = vcombine.low %v4295_v45, %v4296_v17  ;;  %v3762_v36 = vcombine.low %v4297_v48, %v4298_v33  ;;  %v3732_v33 = vld [vmem:[%s4483_s30 + $0x54] sm:$0xe] }
  0xfd   : > { %v5647_v46 = vpop.permute.xlu0 %2321  ;;  %v1945_v60 = vrot.slane %v5516_v44, 5  ;;  %v1948_v61 = vrot.slane %v5581_v5, 5  ;;  %v2005_v53 = vsel %vm4514_vm2, %v2003_v15, %v2004_v26  ;;  %v577_v41 = vshrl.u32 %v217_v56, 16 }
  0xfe   : > { %2677 = vrot.lane.b32.xlu1 %v3884_v24, %s4399_s10  ;;  %v1610_v12 = vsel %vm4572_vm5, %v1605_v13, %v1609_v43  ;;  %v580_v51 = vshll.u32 %v217_v56, 16  ;;  %v3899_v62 = vcombine.low %v2002_v37, %v2005_v53  ;;  %v586_v54 = vshll.u32 %v5669_v14, 16  ;;  %v3740_v37 = vld [vmem:[%s4483_s30 + $0xb4] sm:$0xe] }
  0xff   : > { %v5660_v27 = vpop.permute.xlu1 %2415  ;;  %v3876_v5 = vcombine.low %v1600_v0, %v1610_v12  ;;  %v1946_v8 = vsel %vm4514_vm2, %v3747_v7, %v1945_v60  ;;  %v1947_v55 = vrot.slane %v1945_v60, 4  ;;  %v579_v58 = vrot.slane %v577_v41, 4 }
 0x100   : > { %v582_v32 = vrot.slane %v580_v51, 5  ;;  %v590_v19 = vshrl.u32 %v5669_v14, 16  ;;  %v5694_v52 = vsel %vm2763_vm6, %v3770_v29, %v5535_v10  ;;  %v596_v9 = vshll.u32 %v5677_v39, 16 }
 0x101   : > { %v5680_v44 = vpop.permute.xlu0 %2399  ;;  %2661 = vrot.lane.b32.xlu0 %v3876_v5, %s4399_s10  ;;  %v1949_v40 = vsel %vm4514_vm2, %v1947_v55, %v1948_v61  ;;  %v385_v47 = vshrl.u32 %v201_v18, 16  ;;  %v588_v23 = vrot.slane %v586_v54, 5  ;;  %v388_v28 = vshll.u32 %v201_v18, 16  ;;  %v219_v5 = vld [vmem:[%s4483_s30 + $0xb4] sm:$0xf] }
 0x102   : > { %2755 = vrot.lane.b32.xlu1 %v3899_v62, %s4400_s11  ;;  %v3891_v11 = vcombine.low %v1946_v8, %v1949_v40  ;;  %v583_v38 = vor.u32 %v582_v32, %v579_v58  ;;  %v592_v43 = vrot.slane %v590_v19, 4  ;;  %v598_v10 = vrot.slane %v596_v9, 5 }
 0x103   : > { %v5689_v20 = vpop.permute.xlu1 %2417  ;;  %v387_v26 = vrot.slane %v385_v47, 4  ;;  %v394_v0 = vshll.u32 %v5687_v6, 16  ;;  %v398_v24 = vshrl.u32 %v5687_v6, 16  ;;  %v404_v13 = vshll.u32 %v5700_v25, 16 }
 0x104   : > { %v584_v7 = vrot.slane %v583_v38, 4  ;;  %v593_v56 = vor.u32 %v592_v43, %v588_v23  ;;  %v5713_v45 = vsel %vm2763_vm6, %v3762_v36, %v5555_v16  ;;  %v5719_v17 = vsel %vm2812_vm7, %v5639_v42, %v5563_v49 }
 0x105   : > { %v5703_v34 = vpop.permute.xlu0 %2401  ;;  %2739 = vrot.lane.b32.xlu0 %v3891_v11, %s4400_s11  ;;  %v390_v29 = vrot.slane %v388_v28, 5  ;;  %v396_v48 = vrot.slane %v394_v0, 5  ;;  %v5725_v60 = vsel %vm2812_vm7, %v5651_v4, %v5583_v1  ;;  %v400_v61 = vrot.slane %v398_v24, 4 }
 0x106   : > { %v589_v16 = vsel %vm4572_vm5, %v584_v7, %v588_v23  ;;  %v594_v36 = vrot.slane %v593_v56, 4  ;;  %v406_v41 = vrot.slane %v404_v13, 5  ;;  %v3756_v49 = vrot.slane %v3740_v37, 9  ;;  %v5755_v23 = vld [vmem:[%s4483_s30 + $0xbc] sm:$0x1] }
 0x107   : > { %v5709_v15 = vpop.permute.xlu1 %2495  ;;  %v391_v53 = vor.u32 %v390_v29, %v387_v26  ;;  %v2008_v42 = vrot.slane %v5530_v57, 5  ;;  %v401_v18 = vor.u32 %v400_v61, %v396_v48  ;;  %v2011_v1 = vrot.slane %v5597_v31, 5  ;;  %v5744_v31 = vld [vmem:[%s4483_s30 + $0xb8] sm:$0xf] }
 0x108   : > { %v599_v51 = vsel %vm4572_vm5, %v594_v36, %v598_v10  ;;  %v3748_v4 = vrot.slane %v3732_v33, 9  ;;  %v794_v57 = vrot.slane %v5677_v39, 5  ;;  %v1952_v19 = vrot.slane %v5547_v50, 5  ;;  %v5766_v37 = vld [vmem:[%s4483_s30 + $0x58] sm:$0xf] }
 0x109   : > { %v5729_v12 = vpop.permute.xlu0 %2479  ;;  %v3789_v8 = vcombine.low %v589_v16, %v599_v51  ;;  %v392_v55 = vrot.slane %v391_v53, 4  ;;  %v2009_v58 = vsel %vm4514_vm2, %v3756_v49, %v2008_v42  ;;  %v2010_v32 = vrot.slane %v2008_v42, 4  ;;  %v5773_v16 = vld [vmem:[%s4483_s30 + $0x5c] sm:$0x1] }
 0x10a   : > { %v402_v54 = vrot.slane %v401_v18, 4  ;;  %v1955_v40 = vrot.slane %v5611_v63, 5  ;;  %v738_v11 = vrot.slane %v5700_v25, 5  ;;  %v601_v50 = vshrl.u32 %v219_v5, 16  ;;  %v203_v63 = vld [vmem:[%s4483_s30 + $0x54] sm:$0xf] }
 0x10b   : > { %v5736_v62 = vpop.permute.xlu1 %2497  ;;  %2167 = vrot.lane.b32.xlu1 %v3789_v8, %s4395_s6  ;;  %v397_v47 = vsel %vm4572_vm5, %v392_v55, %v396_v48  ;;  %v2012_v38 = vsel %vm4514_vm2, %v2010_v32, %v2011_v1  ;;  %v1953_v26 = vsel %vm4514_vm2, %v3748_v4, %v1952_v19  ;;  %v1954_v28 = vrot.slane %v1952_v19, 4  ;;  %v630_v19 = vld [vmem:[%s4483_s30 + $0x48] sm:$0xe] }
 0x10c   : > { %v407_v43 = vsel %vm4572_vm5, %v402_v54, %v406_v41  ;;  %v3900_v10 = vcombine.low %v2009_v58, %v2012_v38  ;;  %v603_v56 = vrot.slane %v601_v50, 4  ;;  %v604_v24 = vshll.u32 %v219_v5, 16  ;;  %v638_v5 = vld [vmem:[%s4483_s30 + $0xa8] sm:$0xe] }
 0x10d   : > { %v5746_v9 = vpop.permute.xlu0 %2481  ;;  %v3781_v7 = vcombine.low %v397_v47, %v407_v43  ;;  %v610_v13 = vshll.u32 %v5744_v31, 16  ;;  %v1956_v29 = vsel %vm4514_vm2, %v1954_v28, %v1955_v40  ;;  %v614_v48 = vshrl.u32 %v5744_v31, 16 }
 0x10e   : > { %v620_v33 = vshll.u32 %v5755_v23, 16  ;;  %v409_v36 = vshrl.u32 %v203_v63, 16  ;;  %v3892_v53 = vcombine.low %v1953_v26, %v1956_v29  ;;  %v606_v41 = vrot.slane %v604_v24, 5  ;;  %v639_v29 = vld [vmem:[%s4483_s30 + $0xb4] sm:$0xe] }
 0x10f   : > { %v5762_v0 = vpop.permute.xlu1 %2591  ;;  %2151 = vrot.lane.b32.xlu0 %v3781_v7, %s4395_s6  ;;  %2757 = vrot.lane.b32.xlu1 %v3900_v10, %s4400_s11  ;;  %v612_v49 = vrot.slane %v610_v13, 5  ;;  %v412_v42 = vshll.u32 %v203_v63, 16  ;;  %v2836_v51 = vsel %vm2812_vm7, %v5694_v52, %v5589_v22  ;;  %v616_v18 = vrot.slane %v614_v48, 4 }
 0x110   : > { %v411_v1 = vrot.slane %v409_v36, 4  ;;  %v418_v4 = vshll.u32 %v5766_v37, 16  ;;  %v607_v55 = vor.u32 %v606_v41, %v603_v56  ;;  %v422_v32 = vshrl.u32 %v5766_v37, 16 }
 0x111   : > { %v5775_v61 = vpop.permute.xlu0 %2575  ;;  %v414_v58 = vrot.slane %v412_v42, 5  ;;  %v428_v54 = vshll.u32 %v5773_v16, 16  ;;  %v2820_v40 = vsel %vm2812_vm7, %v5713_v45, %v5605_v59  ;;  %v617_v47 = vor.u32 %v616_v18, %v612_v49 }
 0x112   : > { %v622_v22 = vrot.slane %v620_v33, 5  ;;  %v420_v52 = vrot.slane %v418_v4, 5  ;;  %v608_v38 = vrot.slane %v607_v55, 4  ;;  %v424_v63 = vrot.slane %v422_v32, 4 }
 0x113   : > { %v5784_v8 = vpop.permute.xlu1 %2593  ;;  %2741 = vrot.lane.b32.xlu0 %v3892_v53, %s4400_s11  ;;  %v415_v50 = vor.u32 %v414_v58, %v411_v1  ;;  %v430_v43 = vrot.slane %v428_v54, 5  ;;  %v618_v26 = vrot.slane %v617_v47, 4  ;;  %v3597_v28 = vrot.slane %v638_v5, 9 }
 0x114   : > { %v791_v7 = vrot.slane %v5669_v14, 5  ;;  %v3589_v56 = vrot.slane %v630_v19, 9  ;;  %v613_v59 = vsel %vm4572_vm5, %v608_v38, %v612_v49  ;;  %v425_v24 = vor.u32 %v424_v63, %v420_v52  ;;  %v3627_v19 = vld [vmem:[%s4483_s30 + $0xb4] sm:$0xf] }
 0x115   : > { %v5793_v10 = vpop.permute.xlu0 %2577  ;;  %v416_v45 = vrot.slane %v415_v50, 4  ;;  %v735_v13 = vrot.slane %v5687_v6, 5  ;;  %v2867_v48 = vsel %vm2845_vm8, %v5719_v17, %v5615_v2  ;;  %v623_v33 = vsel %vm4572_vm5, %v618_v26, %v622_v22  ;;  %v631_v2 = vld [vmem:[%s4483_s30 + $0x54] sm:$0xe]  ;;  %v5862_v26 = vld [vmem:[%s4483_s30 + $0x58] sm:$0xf] }
 0x116   : > { %v792_v14 = vsel %vm4514_vm2, %v3597_v28, %v791_v7  ;;  %v793_v36 = vrot.slane %v791_v7, 4  ;;  %v2851_v41 = vsel %vm2845_vm8, %v5725_v60, %v5630_v3  ;;  %v3790_v49 = vcombine.low %v613_v59, %v623_v33  ;;  %v3629_v7 = vld [vmem:[%s4483_s30 + $0xc0] sm:$0xf] }
 0x117   : > { %v421_v6 = vsel %vm4572_vm5, %v416_v45, %v420_v52  ;;  %v426_v42 = vrot.slane %v425_v24, 4  ;;  %v736_v18 = vsel %vm4514_vm2, %v3589_v56, %v735_v13  ;;  %v737_v1 = vrot.slane %v735_v13, 4  ;;  %v5840_v52 = vld [vmem:[%s4483_s30 + $0x54] sm:$0xf] }
 0x118   : > { %v5807_v53 = vpop.permute.xlu1 %2671  ;;  %v795_v17 = vsel %vm4514_vm2, %v793_v36, %v794_v57  ;;  %v3598_v4 = vrot.slane %v639_v29, 9  ;;  %2169 = vrot.lane.b32.xlu1 %v3790_v49, %s4395_s6  ;;  %v798_v5 = vrot.slane %v5744_v31, 5  ;;  %v801_v55 = vrot.slane %v5755_v23, 5 }
 0x119   : > { %v431_v3 = vsel %vm4572_vm5, %v426_v42, %v430_v43  ;;  %v3805_v60 = vcombine.low %v792_v14, %v795_v17  ;;  %v5826_v39 = vpop.permute.xlu0 %2655  ;;  %v739_v58 = vsel %vm4514_vm2, %v737_v1, %v738_v11  ;;  %v3590_v32 = vrot.slane %v631_v2, 9  ;;  %v3613_v14 = vld [vmem:[%s4483_s30 + $0x60] sm:$0xf]  ;;  %v5898_v1 = vld [vmem:[%s4483_s30 + $0xbc] sm:$0x1] }
 0x11a   : > { %v3782_v57 = vcombine.low %v421_v6, %v431_v3  ;;  %v742_v54 = vrot.slane %v5766_v37, 5  ;;  %v2869_v47 = vsel %vm2845_vm8, %v2836_v51, %v5634_v35  ;;  %v799_v31 = vsel %vm4514_vm2, %v3598_v4, %v798_v5  ;;  %v5848_v51 = vld [vmem:[%s4483_s30 + $0xb8] sm:$0xf]  ;;  %v5885_v6 = vld [vmem:[%s4483_s30 + $0x64] sm:$0xf] }
 0x11b   : > { %v800_v23 = vrot.slane %v798_v5, 4  ;;  %v745_v22 = vrot.slane %v5773_v16, 5  ;;  %v2853_v25 = vsel %vm2845_vm8, %v2820_v40, %v5647_v46  ;;  %v3797_v11 = vcombine.low %v736_v18, %v739_v58 }
 0x11c   : > { %2153 = vrot.lane.b32.xlu0 %v3782_v57, %s4395_s6  ;;  %v2900_v37 = vsel %vm2878_vm9, %v2867_v48, %v5660_v27  ;;  %v744_v35 = vrot.slane %v742_v54, 4  ;;  %v5850_v38 = vpop.permute.xlu1 %2673  ;;  %2247 = vrot.lane.b32.xlu1 %v3805_v60, %s4394_s5  ;;  %v743_v50 = vsel %vm4514_vm2, %v3590_v32, %v742_v54  ;;  %v1192_v63 = vshrl.u32 %v3627_v19, 16  ;;  %v5905_v57 = vld [vmem:[%s4483_s30 + $0x5c] sm:$0x1]  ;;  %s175_s6 = sand.u32 1, %s4375_s13  }
 0x11d   : > { %v802_v16 = vsel %vm4514_vm2, %v800_v23, %v801_v55  ;;  %v1195_v46 = vshll.u32 %v3627_v19, 16  ;;  %v2884_v40 = vsel %vm2878_vm9, %v2851_v41, %v5680_v44  ;;  %v1000_v28 = vshrl.u32 %v5840_v52, 16 }
 0x11e   : > { %v3806_v27 = vcombine.low %v799_v31, %v802_v16  ;;  %v746_v43 = vsel %vm4514_vm2, %v744_v35, %v745_v22  ;;  %v2902_v56 = vsel %vm2878_vm9, %v2869_v47, %v5689_v20  ;;  %v5870_v59 = vsel %vm2878_vm9, %v2853_v25, %v5703_v34  ;;  %v5874_v24 = vpop.permute.xlu0 %2657  ;;  %v5879_v20 = vld [vmem:[%s4483_s30 + $0xc4] sm:$0xf] }
 0x11f   : > { %v1205_v44 = vshrl.u32 %v5848_v51, 16  ;;  %v1003_v45 = vshll.u32 %v5840_v52, 16  ;;  %v3798_v13 = vcombine.low %v743_v50, %v746_v43  ;;  %v1194_v29 = vrot.slane %v1192_v63, 4  ;;  %v5918_v63 = vld [vmem:[%s4483_s30 + $0xc8] sm:$0x1] }
 0x120   : > { %2231 = vrot.lane.b32.xlu0 %v3797_v11, %s4394_s5  ;;  %v1197_v48 = vrot.slane %v1195_v46, 5  ;;  %v3821_v33 = vcombine.low %v3627_v19, %v5848_v51  ;;  %2249 = vrot.lane.b32.xlu1 %v3806_v27, %s4394_s5  ;;  %v1002_v34 = vrot.slane %v1000_v28, 4  ;;  %v1013_v36 = vshrl.u32 %v5862_v26, 16  ;;  %v5900_v4 = vpop.permute.xlu1 %2751 }
 0x121   : > { %v1216_v41 = vshrl.u32 %v3629_v7, 16  ;;  %v1219_v49 = vshll.u32 %v3629_v7, 16  ;;  %v1005_v42 = vrot.slane %v1003_v45, 5  ;;  %v3813_v2 = vcombine.low %v5840_v52, %v5862_v26 }
 0x122   : > { %v5891_v17 = vsel %vm2911_vm10, %v2900_v37, %v5709_v15  ;;  %v5895_v18 = vsel %vm2911_vm10, %v2884_v40, %v5729_v12  ;;  %v1229_v3 = vshrl.u32 %v5879_v20, 16  ;;  %v3822_v60 = vcombine.low %v3629_v7, %v5879_v20  ;;  %v5913_v23 = vpop.permute.xlu0 %2735 }
 0x123   : > { %v1024_v5 = vshrl.u32 %v3613_v14, 16  ;;  %v1027_v55 = vshll.u32 %v3613_v14, 16  ;;  %v1218_v15 = vrot.slane %v1216_v41, 4  ;;  %v1221_v58 = vrot.slane %v1219_v49, 5 }
 0x124   : > { %2233 = vrot.lane.b32.xlu0 %v3798_v13, %s4394_s5  ;;  %v1037_v32 = vshrl.u32 %v5885_v6, 16  ;;  %v3814_v12 = vcombine.low %v3613_v14, %v5885_v6  ;;  %2343 = vrot.lane.b32.xlu1 %v3821_v33, %s4393_s4  ;;  %v1198_v54 = vor.u32 %v1197_v48, %v1194_v29  ;;  %v1201_v19 = vshll.u32 %v5848_v51, 16 }
 0x125   : > { %v1207_v47 = vrot.slane %v1205_v44, 4  ;;  %v1211_v31 = vshll.u32 %v5898_v1, 16  ;;  %v1006_v22 = vor.u32 %v1005_v42, %v1002_v34  ;;  %v1009_v52 = vshll.u32 %v5862_v26, 16 }
 0x126   : > { %v1015_v25 = vrot.slane %v1013_v36, 4  ;;  %v1019_v11 = vshll.u32 %v5905_v57, 16  ;;  %v1026_v37 = vrot.slane %v1024_v5, 4  ;;  %v1029_v35 = vrot.slane %v1027_v55, 5  ;;  %v5933_v36 = vld [vmem:[%s4483_s30 + $0x68] sm:$0x1] }
 0x127   : > { %v1199_v16 = vrot.slane %v1198_v54, 4  ;;  %v1203_v50 = vrot.slane %v1201_v19, 5  ;;  %v5923_v46 = vsel %vm2911_vm10, %v2902_v56, %v5736_v62  ;;  %v1213_v40 = vrot.slane %v1211_v31, 5  ;;  %v3661_v54 = vld [vmem:[%s4483_s30 + $0xb4] sm:$0xe] }
 0x128   : > { %2327 = vrot.lane.b32.xlu0 %v3813_v2, %s4393_s4  ;;  %v1007_v27 = vrot.slane %v1006_v22, 4  ;;  %v1011_v43 = vrot.slane %v1009_v52, 5  ;;  %v5925_v28 = vpop.permute.xlu1 %2163  ;;  %2345 = vrot.lane.b32.xlu1 %v3822_v60, %s4393_s4  ;;  %v1021_v44 = vrot.slane %v1019_v11, 5  ;;  %v1222_v45 = vor.u32 %v1221_v58, %v1218_v15  ;;  %v3653_v22 = vld [vmem:[%s4483_s30 + $0x54] sm:$0xe] }
 0x129   : > { %v1208_v7 = vor.u32 %v1207_v47, %v1203_v50  ;;  %v1225_v13 = vshll.u32 %v5879_v20, 16  ;;  %v1204_v29 = vsel %vm4572_vm5, %v1199_v16, %v1203_v50  ;;  %v1231_v33 = vrot.slane %v1229_v3, 4 }
 0x12a   : > { %v1016_v48 = vor.u32 %v1015_v25, %v1011_v43  ;;  %v1235_v62 = vshll.u32 %v5918_v63, 16  ;;  %v1223_v14 = vrot.slane %v1222_v45, 4  ;;  %v1030_v41 = vor.u32 %v1029_v35, %v1026_v37 }
 0x12b   : > { %v1209_v56 = vrot.slane %v1208_v7, 4  ;;  %v1227_v34 = vrot.slane %v1225_v13, 5  ;;  %v5935_v49 = vpop.permute.xlu0 %2147  ;;  %v1012_v42 = vsel %vm4572_vm5, %v1007_v27, %v1011_v43  ;;  %v1033_v3 = vshll.u32 %v5885_v6, 16  ;;  %v3662_v7 = vld [vmem:[%s4483_s30 + $0xc0] sm:$0xe] }
 0x12c   : > { %2329 = vrot.lane.b32.xlu0 %v3814_v12, %s4393_s4  ;;  %v1017_v2 = vrot.slane %v1016_v48, 4  ;;  %v1039_v60 = vrot.slane %v1037_v32, 4  ;;  %v1237_v15 = vrot.slane %v1235_v62, 5  ;;  %v1031_v58 = vrot.slane %v1030_v41, 4  ;;  %v5948_v52 = vpop.permute.xlu1 %2753 }
 0x12d   : > { %v1214_v5 = vsel %vm4572_vm5, %v1209_v56, %v1213_v40  ;;  %v1232_v55 = vor.u32 %v1231_v33, %v1227_v34  ;;  %v1035_v31 = vrot.slane %v1033_v3, 5  ;;  %v1043_v12 = vshll.u32 %v5933_v36, 16  ;;  %v3654_v56 = vld [vmem:[%s4483_s30 + $0x60] sm:$0xe] }
 0x12e   : > { %v3837_v19 = vcombine.low %v1204_v29, %v1214_v5  ;;  %v1022_v47 = vsel %vm4572_vm5, %v1017_v2, %v1021_v44  ;;  %v2919_v32 = vsel %vm2911_vm10, %v5870_v59, %v5746_v9  ;;  %v1228_v11 = vsel %vm4572_vm5, %v1223_v14, %v1227_v34  ;;  %v3707_v5 = vld [vmem:[%s4483_s30 + $0xc0] sm:$0xf] }
 0x12f   : > { %v3829_v25 = vcombine.low %v1012_v42, %v1022_v47  ;;  %v1233_v37 = vrot.slane %v1232_v55, 4  ;;  %v1036_v35 = vsel %vm4572_vm5, %v1031_v58, %v1035_v31  ;;  %v1040_v16 = vor.u32 %v1039_v60, %v1035_v31  ;;  %v5964_v44 = vpop.permute.xlu0 %2737 }
 0x130   : > { %2423 = vrot.lane.b32.xlu1 %v3837_v19, %s4396_s7  ;;  %v1045_v50 = vrot.slane %v1043_v12, 5  ;;  %v3677_v40 = vrot.slane %v3661_v54, 9  ;;  %v1403_v9 = vrot.slane %v5848_v51, 5  ;;  %v1406_v59 = vrot.slane %v5898_v1, 5  ;;  %v5997_v54 = vld [vmem:[%s4483_s30 + $0x60] sm:$0xf] }
 0x131   : > { %2407 = vrot.lane.b32.xlu0 %v3829_v25, %s4396_s7  ;;  %v1238_v27 = vsel %vm4572_vm5, %v1233_v37, %v1237_v15  ;;  %v3669_v43 = vrot.slane %v3653_v22, 9  ;;  %v1041_v13 = vrot.slane %v1040_v16, 4  ;;  %v1347_v29 = vrot.slane %v5862_v26, 5  ;;  %v6016_v25 = vld [vmem:[%s4483_s30 + $0xc4] sm:$0xf] }
 0x132   : > { %v3838_v45 = vcombine.low %v1228_v11, %v1238_v27  ;;  %v1350_v48 = vrot.slane %v5905_v57, 5  ;;  %v2966_v33 = vsel %vm2944_vm11, %v5891_v17, %v5762_v0  ;;  %v2950_v51 = vsel %vm2944_vm11, %v5895_v18, %v5775_v61 }
 0x133   : > { %v1404_v1 = vsel %vm4514_vm2, %v3677_v40, %v1403_v9  ;;  %v1405_v62 = vrot.slane %v1403_v9, 4  ;;  %v1046_v26 = vsel %vm4572_vm5, %v1041_v13, %v1045_v50  ;;  %v1348_v57 = vsel %vm4514_vm2, %v3669_v43, %v1347_v29  ;;  %v6031_v40 = vld [vmem:[%s4483_s30 + $0x6c] sm:$0xf] }
 0x134   : > { %2425 = vrot.lane.b32.xlu1 %v3838_v45, %s4396_s7  ;;  %v1349_v14 = vrot.slane %v1347_v29, 4  ;;  %v3678_v0 = vrot.slane %v3662_v7, 9  ;;  %v3830_v61 = vcombine.low %v1036_v35, %v1046_v26  ;;  %v1410_v34 = vrot.slane %v5879_v20, 5  ;;  %v3709_v35 = vld [vmem:[%s4483_s30 + $0xcc] sm:$0xf] }
 0x135   : > { %v1407_v18 = vsel %vm4514_vm2, %v1405_v62, %v1406_v59  ;;  %v1413_v41 = vrot.slane %v5918_v63, 5  ;;  %v3670_v3 = vrot.slane %v3654_v56, 9  ;;  %v1354_v60 = vrot.slane %v5885_v6, 5  ;;  %v6039_v7 = vld [vmem:[%s4483_s30 + $0x64] sm:$0xf] }
 0x136   : > { %v5982_v17 = vpop.permute.xlu1 %2165  ;;  %v3853_v42 = vcombine.low %v1404_v1, %v1407_v18  ;;  %v1351_v2 = vsel %vm4514_vm2, %v1349_v14, %v1350_v48  ;;  %2409 = vrot.lane.b32.xlu0 %v3830_v61, %s4396_s7  ;;  %v1411_v15 = vsel %vm4514_vm2, %v3678_v0, %v1410_v34  ;;  %v1412_v58 = vrot.slane %v1410_v34, 4  ;;  %s3581_s7 = sshll.u32 %s175_s6, 7 }
 0x137   : > { %v3845_v55 = vcombine.low %v1348_v57, %v1351_v2  ;;  %v1357_v20 = vrot.slane %v5933_v36, 5  ;;  %v2968_v6 = vsel %vm2944_vm11, %v5923_v46, %v5784_v8  ;;  %v2952_v19 = vsel %vm2944_vm11, %v2919_v32, %v5793_v10 }
 0x138   : > { %2503 = vrot.lane.b32.xlu1 %v3853_v42, %s4397_s8  ;;  %v1355_v47 = vsel %vm4514_vm2, %v3670_v3, %v1354_v60  ;;  %v1356_v31 = vrot.slane %v1354_v60, 4  ;;  %v2999_v36 = vsel %vm2977_vm13, %v2966_v33, %v5807_v53  ;;  %v1414_v22 = vsel %vm4514_vm2, %v1412_v58, %v1413_v41  ;;  %v6050_v33 = vld [vmem:[%s4483_s30 + $0x70] sm:$0xf] }
 0x139   : > { %v5999_v63 = vpop.permute.xlu0 %2149  ;;  %v1804_v8 = vshrl.u32 %v3707_v5, 16  ;;  %v1807_v46 = vshll.u32 %v3707_v5, 16  ;;  %v2983_v10 = vsel %vm2977_vm13, %v2950_v51, %v5826_v39  ;;  %v3854_v32 = vcombine.low %v1411_v15, %v1414_v22 }
 0x13a   : > { %v6009_v12 = vpop.permute.xlu1 %2243  ;;  %v1358_v11 = vsel %vm4514_vm2, %v1356_v31, %v1357_v20  ;;  %v1612_v37 = vshrl.u32 %v5997_v54, 16  ;;  %2487 = vrot.lane.b32.xlu0 %v3845_v55, %s4397_s8  ;;  %v3001_v16 = vsel %vm2977_vm13, %v2968_v6, %v5850_v38  ;;  %v2985_v50 = vsel %vm2977_vm13, %v2952_v19, %v5874_v24  ;;  %v6044_v24 = vld [vmem:[%s4483_s30 + $0xd0] sm:$0xf]  ;;  %v6075_v55 = vld [vmem:[%s4483_s30 + $0x68] sm:$0x1] }
 0x13b   : > { %v3846_v53 = vcombine.low %v1355_v47, %v1358_v11  ;;  %v1615_v39 = vshll.u32 %v5997_v54, 16  ;;  %v1806_v9 = vrot.slane %v1804_v8, 4  ;;  %v1817_v59 = vshrl.u32 %v6016_v25, 16  ;;  %v6088_v11 = vld [vmem:[%s4483_s30 + $0xd4] sm:$0x1] }
 0x13c   : > { %2505 = vrot.lane.b32.xlu1 %v3854_v32, %s4397_s8  ;;  %v3869_v43 = vcombine.low %v3707_v5, %v6016_v25  ;;  %v3032_v38 = vsel %vm3010_vm14, %v2999_v36, %v5900_v4  ;;  %v1809_v45 = vrot.slane %v1807_v46, 5  ;;  %v3016_v13 = vsel %vm3010_vm14, %v2983_v10, %v5913_v23  ;;  %v6056_v4 = vld [vmem:[%s4483_s30 + $0xc8] sm:$0x1] }
 0x13d   : > { %v6033_v27 = vpop.permute.xlu0 %2227  ;;  %v1828_v29 = vshrl.u32 %v3709_v35, 16  ;;  %v1831_v48 = vshll.u32 %v3709_v35, 16  ;;  %4141 = vmatprep.mubr.msk.bf16.mxu1 %vm3086_vm15, %v3032_v38  ;;  %v1614_v51 = vrot.slane %v1612_v37, 4  ;;  %v1617_v1 = vrot.slane %v1615_v39, 5  ;;  %4125 = vmatprep.mubr.msk.bf16.mxu0 %vm3086_vm15, %v3016_v13 }
 0x13e   : > { %v1636_v62 = vshrl.u32 %v6031_v40, 16  ;;  %v1639_v56 = vshll.u32 %v6031_v40, 16  ;;  %2489 = vrot.lane.b32.xlu0 %v3846_v53, %s4397_s8  ;;  %v1625_v23 = vshrl.u32 %v6039_v7, 16  ;;  %v3861_v57 = vcombine.low %v5997_v54, %v6039_v7  ;;  %s6292_s8 = scalar_lea.vmem [#allocation2], %s3581_s7 }
 0x13f   : > { %v6058_v26 = vpop.permute.xlu1 %2245  ;;  %v1841_v14 = vshrl.u32 %v6044_v24, 16  ;;  %v3870_v0 = vcombine.low %v3709_v35, %v6044_v24  ;;  %v1830_v18 = vrot.slane %v1828_v29, 4  ;;  %v1833_v34 = vrot.slane %v1831_v48, 5 }
 0x140   : > { %2599 = vrot.lane.b32.xlu1 %v3869_v43, %s4398_s9  ;;  %v1649_v41 = vshrl.u32 %v6050_v33, 16  ;;  %v3862_v42 = vcombine.low %v6031_v40, %v6050_v33  ;;  %v1810_v2 = vor.u32 %v1809_v45, %v1806_v9  ;;  %v1813_v3 = vshll.u32 %v6016_v25, 16 }
 0x141   : > { %v6066_v61 = vpop.permute.xlu0 %2229  ;;  %v1819_v60 = vrot.slane %v1817_v59, 4  ;;  %v1823_v5 = vshll.u32 %v6056_v4, 16  ;;  %v1638_v15 = vrot.slane %v1636_v62, 4  ;;  %v1641_v58 = vrot.slane %v1639_v56, 5 }
 0x142   : > { %v1618_v20 = vor.u32 %v1617_v1, %v1614_v51  ;;  %v1621_v54 = vshll.u32 %v6039_v7, 16  ;;  %2583 = vrot.lane.b32.xlu0 %v3861_v57, %s4398_s9  ;;  %v1811_v19 = vrot.slane %v1810_v2, 4  ;;  %v1815_v47 = vrot.slane %v1813_v3, 5  ;;  %v3741_v57 = vld [vmem:[%s4483_s30 + $0xc0] sm:$0xe] }
 0x143   : > { %v6078_v6 = vpop.permute.xlu1 %2339  ;;  %v1825_v31 = vrot.slane %v1823_v5, 5  ;;  %v1627_v36 = vrot.slane %v1625_v23, 4  ;;  %v1631_v10 = vshll.u32 %v6075_v55, 16  ;;  %v3034_v32 = vsel %vm3010_vm14, %v3001_v16, %v5948_v52  ;;  %v6099_v52 = vld [vmem:[%s4483_s30 + $0x74] sm:$0x1] }
 0x144   : > { %2601 = vrot.lane.b32.xlu1 %v3870_v0, %s4398_s9  ;;  %v1619_v8 = vrot.slane %v1618_v20, 4  ;;  %v1623_v46 = vrot.slane %v1621_v54, 5  ;;  %v1816_v37 = vsel %vm4572_vm5, %v1811_v19, %v1815_v47  ;;  %v1820_v35 = vor.u32 %v1819_v60, %v1815_v47  ;;  %4142 = vmatmul.mubr.msk.bf16.gmra.mxu1 %vm3086_vm15, %v3034_v32  ;;  %v3733_v60 = vld [vmem:[%s4483_s30 + $0x60] sm:$0xe] }
 0x145   : > { %v6081_v22 = vpop.permute.xlu0 %2323  ;;  %v3018_v53 = vsel %vm3010_vm14, %v2985_v50, %v5964_v44  ;;  %v1834_v39 = vor.u32 %v1833_v34, %v1830_v18  ;;  %v1633_v59 = vrot.slane %v1631_v10, 5  ;;  %v1837_v43 = vshll.u32 %v6044_v24, 16 }
 0x146   : > { %v1624_v40 = vsel %vm4572_vm5, %v1619_v8, %v1623_v46  ;;  %v1628_v9 = vor.u32 %v1627_v36, %v1623_v46  ;;  %4126 = vmatmul.mubr.msk.bf16.gmra.mxu0 %vm3086_vm15, %v3018_v53  ;;  %2585 = vrot.lane.b32.xlu0 %v3862_v42, %s4398_s9  ;;  %v1821_v16 = vrot.slane %v1820_v35, 4  ;;  %v1843_v44 = vrot.slane %v1841_v14, 4  ;;  %v3742_v46 = vld [vmem:[%s4483_s30 + $0xcc] sm:$0xe]  ;;  %s3493_s9 = sshll.u32 %s6292_s8, 4  ;;  %s6406_s9 = int_to_ptr.vmem [resolvable:$true] %s3493_s9 }
 0x147   : > { %v1835_v38 = vrot.slane %v1834_v39, 4  ;;  %v1847_v50 = vshll.u32 %v6088_v11, 16  ;;  %v6104_v45 = vpop.permute.xlu1 %2341  ;;  %v1839_v29 = vrot.slane %v1837_v43, 5  ;;  %v1642_v48 = vor.u32 %v1641_v58, %v1638_v15  ;;  %v3734_v39 = vld [vmem:[%s4483_s30 + $0x6c] sm:$0xe]  ;;  %s4315_s26 = scalar_lea.vmem %s6406_s9, 2048  ;;  %p4322_p1 = scmp.lt.s32.totalorder %s6406_s9, %s4320_s28 }
 0x148   : > { %v1629_v13 = vrot.slane %v1628_v9, 4  ;;  %v1645_v51 = vshll.u32 %v6050_v33, 16  ;;  %v1826_v62 = vsel %vm4572_vm5, %v1821_v16, %v1825_v31  ;;  %v1651_v56 = vrot.slane %v1649_v41, 4  ;;  %p4316_p12 = scmp.ne.s32.totalorder %s6406_s9, %s4315_s26  ;;  %p4323_p2 = scmp.lt.s32.totalorder %s4321_s29, %s4315_s26 }
 0x149   : > { %v6107_v1 = vpop.permute.xlu0 %2325  ;;  %v1655_v23 = vshll.u32 %v6099_v52, 16  ;;  %v3885_v14 = vcombine.low %v1816_v37, %v1826_v62  ;;  %v1844_v18 = vor.u32 %v1843_v44, %v1839_v29  ;;  %v1849_v34 = vrot.slane %v1847_v50, 5 }
 0x14a   : > { %v1634_v0 = vsel %vm4572_vm5, %v1629_v13, %v1633_v59  ;;  %v1643_v2 = vrot.slane %v1642_v48, 4  ;;  %v1647_v3 = vrot.slane %v1645_v51, 5  ;;  %v1840_v5 = vsel %vm4572_vm5, %v1835_v38, %v1839_v29  ;;  %p4317_p13 = pnand %p4316_p12, %p4463_p4  ;;  %p4324_p3 = por %p4323_p2, %p4322_p1 }
 0x14b   : > { %v3877_v42 = vcombine.low %v1624_v40, %v1634_v0  ;;  %2679 = vrot.lane.b32.xlu1 %v3885_v14, %s4399_s10  ;;  %v1845_v41 = vrot.slane %v1844_v18, 4  ;;  %v3757_v15 = vrot.slane %v3741_v57, 9  ;;  %v1657_v20 = vrot.slane %v1655_v23, 5 }
 0x14c   : > { %v1652_v58 = vor.u32 %v1651_v56, %v1647_v3  ;;  %v2015_v54 = vrot.slane %v6016_v25, 5  ;;  %v2018_v19 = vrot.slane %v6056_v4, 5  ;;  %v1648_v36 = vsel %vm4572_vm5, %v1643_v2, %v1647_v3  ;;  %p4318_p0 = pneg %p4317_p13 }
 0x14d   : > { %2663 = vrot.lane.b32.xlu0 %v3877_v42, %s4399_s10  ;;  %v1850_v31 = vsel %vm4572_vm5, %v1845_v41, %v1849_v34  ;;  %v3749_v8 = vrot.slane %v3733_v60, 9  ;;  %v1959_v4 = vrot.slane %v6039_v7, 5  ;;  %v1962_v53 = vrot.slane %v6075_v55, 5  ;;  %v4299_v41 = vld [vmem:[%s4483_s30 + $0x90] sm:$0xf] }
 0x14e   : > { %v6122_v47 = vpop.permute.xlu1 %2419  ;;  %v3886_v32 = vcombine.low %v1840_v5, %v1850_v31  ;;  %v1653_v37 = vrot.slane %v1652_v58, 4  ;;  %v2016_v35 = vsel %vm4514_vm2, %v3757_v15, %v2015_v54  ;;  %v2017_v25 = vrot.slane %v2015_v54, 4  ;;  %v4300_v15 = vld [vmem:[%s4483_s30 + $0x94] sm:$0xf]  ;;  %p4325_p5 = pnand %p4324_p3, %p4318_p0 }
 0x14f   : > { %v6129_v10 = vpop.permute.xlu0 %2403  ;;  %v3758_v59 = vrot.slane %v3742_v46, 9  ;;  %v2022_v43 = vrot.slane %v6044_v24, 5  ;;  %v1960_v44 = vsel %vm4514_vm2, %v3749_v8, %v1959_v4  ;;  %v1961_v7 = vrot.slane %v1959_v4, 4  ;;  %v4302_v54 = vld [vmem:[%s4483_s30 + $0x34] sm:$0xf] }
 0x150   : > { %2681 = vrot.lane.b32.xlu1 %v3886_v32, %s4399_s10  ;;  %v1658_v40 = vsel %vm4572_vm5, %v1653_v37, %v1657_v20  ;;  %v2019_v9 = vsel %vm4514_vm2, %v2017_v25, %v2018_v19  ;;  %v2025_v13 = vrot.slane %v6088_v11, 5  ;;  %v3750_v30 = vrot.slane %v3734_v39, 9 }
 0x151   : > { %v3878_v16 = vcombine.low %v1648_v36, %v1658_v40  ;;  %v3901_v38 = vcombine.low %v2016_v35, %v2019_v9  ;;  %v2023_v55 = vsel %vm4514_vm2, %v3758_v59, %v2022_v43  ;;  %v2024_v50 = vrot.slane %v2022_v43, 4  ;;  %v4304_v9 = vld [vmem:[%s4483_s30 + $0xa0] sm:$0xf] }
 0x152   : > { %v1963_v24 = vsel %vm4514_vm2, %v1961_v7, %v1962_v53  ;;  %v1966_v48 = vrot.slane %v6050_v33, 5  ;;  %v1969_v51 = vrot.slane %v6099_v52, 5  ;;  %v3771_v58 = vcombine.low %v4299_v41, %v4300_v15  ;;  %v4306_v7 = vld [vmem:[%s4483_s30 + $0x40] sm:$0xf] }
 0x153   : > { %2665 = vrot.lane.b32.xlu0 %v3878_v16, %s4399_s10  ;;  %v3893_v56 = vcombine.low %v1960_v44, %v1963_v24  ;;  %v2026_v11 = vsel %vm4514_vm2, %v2024_v50, %v2025_v13  ;;  %v3763_v19 = vcombine.low %v4301_v21, %v4302_v54  ;;  %v4305_v44 = vld [vmem:[%s4483_s30 + $0x3c] sm:$0xf] }
 0x154   : > { %v6147_v29 = vpop.permute.xlu1 %2421  ;;  %2759 = vrot.lane.b32.xlu1 %v3901_v38, %s4400_s11  ;;  %v3902_v23 = vcombine.low %v2023_v55, %v2026_v11  ;;  %v1967_v57 = vsel %vm4514_vm2, %v3750_v30, %v1966_v48  ;;  %v1968_v14 = vrot.slane %v1966_v48, 4  ;;  %v2802_v36 = vsel %vm2763_vm6, %v3771_v58, %v5925_v28 }
 0x155   : > { %v6154_v62 = vpop.permute.xlu0 %2405  ;;  %v2838_v8 = vsel %vm2812_vm7, %v2802_v36, %v6009_v12  ;;  %v2778_v37 = vsel %vm2763_vm6, %v3763_v19, %v5935_v49  ;;  %v3764_v55 = vcombine.low %v4305_v44, %v4306_v7 }
 0x156   : > { %v1970_v33 = vsel %vm4514_vm2, %v1968_v14, %v1969_v51  ;;  %v2871_v46 = vsel %vm2845_vm8, %v2838_v8, %v6078_v6  ;;  %v2822_v25 = vsel %vm2812_vm7, %v2778_v37, %v6033_v27 }
 0x157   : > { %2743 = vrot.lane.b32.xlu0 %v3893_v56, %s4400_s11  ;;  %v3894_v18 = vcombine.low %v1967_v57, %v1970_v33  ;;  %v2904_v35 = vsel %vm2878_vm9, %v2871_v46, %v6122_v47  ;;  %v2855_v12 = vsel %vm2845_vm8, %v2822_v25, %v6081_v22  ;;  %v4303_v22 = vld [vmem:[%s4483_s30 + $0x9c] sm:$0xf]  ;;  %v2781_v48 = vsel %vm2763_vm6, %v3764_v55, %v5999_v63  ;;  %v6271_v46 = vld [vmem:[%s6460_s2] ss:$0 sm:$0xff] }
 0x158   : > { %v2500_v0 = vpop.permute.xlu1 %2499  ;;  %2761 = vrot.lane.b32.xlu1 %v3902_v23, %s4400_s11  ;;  %v2888_v53 = vsel %vm2878_vm9, %v2855_v12, %v6129_v10  ;;  %v3772_v59 = vcombine.low %v4303_v22, %v4304_v9 }
 0x159   : > { %v2484_v52 = vpop.permute.xlu0 %2483  ;;  %v2937_v28 = vsel %vm2911_vm10, %v2904_v35, %v2500_v0 }
 0x15a   : > { %v2921_v47 = vsel %vm2911_vm10, %v2888_v53, %v2484_v52  ;;  %v2805_v38 = vsel %vm2763_vm6, %v3772_v59, %v5982_v17  ;;  %v2824_v17 = vsel %vm2812_vm7, %v2781_v48, %v6066_v61 }
 0x15b   : > { %2745 = vrot.lane.b32.xlu0 %v3894_v18, %s4400_s11  ;;  %v2840_v50 = vsel %vm2812_vm7, %v2805_v38, %v6058_v26  ;;  %v2857_v26 = vsel %vm2845_vm8, %v2824_v17, %v6107_v1 }
 0x15c   : > { %v2502_v34 = vpop.permute.xlu1 %2501  ;;  %v2873_v13 = vsel %vm2845_vm8, %v2840_v50, %v6104_v45 }
 0x15d   : > { %v2486_v42 = vpop.permute.xlu0 %2485  ;;  %v2906_v24 = vsel %vm2878_vm9, %v2873_v13, %v6147_v29  ;;  %v2890_v29 = vsel %vm2878_vm9, %v2857_v26, %v6154_v62  ;;  %v4307_v13 = vld [vmem:[%s4483_s30 + $0xa8] sm:$0xf] }
 0x15e   : > { %v2939_v51 = vsel %vm2911_vm10, %v2906_v24, %v2502_v34  ;;  %v2923_v57 = vsel %vm2911_vm10, %v2890_v29, %v2486_v42  ;;  %v4308_v24 = vld [vmem:[%s4483_s30 + $0xac] sm:$0xf]  ;;  %v4309_v29 = vld [vmem:[%s4483_s30 + $0x48] sm:$0xf] }
 0x15f   : > { %v3773_v48 = vcombine.low %v4307_v13, %v4308_v24 }
 0x160   : > { %v2596_v2 = vpop.permute.xlu1 %2595 }
 0x161   : > { %v2580_v3 = vpop.permute.xlu0 %2579  ;;  %v2970_v4 = vsel %vm2944_vm11, %v2937_v28, %v2596_v2 }
 0x162   : > { %v2954_v40 = vsel %vm2944_vm11, %v2921_v47, %v2580_v3 }
 0x164   : > { %v2598_v60 = vpop.permute.xlu1 %2597 }
 0x165   : > { %v2582_v5 = vpop.permute.xlu0 %2581  ;;  %v2972_v56 = vsel %vm2944_vm11, %v2939_v51, %v2598_v60 }
 0x166   : > { %v2956_v61 = vsel %vm2944_vm11, %v2923_v57, %v2582_v5 }
 0x16b   : > { %v2676_v20 = vpop.permute.xlu1 %2675 }
 0x16c   : > { %v2660_v31 = vpop.permute.xlu0 %2659  ;;  %v3003_v49 = vsel %vm2977_vm13, %v2970_v4, %v2676_v20 }
 0x16d   : > { %v2987_v43 = vsel %vm2977_vm13, %v2954_v40, %v2660_v31 }
 0x170   : > { %v2678_v32 = vpop.permute.xlu1 %2677 }
 0x171   : > { %v3005_v45 = vsel %vm2977_vm13, %v2972_v56, %v2678_v32 }
 0x173   : > { %v2662_v6 = vpop.permute.xlu0 %2661 }
 0x174   : > { %v2756_v39 = vpop.permute.xlu1 %2755  ;;  %v2989_v14 = vsel %vm2977_vm13, %v2956_v61, %v2662_v6 }
 0x175   : > { %v3036_v27 = vsel %vm3010_vm14, %v3003_v49, %v2756_v39 }
 0x176   : > { %4145 = vmatprep.mubr.msk.bf16.mxu1 %vm3086_vm15, %v3036_v27 }
 0x177   : > { %v2740_v16 = vpop.permute.xlu0 %2739 }
 0x178   : > { %v3020_v10 = vsel %vm3010_vm14, %v2987_v43, %v2740_v16 }
 0x179   : > { %4129 = vmatprep.mubr.msk.bf16.mxu0 %vm3086_vm15, %v3020_v10 }
 0x17d   : > { %v6206_v30 = vpop.permute.xlu1 %2167 }
 0x181   : > { %v6219_v11 = vpop.permute.xlu0 %2151  ;;  %v2758_v23 = vpop.permute.xlu1 %2757 }
 0x182   : > { %v3038_v63 = vsel %vm3010_vm14, %v3005_v45, %v2758_v23 }
 0x183   : > { %4146 = vmatmul.mubr.msk.bf16.gmra.mxu1 %vm3086_vm15, %v3038_v63  ;;  %v4310_v63 = vld [vmem:[%s4483_s30 + $0x4c] sm:$0xf] }
 0x184   : > { %v3765_v57 = vcombine.low %v4309_v29, %v4310_v63 }
 0x185   : > { %v2742_v0 = vpop.permute.xlu0 %2741 }
 0x186   : > { %v3022_v1 = vsel %vm3010_vm14, %v2989_v14, %v2742_v0  ;;  %v2808_v14 = vsel %vm2763_vm6, %v3773_v48, %v6206_v30  ;;  %v4311_v0 = vld [vmem:[%s4483_s30 + $0xb4] sm:$0xf] }
 0x187   : > { %4130 = vmatmul.mubr.msk.bf16.gmra.mxu0 %vm3086_vm15, %v3022_v1  ;;  %v4312_v1 = vld [vmem:[%s4483_s30 + $0xb8] sm:$0xf] }
 0x18a   : > { %v6230_v33 = vpop.permute.xlu1 %2169 }
 0x18e   : > { %v6232_v52 = vpop.permute.xlu0 %2153  ;;  %v6234_v62 = vpop.permute.xlu1 %2247 }
 0x192   : > { %v6236_v18 = vpop.permute.xlu0 %2231  ;;  %v6238_v34 = vpop.permute.xlu1 %2249 }
 0x196   : > { %v6240_v42 = vpop.permute.xlu0 %2233  ;;  %v6242_v2 = vpop.permute.xlu1 %2343 }
 0x19a   : > { %v6244_v3 = vpop.permute.xlu0 %2327  ;;  %v6246_v60 = vpop.permute.xlu1 %2345 }
 0x19e   : > { %v6248_v5 = vpop.permute.xlu0 %2329 }
 0x1a2   : > { %v6250_v41 = vpop.permute.xlu1 %2423 }
 0x1a3   : > { %v6252_v15 = vpop.permute.xlu0 %2407 }
 0x1a6   : > { %v6254_v58 = vpop.permute.xlu1 %2425 }
 0x1a8   : > { %v6256_v20 = vpop.permute.xlu0 %2409 }
 0x1aa   : > { %v6258_v21 = vpop.permute.xlu1 %2503 }
 0x1ac   : > { %v6260_v54 = vpop.permute.xlu0 %2487 }
 0x1ae   : > { %v6262_v19 = vpop.permute.xlu1 %2505 }
 0x1b0   : > { %v6264_v31 = vpop.permute.xlu0 %2489 }
 0x1b2   : > { %v6266_v36 = vpop.permute.xlu1 %2599 }
 0x1b3   : > { %v4123_v8 = vpop.f32.mrf.mxu0 }
 0x1b4   : > { %v4139_v32 = vpop.f32.mrf.mxu1  ;;  %v6273_v37 = vpop.permute.xlu0 %2583  ;;  %v3166_v25 = vadd.f32 %v4123_v8, %v6271_v46  ;;  %v3774_v8 = vcombine.low %v4311_v0, %v4312_v1 }
 0x1b5   : > { %v3157_v35 = vpop.f32.mrf.mxu0  ;;  %v3230_v12 = vadd.f32 %v4139_v32, %v6271_v46  ;;  %v2842_v32 = vsel %vm2812_vm7, %v2808_v14, %v6234_v62 }
 0x1b6   : > { %v3221_v28 = vpop.f32.mrf.mxu1  ;;  %v6278_v6 = vpop.permute.xlu1 %2601  ;;  %v3158_v53 = vadd.f32 %v6271_v46, %v3157_v35  ;;  %v3286_v9 = vmax.f32 %v3166_v25, 0.0  ;;  %v2875_v35 = vsel %vm2845_vm8, %v2842_v32, %v6242_v2 }
 0x1b7   : > { %v4124_v4 = vpop.f32.mrf.mxu0  ;;  %v3222_v47 = vadd.f32 %v6271_v46, %v3221_v28  ;;  %v3302_v10 = vmax.f32 %v3230_v12, 0.0  ;;  %v2784_v28 = vsel %vm2763_vm6, %v3765_v57, %v6219_v11  ;;  %v4313_v12 = vld [vmem:[%s4483_s30 + $0x54] sm:$0xf]  ;;  %v2908_v30 = vsel %vm2878_vm9, %v2875_v35, %v6250_v41 }
 0x1b8   : > { %v3169_v49 = vadd.f32 %v4124_v4, %v6271_v46  ;;  %v4140_v39 = vpop.f32.mrf.mxu1  ;;  %v6286_v22 = vpop.permute.xlu0 %2585  ;;  %v3284_v7 = vmax.f32 %v3158_v53, 0.0  ;;  %v4314_v4 = vld [vmem:[%s4483_s30 + $0x58] sm:$0xf]  ;;  %v2941_v62 = vsel %vm2911_vm10, %v2908_v30, %v6258_v21  ;;  %s3994_s30 = sshll.u32 %s4383_s15, 11  ;;  %s6411_s15 = scalar_lea.sflag [#allocation3], %s175_s6 }
 0x1b9   : > { %v3233_v27 = vadd.f32 %v4140_v39, %v6271_v46  ;;  %v3160_v40 = vpop.f32.mrf.mxu0  ;;  %v3300_v51 = vmax.f32 %v3222_v47, 0.0  ;;  %v3766_v53 = vcombine.low %v4313_v12, %v4314_v4  ;;  %v2826_v39 = vsel %vm2812_vm7, %v2784_v28, %v6236_v18  ;;  %s6403_s23 = scalar_lea.hbm %s6461_s3, %s3994_s30 }
 0x1ba   : > { %v3287_v59 = vmax.f32 %v3169_v49, 0.0  ;;  %v3161_v43 = vadd.f32 %v6271_v46, %v3160_v40  ;;  %v3224_v16 = vpop.f32.mrf.mxu1  ;;  %v2811_v49 = vsel %vm2763_vm6, %v3774_v8, %v6230_v33  ;;  %v2859_v11 = vsel %vm2845_vm8, %v2826_v39, %v6244_v3 }
 0x1bb   : > { %v3303_v38 = vmax.f32 %v3233_v27, 0.0  ;;  %v3225_v44 = vadd.f32 %v6271_v46, %v3224_v16  ;;  %v2844_v2 = vsel %vm2812_vm7, %v2811_v49, %v6238_v34  ;;  %v2974_v47 = vsel %vm2944_vm11, %v2941_v62, %v6266_v36 }
 0x1bc   : > { %v4003_v55 = vpack.c.bf16 %v3287_v59, %v3286_v9  ;;  %v3285_v50 = vmax.f32 %v3161_v43, 0.0  ;;  %v2877_v41 = vsel %vm2845_vm8, %v2844_v2, %v6246_v60  ;;  %v2892_v33 = vsel %vm2878_vm9, %v2859_v11, %v6252_v15 }
 0x1bd   : > { %v4043_v17 = vpack.c.bf16 %v3303_v38, %v3302_v10  ;;  %v3301_v56 = vmax.f32 %v3225_v44, 0.0  ;;  %v2680_v26 = vpop.permute.xlu1 %2679  ;;  %v2787_v21 = vsel %vm2763_vm6, %v3766_v53, %v6232_v52  ;;  %v2910_v34 = vsel %vm2878_vm9, %v2877_v41, %v6254_v58 }
 0x1be   : > { %4075 = vst [vmem:[%s6292_s8 + $0x8] sm:$0xff] %v4003_v55   ;;  %v3998_v45 = vpack.c.bf16 %v3285_v50, %v3284_v7  ;;  %v3007_v18 = vsel %vm2977_vm13, %v2974_v47, %v2680_v26  ;;  %v2925_v3 = vsel %vm2911_vm10, %v2892_v33, %v6260_v54  ;;  %v2828_v60 = vsel %vm2812_vm7, %v2787_v21, %v6240_v42 }
 0x1bf   : > { %4083 = vst [vmem:[%s6292_s8 + $0x48] sm:$0xff] %v4043_v17   ;;  %v4038_v23 = vpack.c.bf16 %v3301_v56, %v3300_v51  ;;  %v2664_v61 = vpop.permute.xlu0 %2663  ;;  %v2943_v15 = vsel %vm2911_vm10, %v2910_v34, %v6262_v19  ;;  %v2958_v9 = vsel %vm2944_vm11, %v2925_v3, %v6273_v37  ;;  %v2861_v52 = vsel %vm2845_vm8, %v2828_v60, %v6248_v5 }
 0x1c0   : > { %3999 = vst [vmem:[%s6292_s8] sm:$0xff] %v3998_v45   ;;  %v2976_v58 = vsel %vm2944_vm11, %v2943_v15, %v6278_v6  ;;  %v2991_v54 = vsel %vm2977_vm13, %v2958_v9, %v2664_v61  ;;  %v2894_v42 = vsel %vm2878_vm9, %v2861_v52, %v6256_v20 }
 0x1c1   : > { %4082 = vst [vmem:[%s6292_s8 + $0x40] sm:$0xff] %v4038_v23   ;;  %v2927_v37 = vsel %vm2911_vm10, %v2894_v42, %v6264_v31 }
 0x1c2   : > { %v2682_v25 = vpop.permute.xlu1 %2681  ;;  %v2960_v6 = vsel %vm2944_vm11, %v2927_v37, %v6286_v22 }
 0x1c3   : > { %v3009_v43 = vsel %vm2977_vm13, %v2976_v58, %v2682_v25 }
 0x1c5   : > { %v2666_v27 = vpop.permute.xlu0 %2665 }
 0x1c6   : > { %v2760_v40 = vpop.permute.xlu1 %2759  ;;  %v2993_v10 = vsel %vm2977_vm13, %v2960_v6, %v2666_v27 }
 0x1c7   : > { %v3040_v36 = vsel %vm3010_vm14, %v3007_v18, %v2760_v40 }
 0x1c8   : > { %4149 = vmatprep.mubr.msk.bf16.mxu1 %vm3086_vm15, %v3040_v36 }
 0x1c9   : > { %v2744_v59 = vpop.permute.xlu0 %2743 }
 0x1ca   : > { %v3024_v19 = vsel %vm3010_vm14, %v2991_v54, %v2744_v59  ;;  %v2762_v16 = vpop.permute.xlu1 %2761 }
 0x1cb   : > { %4133 = vmatprep.mubr.msk.bf16.mxu0 %vm3086_vm15, %v3024_v19  ;;  %v3042_v5 = vsel %vm3010_vm14, %v3009_v43, %v2762_v16 }
 0x1cc   : > { %4150 = vmatmul.mubr.msk.bf16.gmra.mxu1 %vm3086_vm15, %v3042_v5 }
 0x1cd   : > { %v2746_v20 = vpop.permute.xlu0 %2745 }
 0x1ce   : > { %v3026_v38 = vsel %vm3010_vm14, %v2993_v10, %v2746_v20 }
 0x1cf   : > { %4134 = vmatmul.mubr.msk.bf16.gmra.mxu0 %vm3086_vm15, %v3026_v38 }
 0x204   : > { %v4143_v44 = vpop.f32.mrf.mxu1 }
 0x205   : > { %v3246_v31 = vadd.f32 %v4143_v44, %v6271_v46 }
 0x206   : > { %v4127_v7 = vpop.f32.mrf.mxu0  ;;  %v3237_v55 = vpop.f32.mrf.mxu1 }
 0x207   : > { %v3182_v13 = vadd.f32 %v4127_v7, %v6271_v46  ;;  %v3238_v22 = vadd.f32 %v6271_v46, %v3237_v55  ;;  %v3306_v45 = vmax.f32 %v3246_v31, 0.0 }
 0x208   : > { %v3173_v50 = vpop.f32.mrf.mxu0  ;;  %v4144_v24 = vpop.f32.mrf.mxu1 }
 0x209   : > { %v3249_v51 = vadd.f32 %v4144_v24, %v6271_v46  ;;  %v3174_v17 = vadd.f32 %v6271_v46, %v3173_v50  ;;  %v3290_v57 = vmax.f32 %v3182_v13, 0.0  ;;  %v3304_v0 = vmax.f32 %v3238_v22, 0.0 }
 0x20a   : > { %v4128_v48 = vpop.f32.mrf.mxu0  ;;  %v3240_v26 = vpop.f32.mrf.mxu1 }
 0x20b   : > { %v3185_v56 = vadd.f32 %v4128_v48, %v6271_v46  ;;  %v3307_v23 = vmax.f32 %v3249_v51, 0.0  ;;  %v3241_v63 = vadd.f32 %v6271_v46, %v3240_v26  ;;  %v3288_v32 = vmax.f32 %v3174_v17, 0.0 }
 0x20c   : > { %v3176_v29 = vpop.f32.mrf.mxu0 }
 0x20d   : > { %v3291_v61 = vmax.f32 %v3185_v56, 0.0  ;;  %v3177_v14 = vadd.f32 %v6271_v46, %v3176_v29  ;;  %v4053_v1 = vpack.c.bf16 %v3307_v23, %v3306_v45  ;;  %v3305_v8 = vmax.f32 %v3241_v63, 0.0 }
 0x20f   : > { %v4013_v35 = vpack.c.bf16 %v3291_v61, %v3290_v57  ;;  %v3289_v25 = vmax.f32 %v3177_v14, 0.0  ;;  %4085 = vst [vmem:[%s6292_s8 + $0x58] sm:$0xff] %v4053_v1   ;;  %v4048_v28 = vpack.c.bf16 %v3305_v8, %v3304_v0 }
 0x211   : > { %4077 = vst [vmem:[%s6292_s8 + $0x18] sm:$0xff] %v4013_v35   ;;  %v4008_v12 = vpack.c.bf16 %v3289_v25, %v3288_v32  ;;  %4084 = vst [vmem:[%s6292_s8 + $0x50] sm:$0xff] %v4048_v28  }
 0x213   : > { %4076 = vst [vmem:[%s6292_s8 + $0x10] sm:$0xff] %v4008_v12  }
 0x243   : > { %v4147_v4 = vpop.f32.mrf.mxu1 }
 0x244   : > { %v3262_v30 = vadd.f32 %v4147_v4, %v6271_v46 }
 0x245   : > { %v3253_v53 = vpop.f32.mrf.mxu1 }
 0x246   : > { %v3254_v39 = vadd.f32 %v6271_v46, %v3253_v53  ;;  %v3310_v41 = vmax.f32 %v3262_v30, 0.0 }
 0x247   : > { %v4131_v49 = vpop.f32.mrf.mxu0  ;;  %v4148_v62 = vpop.f32.mrf.mxu1 }
 0x248   : > { %v3265_v2 = vadd.f32 %v4148_v62, %v6271_v46  ;;  %v3198_v27 = vadd.f32 %v4131_v49, %v6271_v46  ;;  %v3308_v40 = vmax.f32 %v3254_v39, 0.0 }
 0x249   : > { %v3189_v11 = vpop.f32.mrf.mxu0  ;;  %v3256_v47 = vpop.f32.mrf.mxu1 }
 0x24a   : > { %v3311_v33 = vmax.f32 %v3265_v2, 0.0  ;;  %v3257_v18 = vadd.f32 %v6271_v46, %v3256_v47  ;;  %v3190_v34 = vadd.f32 %v6271_v46, %v3189_v11  ;;  %v3294_v9 = vmax.f32 %v3198_v27, 0.0 }
 0x24b   : > { %v4132_v21 = vpop.f32.mrf.mxu0 }
 0x24c   : > { %v3201_v3 = vadd.f32 %v4132_v21, %v6271_v46  ;;  %v4063_v36 = vpack.c.bf16 %v3311_v33, %v3310_v41  ;;  %v3309_v60 = vmax.f32 %v3257_v18, 0.0  ;;  %v3292_v59 = vmax.f32 %v3190_v34, 0.0 }
 0x24d   : > { %v3192_v15 = vpop.f32.mrf.mxu0 }
 0x24e   : > { %v3295_v52 = vmax.f32 %v3201_v3, 0.0  ;;  %4087 = vst [vmem:[%s6292_s8 + $0x68] sm:$0xff] %v4063_v36   ;;  %v3193_v58 = vadd.f32 %v6271_v46, %v3192_v15  ;;  %v4058_v54 = vpack.c.bf16 %v3309_v60, %v3308_v40 }
 0x250   : > { %v4023_v42 = vpack.c.bf16 %v3295_v52, %v3294_v9  ;;  %v3293_v43 = vmax.f32 %v3193_v58, 0.0  ;;  %4086 = vst [vmem:[%s6292_s8 + $0x60] sm:$0xff] %v4058_v54  }
 0x252   : > { %4079 = vst [vmem:[%s6292_s8 + $0x28] sm:$0xff] %v4023_v42   ;;  %v4018_v19 = vpack.c.bf16 %v3293_v43, %v3292_v59 }
 0x254   : > { %4078 = vst [vmem:[%s6292_s8 + $0x20] sm:$0xff] %v4018_v19  }
 0x28c   : > { %v4151_v16 = vpop.f32.mrf.mxu1 }
 0x28d   : > { %v3278_v6 = vadd.f32 %v4151_v16, %v6271_v46 }
 0x28e   : > { %v3269_v37 = vpop.f32.mrf.mxu1 }
 0x28f   : > { %v4135_v5 = vpop.f32.mrf.mxu0  ;;  %v3270_v38 = vadd.f32 %v6271_v46, %v3269_v37  ;;  %v3314_v31 = vmax.f32 %v3278_v6, 0.0 }
 0x290   : > { %v4152_v10 = vpop.f32.mrf.mxu1  ;;  %v3214_v7 = vadd.f32 %v4135_v5, %v6271_v46 }
 0x291   : > { %v3205_v20 = vpop.f32.mrf.mxu0  ;;  %v3281_v44 = vadd.f32 %v4152_v10, %v6271_v46  ;;  %v3312_v51 = vmax.f32 %v3270_v38, 0.0 }
 0x292   : > { %v3272_v55 = vpop.f32.mrf.mxu1  ;;  %v3206_v22 = vadd.f32 %v6271_v46, %v3205_v20  ;;  %v3298_v45 = vmax.f32 %v3214_v7, 0.0 }
 0x293   : > { %v4136_v50 = vpop.f32.mrf.mxu0  ;;  %v3315_v13 = vmax.f32 %v3281_v44, 0.0  ;;  %v3273_v24 = vadd.f32 %v6271_v46, %v3272_v55 }
 0x294   : > { %v3217_v48 = vadd.f32 %v4136_v50, %v6271_v46  ;;  %v3296_v57 = vmax.f32 %v3206_v22, 0.0 }
 0x295   : > { %v4073_v17 = vpack.c.bf16 %v3315_v13, %v3314_v31  ;;  %v3208_v56 = vpop.f32.mrf.mxu0  ;;  %v3313_v26 = vmax.f32 %v3273_v24, 0.0 }
 0x296   : > { %v3299_v23 = vmax.f32 %v3217_v48, 0.0  ;;  %v3209_v29 = vadd.f32 %v6271_v46, %v3208_v56 }
 0x297   : > { %4089 = vst [vmem:[%s6292_s8 + $0x78] sm:$0xff] %v4073_v17   ;;  %v4068_v63 = vpack.c.bf16 %v3313_v26, %v3312_v51 }
 0x298   : > { %v4033_v61 = vpack.c.bf16 %v3299_v23, %v3298_v45  ;;  %v3297_v14 = vmax.f32 %v3209_v29, 0.0 }
 0x299   : > { %4088 = vst [vmem:[%s6292_s8 + $0x70] sm:$0xff] %v4068_v63  }
 0x29a   : > { %4081 = vst [vmem:[%s6292_s8 + $0x38] sm:$0xff] %v4033_v61   ;;  %v4028_v0 = vpack.c.bf16 %v3297_v14, %v3296_v57 }
 0x29c   : > { %4080 = vst [vmem:[%s6292_s8 + $0x30] sm:$0xff] %v4028_v0  }
 0x29d   : > { %4328 = shalt.err (!%p4325_p5)
}
 0x29e   : > { %s4329_s18 = scalar_lea.hbm %s6403_s23, 2048  ;;  %s4333_s5 = scalar_lea.hbm %s6461_s3, 4096 }
 0x29f   : > { %p4330_p6 = scmp.ne.s32.totalorder %s6403_s23, %s4329_s18  ;;  %p4334_p10 = scmp.lt.s32.totalorder %s6403_s23, %s6461_s3 }
 0x2a0   : > { %p4335_p11 = scmp.lt.s32.totalorder %s4333_s5, %s4329_s18 }
 0x2a1   : > { %p4331_p7 = pnand %p4330_p6, %p4463_p4 }
 0x2a2   : > { %p4336_p12 = por %p4335_p11, %p4334_p10 }
 0x2a3   : > { %p4332_p9 = pneg %p4331_p7 }
 0x2a5   : > { %p4337_p13 = pnand %p4336_p12, %p4332_p9 }
 0x2a7   : > { %4340 = shalt.err (!%p4337_p13)
}
 0x2a8   : > { %s4402_s8 = smov 4  }
 0x2a9   : > { %4166 = dma.vmem_to_hbm [thread:$0]  (%p4463_p4), %s6406_s9, 2048, %s6403_s23, %s6411_s15, %s4400_s11, %s4400_s11, %s4402_s8  }
 0x2aa PF: > { %p4172_p0 = scmp.ge.s32.totalorder %s4391_s17, 2  ;;  %s3508_s30 = sand.u32 1, %s4371_s12  }
 0x2ab   : > { %s3509_s10 = scalar_lea.sflag [#allocation3], %s3508_s30 }
 0x2ac   : > { %p4169_p1 = pnand %p4172_p0, %p4470_p8 }
 0x2ae   : > { %p4170_p2 = pneg %p4169_p1 }
 0x2b0   : > { %4366 = dma.done.wait (%p4170_p2), %s3509_s10, 2048  }
 0x2b1   : > { %4368 = vsyncadd (%p4170_p2), %s3509_s10, 4294965248  ;;  %s16_s17 = sadd.s32 1, %s4391_s17   ;;  %s6468_s12 = smov %s4375_s13 }
 0x2b2   : > { %p13_p3 = scmp.ge.s32.totalorder %s16_s17, 4   ;;  %s6469_s13 = smov %s4379_s14 }
 0x2b3   : > { %s6470_s14 = smov %s4476_s25  ;;  %s6471_s15 = smov %s4387_s16 }
 0x2b4   : > { %s6472_s16 = smov %s6474_s20  ;;  %15 = sbr.rel (!%p13_p3) target bundleno = 4 (0x4), region = 70 }
 0x2b9   :  { %3514 = vsyncpa [#allocation3], 1 }
 0x2ba   :  { %3516 = vsyncpa [#allocation3 + $0x1], 1 }

</bundles_post_ra>
